<compile_context>
chip_gen: v5e
topology: v5e:2x2
jax: 0.10.0
libtpu: 0.0.40
codegen_flags: <defaults>
</compile_context>

<pallas_src>
import numpy as np
import jax
import jax.numpy as jnp
from jax.experimental import pallas as pl
from jax.experimental.pallas import tpu as pltpu


# ---------------------------------------------------------------------------
# Bilinear interpolation matrix (PyTorch nn.Upsample, mode='bilinear',
# align_corners=False): out = M @ in along one spatial axis.
# ---------------------------------------------------------------------------
def bilinear_matrix(in_size, out_size):
    m = np.zeros((out_size, in_size), np.float32)
    scale = in_size / out_size
    for o in range(out_size):
        src = scale * (o + 0.5) - 0.5
        if src < 0.0:
            src = 0.0
        i0 = min(int(np.floor(src)), in_size - 1)
        i1 = min(i0 + 1, in_size - 1)
        frac = src - i0
        m[o, i0] += 1.0 - frac
        m[o, i1] += frac
    return m


# ---------------------------------------------------------------------------
# Fused ConvInterp kernel (one batch element per grid step).
#   x_ref: (1, H+2, W+2, Cin)     zero-padded NHWC input tile
#   w_ref: (9, Cin, Cpad)         conv taps (ky,kx)-major, channel-padded; resident
#   k_ref: (Hout*Wout, H*W)       kron(Wh, Ww) bilinear matrix; resident
#   o_ref: (1, Hout*Wout, Cpad)   lane-dense output tile (NHWC rows = ho*Wout + wo)
# ---------------------------------------------------------------------------
def _conv_interp_kernel(x_ref, w_ref, k_ref, o_ref):
    H = x_ref.shape[1] - 2
    W = x_ref.shape[2] - 2
    Cin = x_ref.shape[3]
    Cpad = w_ref.shape[2]

    # 3x3 "same" convolution via in-kernel im2col: accumulate one small matmul per tap.
    acc = jnp.zeros((H * W, Cpad), jnp.float32)
    for ky in range(3):
        for kx in range(3):
            tap = x_ref[0, ky:ky + H, kx:kx + W, :].reshape(H * W, Cin)
            acc = acc + jnp.dot(tap, w_ref[ky * 3 + kx],
                                preferred_element_type=jnp.float32)

    # Bilinear upsample: one resident interpolation matmul (kron(Wh, Ww) @ conv).
    o_ref[0] = jnp.dot(k_ref[...], acc,
                       preferred_element_type=jnp.float32).astype(o_ref.dtype)


# ---------------------------------------------------------------------------
# Wrapper: NCHW in -> NCHW out (PyTorch ConvInterp.forward semantics).
# ---------------------------------------------------------------------------
def _conv_interp(x_nchw, w_oihw, *, out_size):
    B, Cin, H, W = x_nchw.shape
    Cout = w_oihw.shape[0]
    Cpad = ((Cout + 127) // 128) * 128          # lane-dense output channels
    Hout = Wout = out_size

    # NCHW -> NHWC (+ spatial zero-pad for the 3x3 conv).
    x = jnp.transpose(x_nchw, (0, 2, 3, 1)).astype(jnp.float32)
    xp = jnp.pad(x, ((0, 0), (1, 1), (1, 1), (0, 0)))

    # Conv taps: (Cout, Cin, 3, 3) -> (9, Cin, Cpad), tap index = ky*3 + kx.
    wmat = jnp.transpose(w_oihw.astype(jnp.float32), (2, 3, 1, 0)).reshape(9, Cin, Cout)
    wmat = jnp.pad(wmat, ((0, 0), (0, 0), (0, Cpad - Cout)))

    # kron(Wh, Ww): out[(ho,wo)] = sum_{(hi,wi)} Wh[ho,hi]*Ww[wo,wi]*conv[(hi,wi)].
    kron = jnp.asarray(np.kron(bilinear_matrix(H, Hout), bilinear_matrix(W, Wout)))

    out_flat = pl.pallas_call(
        _conv_interp_kernel,
        out_shape=jax.ShapeDtypeStruct((B, Hout * Wout, Cpad), jnp.float32),
        grid=(B,),
        in_specs=[
            pl.BlockSpec((1, H + 2, W + 2, Cin), lambda b: (b, 0, 0, 0)),
            pl.BlockSpec((9, Cin, Cpad), lambda b: (0, 0, 0)),        # resident weights
            pl.BlockSpec((Hout * Wout, H * W), lambda b: (0, 0)),     # resident interp matrix
        ],
        out_specs=pl.BlockSpec((1, Hout * Wout, Cpad), lambda b: (b, 0, 0)),
        compiler_params=pltpu.CompilerParams(
            dimension_semantics=("parallel",)),     # v7x: shard batch across both TCs
    )(xp, wmat, kron)

    out = out_flat.reshape(B, Hout, Wout, Cpad)[..., :Cout]
    return jnp.transpose(out, (0, 3, 1, 2))                           # NHWC -> NCHW


conv_interp = jax.jit(_conv_interp, static_argnames="out_size")


# ---------------------------------------------------------------------------
# Pure-XLA reference (same math, high precision) for an in-script sanity check.
# ---------------------------------------------------------------------------
def conv_interp_reference(x_nchw, w_oihw, out_size):
    B, Cin, H, W = x_nchw.shape
    xh = jnp.transpose(x_nchw, (0, 2, 3, 1)).astype(jnp.float32)
    xp = jnp.pad(xh, ((0, 0), (1, 1), (1, 1), (0, 0)))
    y = 0.0
    for ky in range(3):
        for kx in range(3):
            y = y + jnp.einsum("bhwc,oc->bhwo", xp[:, ky:ky + H, kx:kx + W, :],
                               w_oihw[:, :, ky, kx].astype(jnp.float32),
                               precision="highest")
    wh = jnp.asarray(bilinear_matrix(H, out_size))
    ww = jnp.asarray(bilinear_matrix(W, out_size))
    z = jnp.einsum("ph,qw,bhwo->bpqo", wh, ww, y, precision="highest")
    return jnp.transpose(z, (0, 3, 1, 2))


if __name__ == "__main__":
    key = jax.random.PRNGKey(0)
    B, in_channels, out_channels = 2, 4, 8
    in_size, out_size = 16, 32

    k_x, k_w = jax.random.split(key)
    x = jax.random.normal(k_x, (B, in_channels, in_size, in_size), jnp.float32)
    w = 0.1 * jax.random.normal(k_w, (out_channels, in_channels, 3, 3), jnp.float32)

    out = conv_interp(x, w, out_size=out_size)
    out = jax.block_until_ready(out)

    assert out.shape == (B, out_channels, out_size, out_size), out.shape
    assert bool(jnp.all(jnp.isfinite(out)))

    ref = conv_interp_reference(x, w, out_size)
    max_err = float(jnp.max(jnp.abs(out - ref)))
    assert max_err < 5e-2, f"max abs error vs reference: {max_err}"

    print("KERNEL_OK")
</pallas_src>

<mosaic_0001>
module attributes {stable_mosaic.version = 11 : i64} {
  func.func @_conv_interp_kernel(%arg0: i32, %arg1: memref<1x18x18x4xf32, #tpu.memory_space<vmem>>, %arg2: memref<9x4x128xf32, #tpu.memory_space<vmem>>, %arg3: memref<1024x256xf32, #tpu.memory_space<vmem>>, %arg4: memref<1x1024x128xf32, #tpu.memory_space<vmem>>) attributes {dimension_semantics = [#tpu.dimension_semantics<parallel>], iteration_bounds = array<i64: 2>, scalar_prefetch = 0 : i64, scratch_operands = 0 : i64, tpu.core_type = #tpu.core_type<tc>, window_params = [{transform_indices = @transform_0, window_bounds = array<i64: 1, 18, 18, 4>}, {pipeline_mode = #tpu.pipeline_mode<synchronous>, transform_indices = @transform_1, window_bounds = array<i64: 9, 4, 128>}, {pipeline_mode = #tpu.pipeline_mode<synchronous>, transform_indices = @transform_2, window_bounds = array<i64: 1024, 256>}, {transform_indices = @transform_3, window_bounds = array<i64: 1, 1024, 128>}]} {
    %cst = arith.constant 0.000000e+00 : f32
    %0 = vector.broadcast %cst : f32 to vector<256x128xf32>
    %c0 = arith.constant 0 : index
    %c0_0 = arith.constant 0 : index
    %c0_1 = arith.constant 0 : index
    %c0_2 = arith.constant 0 : index
    %1 = vector.load %arg1[%c0, %c0_0, %c0_1, %c0_2] : memref<1x18x18x4xf32, #tpu.memory_space<vmem>>, vector<1x16x16x4xf32>
    %2 = vector.shape_cast %1 : vector<1x16x16x4xf32> to vector<16x16x4xf32>
    %3 = vector.shape_cast %2 : vector<16x16x4xf32> to vector<256x4xf32>
    %c0_3 = arith.constant 0 : index
    %c0_4 = arith.constant 0 : index
    %c0_5 = arith.constant 0 : index
    %4 = vector.load %arg2[%c0_3, %c0_4, %c0_5] : memref<9x4x128xf32, #tpu.memory_space<vmem>>, vector<1x4x128xf32>
    %5 = vector.shape_cast %4 : vector<1x4x128xf32> to vector<4x128xf32>
    %cst_6 = arith.constant dense<0.000000e+00> : vector<256x128xf32>
    %6 = tpu.matmul %3, %5, %cst_6 {dimension_numbers = #tpu.dot_dimension_numbers<[1], [0], [0], [1], [0, 0, 1, 1], [], []>} : vector<256x4xf32>, vector<4x128xf32>, vector<256x128xf32> -> vector<256x128xf32>
    %7 = arith.addf %0, %6 : vector<256x128xf32>
    %c0_7 = arith.constant 0 : index
    %c0_8 = arith.constant 0 : index
    %c1 = arith.constant 1 : index
    %c0_9 = arith.constant 0 : index
    %8 = vector.load %arg1[%c0_7, %c0_8, %c1, %c0_9] : memref<1x18x18x4xf32, #tpu.memory_space<vmem>>, vector<1x16x16x4xf32>
    %9 = vector.shape_cast %8 : vector<1x16x16x4xf32> to vector<16x16x4xf32>
    %10 = vector.shape_cast %9 : vector<16x16x4xf32> to vector<256x4xf32>
    %c1_10 = arith.constant 1 : index
    %c0_11 = arith.constant 0 : index
    %c0_12 = arith.constant 0 : index
    %11 = vector.load %arg2[%c1_10, %c0_11, %c0_12] : memref<9x4x128xf32, #tpu.memory_space<vmem>>, vector<1x4x128xf32>
    %12 = vector.shape_cast %11 : vector<1x4x128xf32> to vector<4x128xf32>
    %cst_13 = arith.constant dense<0.000000e+00> : vector<256x128xf32>
    %13 = tpu.matmul %10, %12, %cst_13 {dimension_numbers = #tpu.dot_dimension_numbers<[1], [0], [0], [1], [0, 0, 1, 1], [], []>} : vector<256x4xf32>, vector<4x128xf32>, vector<256x128xf32> -> vector<256x128xf32>
    %14 = arith.addf %7, %13 : vector<256x128xf32>
    %c0_14 = arith.constant 0 : index
    %c0_15 = arith.constant 0 : index
    %c2 = arith.constant 2 : index
    %c0_16 = arith.constant 0 : index
    %15 = vector.load %arg1[%c0_14, %c0_15, %c2, %c0_16] : memref<1x18x18x4xf32, #tpu.memory_space<vmem>>, vector<1x16x16x4xf32>
    %16 = vector.shape_cast %15 : vector<1x16x16x4xf32> to vector<16x16x4xf32>
    %17 = vector.shape_cast %16 : vector<16x16x4xf32> to vector<256x4xf32>
    %c2_17 = arith.constant 2 : index
    %c0_18 = arith.constant 0 : index
    %c0_19 = arith.constant 0 : index
    %18 = vector.load %arg2[%c2_17, %c0_18, %c0_19] : memref<9x4x128xf32, #tpu.memory_space<vmem>>, vector<1x4x128xf32>
    %19 = vector.shape_cast %18 : vector<1x4x128xf32> to vector<4x128xf32>
    %cst_20 = arith.constant dense<0.000000e+00> : vector<256x128xf32>
    %20 = tpu.matmul %17, %19, %cst_20 {dimension_numbers = #tpu.dot_dimension_numbers<[1], [0], [0], [1], [0, 0, 1, 1], [], []>} : vector<256x4xf32>, vector<4x128xf32>, vector<256x128xf32> -> vector<256x128xf32>
    %21 = arith.addf %14, %20 : vector<256x128xf32>
    %c0_21 = arith.constant 0 : index
    %c1_22 = arith.constant 1 : index
    %c0_23 = arith.constant 0 : index
    %c0_24 = arith.constant 0 : index
    %22 = vector.load %arg1[%c0_21, %c1_22, %c0_23, %c0_24] : memref<1x18x18x4xf32, #tpu.memory_space<vmem>>, vector<1x16x16x4xf32>
    %23 = vector.shape_cast %22 : vector<1x16x16x4xf32> to vector<16x16x4xf32>
    %24 = vector.shape_cast %23 : vector<16x16x4xf32> to vector<256x4xf32>
    %c3 = arith.constant 3 : index
    %c0_25 = arith.constant 0 : index
    %c0_26 = arith.constant 0 : index
    %25 = vector.load %arg2[%c3, %c0_25, %c0_26] : memref<9x4x128xf32, #tpu.memory_space<vmem>>, vector<1x4x128xf32>
    %26 = vector.shape_cast %25 : vector<1x4x128xf32> to vector<4x128xf32>
    %cst_27 = arith.constant dense<0.000000e+00> : vector<256x128xf32>
    %27 = tpu.matmul %24, %26, %cst_27 {dimension_numbers = #tpu.dot_dimension_numbers<[1], [0], [0], [1], [0, 0, 1, 1], [], []>} : vector<256x4xf32>, vector<4x128xf32>, vector<256x128xf32> -> vector<256x128xf32>
    %28 = arith.addf %21, %27 : vector<256x128xf32>
    %c0_28 = arith.constant 0 : index
    %c1_29 = arith.constant 1 : index
    %c1_30 = arith.constant 1 : index
    %c0_31 = arith.constant 0 : index
    %29 = vector.load %arg1[%c0_28, %c1_29, %c1_30, %c0_31] : memref<1x18x18x4xf32, #tpu.memory_space<vmem>>, vector<1x16x16x4xf32>
    %30 = vector.shape_cast %29 : vector<1x16x16x4xf32> to vector<16x16x4xf32>
    %31 = vector.shape_cast %30 : vector<16x16x4xf32> to vector<256x4xf32>
    %c4 = arith.constant 4 : index
    %c0_32 = arith.constant 0 : index
    %c0_33 = arith.constant 0 : index
    %32 = vector.load %arg2[%c4, %c0_32, %c0_33] : memref<9x4x128xf32, #tpu.memory_space<vmem>>, vector<1x4x128xf32>
    %33 = vector.shape_cast %32 : vector<1x4x128xf32> to vector<4x128xf32>
    %cst_34 = arith.constant dense<0.000000e+00> : vector<256x128xf32>
    %34 = tpu.matmul %31, %33, %cst_34 {dimension_numbers = #tpu.dot_dimension_numbers<[1], [0], [0], [1], [0, 0, 1, 1], [], []>} : vector<256x4xf32>, vector<4x128xf32>, vector<256x128xf32> -> vector<256x128xf32>
    %35 = arith.addf %28, %34 : vector<256x128xf32>
    %c0_35 = arith.constant 0 : index
    %c1_36 = arith.constant 1 : index
    %c2_37 = arith.constant 2 : index
    %c0_38 = arith.constant 0 : index
    %36 = vector.load %arg1[%c0_35, %c1_36, %c2_37, %c0_38] : memref<1x18x18x4xf32, #tpu.memory_space<vmem>>, vector<1x16x16x4xf32>
    %37 = vector.shape_cast %36 : vector<1x16x16x4xf32> to vector<16x16x4xf32>
    %38 = vector.shape_cast %37 : vector<16x16x4xf32> to vector<256x4xf32>
    %c5 = arith.constant 5 : index
    %c0_39 = arith.constant 0 : index
    %c0_40 = arith.constant 0 : index
    %39 = vector.load %arg2[%c5, %c0_39, %c0_40] : memref<9x4x128xf32, #tpu.memory_space<vmem>>, vector<1x4x128xf32>
    %40 = vector.shape_cast %39 : vector<1x4x128xf32> to vector<4x128xf32>
    %cst_41 = arith.constant dense<0.000000e+00> : vector<256x128xf32>
    %41 = tpu.matmul %38, %40, %cst_41 {dimension_numbers = #tpu.dot_dimension_numbers<[1], [0], [0], [1], [0, 0, 1, 1], [], []>} : vector<256x4xf32>, vector<4x128xf32>, vector<256x128xf32> -> vector<256x128xf32>
    %42 = arith.addf %35, %41 : vector<256x128xf32>
    %c0_42 = arith.constant 0 : index
    %c2_43 = arith.constant 2 : index
    %c0_44 = arith.constant 0 : index
    %c0_45 = arith.constant 0 : index
    %43 = vector.load %arg1[%c0_42, %c2_43, %c0_44, %c0_45] : memref<1x18x18x4xf32, #tpu.memory_space<vmem>>, vector<1x16x16x4xf32>
    %44 = vector.shape_cast %43 : vector<1x16x16x4xf32> to vector<16x16x4xf32>
    %45 = vector.shape_cast %44 : vector<16x16x4xf32> to vector<256x4xf32>
    %c6 = arith.constant 6 : index
    %c0_46 = arith.constant 0 : index
    %c0_47 = arith.constant 0 : index
    %46 = vector.load %arg2[%c6, %c0_46, %c0_47] : memref<9x4x128xf32, #tpu.memory_space<vmem>>, vector<1x4x128xf32>
    %47 = vector.shape_cast %46 : vector<1x4x128xf32> to vector<4x128xf32>
    %cst_48 = arith.constant dense<0.000000e+00> : vector<256x128xf32>
    %48 = tpu.matmul %45, %47, %cst_48 {dimension_numbers = #tpu.dot_dimension_numbers<[1], [0], [0], [1], [0, 0, 1, 1], [], []>} : vector<256x4xf32>, vector<4x128xf32>, vector<256x128xf32> -> vector<256x128xf32>
    %49 = arith.addf %42, %48 : vector<256x128xf32>
    %c0_49 = arith.constant 0 : index
    %c2_50 = arith.constant 2 : index
    %c1_51 = arith.constant 1 : index
    %c0_52 = arith.constant 0 : index
    %50 = vector.load %arg1[%c0_49, %c2_50, %c1_51, %c0_52] : memref<1x18x18x4xf32, #tpu.memory_space<vmem>>, vector<1x16x16x4xf32>
    %51 = vector.shape_cast %50 : vector<1x16x16x4xf32> to vector<16x16x4xf32>
    %52 = vector.shape_cast %51 : vector<16x16x4xf32> to vector<256x4xf32>
    %c7 = arith.constant 7 : index
    %c0_53 = arith.constant 0 : index
    %c0_54 = arith.constant 0 : index
    %53 = vector.load %arg2[%c7, %c0_53, %c0_54] : memref<9x4x128xf32, #tpu.memory_space<vmem>>, vector<1x4x128xf32>
    %54 = vector.shape_cast %53 : vector<1x4x128xf32> to vector<4x128xf32>
    %cst_55 = arith.constant dense<0.000000e+00> : vector<256x128xf32>
    %55 = tpu.matmul %52, %54, %cst_55 {dimension_numbers = #tpu.dot_dimension_numbers<[1], [0], [0], [1], [0, 0, 1, 1], [], []>} : vector<256x4xf32>, vector<4x128xf32>, vector<256x128xf32> -> vector<256x128xf32>
    %56 = arith.addf %49, %55 : vector<256x128xf32>
    %c0_56 = arith.constant 0 : index
    %c2_57 = arith.constant 2 : index
    %c2_58 = arith.constant 2 : index
    %c0_59 = arith.constant 0 : index
    %57 = vector.load %arg1[%c0_56, %c2_57, %c2_58, %c0_59] : memref<1x18x18x4xf32, #tpu.memory_space<vmem>>, vector<1x16x16x4xf32>
    %58 = vector.shape_cast %57 : vector<1x16x16x4xf32> to vector<16x16x4xf32>
    %59 = vector.shape_cast %58 : vector<16x16x4xf32> to vector<256x4xf32>
    %c8 = arith.constant 8 : index
    %c0_60 = arith.constant 0 : index
    %c0_61 = arith.constant 0 : index
    %60 = vector.load %arg2[%c8, %c0_60, %c0_61] : memref<9x4x128xf32, #tpu.memory_space<vmem>>, vector<1x4x128xf32>
    %61 = vector.shape_cast %60 : vector<1x4x128xf32> to vector<4x128xf32>
    %cst_62 = arith.constant dense<0.000000e+00> : vector<256x128xf32>
    %62 = tpu.matmul %59, %61, %cst_62 {dimension_numbers = #tpu.dot_dimension_numbers<[1], [0], [0], [1], [0, 0, 1, 1], [], []>} : vector<256x4xf32>, vector<4x128xf32>, vector<256x128xf32> -> vector<256x128xf32>
    %63 = arith.addf %56, %62 : vector<256x128xf32>
    %c0_63 = arith.constant 0 : index
    %c0_64 = arith.constant 0 : index
    %64 = vector.load %arg3[%c0_63, %c0_64] : memref<1024x256xf32, #tpu.memory_space<vmem>>, vector<1024x256xf32>
    %cst_65 = arith.constant dense<0.000000e+00> : vector<1024x128xf32>
    %65 = tpu.matmul %64, %63, %cst_65 {dimension_numbers = #tpu.dot_dimension_numbers<[1], [0], [0], [1], [0, 0, 1, 1], [], []>} : vector<1024x256xf32>, vector<256x128xf32>, vector<1024x128xf32> -> vector<1024x128xf32>
    %c0_66 = arith.constant 0 : index
    %c0_67 = arith.constant 0 : index
    %c0_68 = arith.constant 0 : index
    %66 = vector.load %arg4[%c0_66, %c0_67, %c0_68] : memref<1x1024x128xf32, #tpu.memory_space<vmem>>, vector<1x1024x128xf32>
    %67 = vector.shape_cast %66 : vector<1x1024x128xf32> to vector<1024x128xf32>
    %68 = vector.shape_cast %65 : vector<1024x128xf32> to vector<1x1024x128xf32>
    tpu.vector_store %arg4[%c0_66, %c0_67, %c0_68], %68 {strides = array<i32>} : memref<1x1024x128xf32, #tpu.memory_space<vmem>>, vector<1x1024x128xf32>,
    return
  }
  func.func @transform_0(%arg0: i32) -> (i32, i32, i32, i32) {
    %c0_i32 = arith.constant 0 : i32
    %c0_i32_0 = arith.constant 0 : i32
    %c0_i32_1 = arith.constant 0 : i32
    %c0_i32_2 = arith.constant 0 : i32
    return %arg0, %c0_i32, %c0_i32_0, %c0_i32_1 : i32, i32, i32, i32
  }
  func.func @transform_1(%arg0: i32) -> (i32, i32, i32) {
    %c0_i32 = arith.constant 0 : i32
    %c0_i32_0 = arith.constant 0 : i32
    %c0_i32_1 = arith.constant 0 : i32
    %c0_i32_2 = arith.constant 0 : i32
    return %c0_i32, %c0_i32_0, %c0_i32_1 : i32, i32, i32
  }
  func.func @transform_2(%arg0: i32) -> (i32, i32) {
    %c0_i32 = arith.constant 0 : i32
    %c0_i32_0 = arith.constant 0 : i32
    %c0_i32_1 = arith.constant 0 : i32
    return %c0_i32, %c0_i32_0 : i32, i32
  }
  func.func @transform_3(%arg0: i32) -> (i32, i32, i32) {
    %c0_i32 = arith.constant 0 : i32
    %c0_i32_0 = arith.constant 0 : i32
    %c0_i32_1 = arith.constant 0 : i32
    return %arg0, %c0_i32, %c0_i32_0 : i32, i32, i32
  }
}

</mosaic_0001>

<bundles_post_ra>
// kernel: _conv_interp.1
= control target key start
LH: loop header
LB: loop body
LE: loop exit
PB: predicated region body
PF: predicated region fallthrough
CT: control target
= control target key end

     0   :  { %s4431_s12 = smov 0   ;;  %s7146_s0 = inlined_call_operand.vmem [shape: f32[2,18,18,4], index: 0, kind: input, shape index: {}]   ;;  %s7147_s1 = inlined_call_operand.vmem [shape: f32[9,4,128], index: 1, kind: input, shape index: {}]   ;;  %s7148_s2 = inlined_call_operand.vmem [shape: f32[1024,256], index: 2, kind: input, shape index: {}]   ;;  %s7149_s3 = inlined_call_operand.vmem [shape: f32[2,1024,128], index: 3, kind: output, shape index: {}]  }
   0x1 LB: > { %s3853_s13 = sadd.s32 4294967295, %s4409_s12   ;;  %p3857_p0 = scmp.ge.s32.totalorder %s4409_s12, 1  ;;  %s4409_s12 = sphi %s4431_s12, %s13_s12  }
   0x2   : > { %p137_p1 = scmp.lt.s32.totalorder %s4409_s12, 3 }
   0x4   : > { %p138_p2 = pnand %p3857_p0, %p137_p1 }
   0x6   : > { %141 = sbr.rel (%p138_p2) target bundleno = 1520 (0x5f0), region = 32 }
   0xb   : > { %v3861_v0 = vld [vmem:[%s7147_s1 + $0x4] sm:$0xf]  ;;  %vm335_vm0 = vcmask 1043456   ;;  %v203_v1 = vld [vmem:[%s7147_s1] sm:$0xf]  ;;  %p161_p3 = scmp.lt.s32.totalorder %s3853_s13, 1 }
   0xc   : > { %4361 = vmatpush.msk.msra.mxu3 %vm335_vm0, %v3861_v0  ;;  %3895 = vmatpush.msk.msra.mxu1 %vm335_vm0, %v203_v1  ;;  %v3928_v2 = vld [vmem:[%s7147_s1 + $0x8] sm:$0xf]  ;;  %vm238_vm1 = vcmask 31744   ;;  %v3994_v53 = vld [vmem:[%s7147_s1 + $0xc] sm:$0xf] }
   0xd   : > { %3929 = vmatpush.msk.msra.mxu2 %vm335_vm0, %v3928_v2  ;;  %s7430_s13 = smov (!%p161_p3, %s3853_s13), 1  ;;  %3862 = vmatpush.msk.msra.mxu0 %vm335_vm0, %v3861_v0  ;;  %v4060_v58 = vld [vmem:[%s7147_s1 + $0x10] sm:$0xf] }
   0xe   : > { %s4394_s20 = smul.u32 432, %s7430_s13  ;;  %3995 = vmatpush.msk.msrb.mxu3 %vm335_vm0, %v3994_v53  ;;  %s4360_s22 = sshll.u32 %s7430_s13, 10 }
   0xf   : > { %4061 = vmatpush.msk.msrb.mxu0 %vm335_vm0, %v4060_v58  ;;  %s6213_s29 = scalar_lea.vmem %s7149_s3, %s4360_s22 }
  0x10   : > { %s4458_s23 = scalar_lea.vmem %s7146_s0, %s4394_s20 }
  0x11   : > { %v4461_v3 = vld [vmem:[%s4458_s23 + $0xc1] sm:$0xff]  ;;  %v4472_v7 = vld [vmem:[%s4458_s23 + $0xc9] sm:$0xff]  ;;  %v4483_v11 = vld [vmem:[%s4458_s23 + $0xd9] sm:$0xff] }
  0x12   : > { %v171_v4 = vld [vmem:[%s4458_s23] sm:$0xff]  ;;  %3879 = vmatmul.msk.f32.vlgmr.msra.gmra.mxu3 %vm238_vm1, %v4461_v3  ;;  %v172_v8 = vld [vmem:[%s4458_s23 + $0x8] sm:$0xff]  ;;  %v4486_v12 = vld [vmem:[%s4458_s23 + $0x18] sm:$0xff] }
  0x13   : > { %v664_v5 = vld [vmem:[%s4458_s23 + $0x2] sm:$0xff]  ;;  %3896 = vmatmul.msk.f32.vlgmr.msra.gmra.mxu1 %vm238_vm1, %v171_v4  ;;  %v665_v9 = vld [vmem:[%s4458_s23 + $0xa] sm:$0xff]  ;;  %v4489_v13 = vld [vmem:[%s4458_s23 + $0x1a] sm:$0xff] }
  0x14   : > { %v204_v6 = vld [vmem:[%s4458_s23 + $0x1] sm:$0xff]  ;;  %3930 = vmatmul.msk.f32.vlgmr.msra.gmra.mxu2 %vm238_vm1, %v664_v5  ;;  %v205_v10 = vld [vmem:[%s4458_s23 + $0x9] sm:$0xff]  ;;  %v4492_v14 = vld [vmem:[%s4458_s23 + $0x19] sm:$0xff] }
  0x15   : > { %3863 = vmatmul.msk.f32.vlgmr.msra.gmra.mxu0 %vm238_vm1, %v204_v6  ;;  %v4503_v15 = vld [vmem:[%s4458_s23 + $0xe1] sm:$0xff]  ;;  %v4523_v19 = vld [vmem:[%s4458_s23 + $0xf1] sm:$0xff]  ;;  %v4543_v23 = vld [vmem:[%s4458_s23 + $0xf9] sm:$0xff] }
  0x16   : > { %v4506_v16 = vld [vmem:[%s4458_s23 + $0x20] sm:$0xff]  ;;  %v4526_v20 = vld [vmem:[%s4458_s23 + $0x30] sm:$0xff]  ;;  %v4546_v24 = vld [vmem:[%s4458_s23 + $0x38] sm:$0xff] }
  0x17   : > { %v4509_v17 = vld [vmem:[%s4458_s23 + $0x22] sm:$0xff]  ;;  %v4529_v21 = vld [vmem:[%s4458_s23 + $0x32] sm:$0xff]  ;;  %v4549_v25 = vld [vmem:[%s4458_s23 + $0x3a] sm:$0xff] }
  0x18   : > { %v4512_v18 = vld [vmem:[%s4458_s23 + $0x21] sm:$0xff]  ;;  %v4532_v22 = vld [vmem:[%s4458_s23 + $0x31] sm:$0xff]  ;;  %v4552_v26 = vld [vmem:[%s4458_s23 + $0x39] sm:$0xff] }
  0x19   : > { %v4563_v27 = vld [vmem:[%s4458_s23 + $0x109] sm:$0xff]  ;;  %v4583_v31 = vld [vmem:[%s4458_s23 + $0x111] sm:$0xff]  ;;  %v4603_v35 = vld [vmem:[%s4458_s23 + $0x121] sm:$0xff] }
  0x1a   : > { %3880 = vmatmul.msk.f32.gmra.mxu3 %vm238_vm1, %v4472_v7  ;;  %v4566_v28 = vld [vmem:[%s4458_s23 + $0x48] sm:$0xff]  ;;  %7185 = vst [vmem:[#allocation2_spill] sm:$0xff] %v4583_v31  ;;  %v4586_v32 = vld [vmem:[%s4458_s23 + $0x50] sm:$0xff]  ;;  %v4606_v36 = vld [vmem:[%s4458_s23 + $0x60] sm:$0xff] }
  0x1b   : > { %3897 = vmatmul.msk.f32.gmra.mxu1 %vm238_vm1, %v172_v8  ;;  %v4569_v29 = vld [vmem:[%s4458_s23 + $0x4a] sm:$0xff]  ;;  %v4589_v33 = vld [vmem:[%s4458_s23 + $0x52] sm:$0xff]  ;;  %7186 = vst [vmem:[#allocation3_spill] sm:$0xff] %v4603_v35  ;;  %v4609_v37 = vld [vmem:[%s4458_s23 + $0x62] sm:$0xff] }
  0x1c   : > { %3931 = vmatmul.msk.f32.gmra.mxu2 %vm238_vm1, %v665_v9  ;;  %v4572_v30 = vld [vmem:[%s4458_s23 + $0x49] sm:$0xff]  ;;  %v4592_v34 = vld [vmem:[%s4458_s23 + $0x51] sm:$0xff]  ;;  %7187 = vst [vmem:[#allocation4_spill] sm:$0xff] %v4609_v37  ;;  %v4612_v38 = vld [vmem:[%s4458_s23 + $0x61] sm:$0xff] }
  0x1d   : > { %3864 = vmatmul.msk.f32.gmra.mxu0 %vm238_vm1, %v205_v10  ;;  %v4623_v39 = vld [vmem:[%s4458_s23 + $0x129] sm:$0xff]  ;;  %v4643_v43 = vld [vmem:[%s4458_s23 + $0x139] sm:$0xff]  ;;  %v4663_v47 = vld [vmem:[%s4458_s23 + $0x141] sm:$0xff] }
  0x1e   : > { %7188 = vst [vmem:[#allocation5_spill] sm:$0xff] %v4623_v39  ;;  %v4626_v40 = vld [vmem:[%s4458_s23 + $0x68] sm:$0xff]  ;;  %v4646_v44 = vld [vmem:[%s4458_s23 + $0x78] sm:$0xff]  ;;  %v4666_v48 = vld [vmem:[%s4458_s23 + $0x80] sm:$0xff] }
  0x1f   : > { %v4629_v41 = vld [vmem:[%s4458_s23 + $0x6a] sm:$0xff]  ;;  %7190 = vst [vmem:[#allocation7_spill] sm:$0xff] %v4643_v43  ;;  %v4649_v45 = vld [vmem:[%s4458_s23 + $0x7a] sm:$0xff]  ;;  %v4669_v49 = vld [vmem:[%s4458_s23 + $0x82] sm:$0xff] }
  0x20   : > { %7189 = vst [vmem:[#allocation6_spill] sm:$0xff] %v4629_v41  ;;  %v4632_v42 = vld [vmem:[%s4458_s23 + $0x69] sm:$0xff]  ;;  %v4652_v46 = vld [vmem:[%s4458_s23 + $0x79] sm:$0xff]  ;;  %v4672_v50 = vld [vmem:[%s4458_s23 + $0x81] sm:$0xff] }
  0x21   : > { %7191 = vst [vmem:[#allocation8_spill] sm:$0xff] %v4649_v45  ;;  %v4683_v51 = vld [vmem:[%s4458_s23 + $0x151] sm:$0xff]  ;;  %v4707_v56 = vld [vmem:[%s4458_s23 + $0x159] sm:$0xff]  ;;  %v4731_v61 = vld [vmem:[%s4458_s23 + $0x169] sm:$0xff] }
  0x22   : > { %3881 = vmatmul.msk.f32.gmra.mxu3 %vm238_vm1, %v4483_v11  ;;  %7192 = vst [vmem:[#allocation9_spill] sm:$0xff] %v4663_v47  ;;  %v4686_v52 = vld [vmem:[%s4458_s23 + $0x90] sm:$0xff]  ;;  %v4710_v57 = vld [vmem:[%s4458_s23 + $0x98] sm:$0xff]  ;;  %v4734_v62 = vld [vmem:[%s4458_s23 + $0xa8] sm:$0xff] }
  0x23   : > { %3898 = vmatmul.msk.f32.gmra.mxu1 %vm238_vm1, %v4486_v12  ;;  %7193 = vst [vmem:[#allocation10_spill] sm:$0xff] %v4669_v49  ;;  %v4692_v54 = vld [vmem:[%s4458_s23 + $0x92] sm:$0xff]  ;;  %v4716_v59 = vld [vmem:[%s4458_s23 + $0x9a] sm:$0xff]  ;;  %v4737_v63 = vld [vmem:[%s4458_s23 + $0xaa] sm:$0xff] }
  0x24   : > { %3932 = vmatmul.msk.f32.gmra.mxu2 %vm238_vm1, %v4489_v13  ;;  %7194 = vst [vmem:[#allocation11_spill] sm:$0xff] %v4683_v51  ;;  %v4695_v55 = vld [vmem:[%s4458_s23 + $0x91] sm:$0xff]  ;;  %v4719_v60 = vld [vmem:[%s4458_s23 + $0x99] sm:$0xff]  ;;  %v4740_v0 = vld [vmem:[%s4458_s23 + $0xa9] sm:$0xff] }
  0x25   : > { %3865 = vmatmul.msk.f32.gmra.mxu0 %vm238_vm1, %v4492_v14  ;;  %7195 = vst [vmem:[#allocation12_spill] sm:$0xff] %v4692_v54  ;;  %v4751_v1 = vld [vmem:[%s4458_s23 + $0x171] sm:$0xff]  ;;  %v4773_v8 = vld [vmem:[%s4458_s23 + $0xc0] sm:$0xff] }
  0x26   : > { %7196 = vst [vmem:[#allocation13_spill] sm:$0xff] %v4707_v56  ;;  %v4754_v2 = vld [vmem:[%s4458_s23 + $0xb0] sm:$0xff]  ;;  %v4776_v9 = vld [vmem:[%s4458_s23 + $0xc2] sm:$0xff] }
  0x27   : > { %7197 = vst [vmem:[#allocation14_spill] sm:$0xff] %v4716_v59  ;;  %v4757_v4 = vld [vmem:[%s4458_s23 + $0xb2] sm:$0xff] }
  0x28   : > { %7198 = vst [vmem:[#allocation15_spill] sm:$0xff] %v4731_v61  ;;  %v4760_v5 = vld [vmem:[%s4458_s23 + $0xb1] sm:$0xff] }
  0x29   : > { %7199 = vst [vmem:[#allocation16_spill] sm:$0xff] %v4737_v63 }
  0x2a   : > { %3882 = vmatmul.msk.f32.gmra.mxu3 %vm238_vm1, %v4503_v15  ;;  %7200 = vst [vmem:[#allocation17_spill] sm:$0xff] %v4751_v1 }
  0x2b   : > { %3899 = vmatmul.msk.f32.gmra.mxu1 %vm238_vm1, %v4506_v16  ;;  %7201 = vst [vmem:[#allocation18_spill] sm:$0xff] %v4757_v4 }
  0x2c   : > { %3933 = vmatmul.msk.f32.gmra.mxu2 %vm238_vm1, %v4509_v17  ;;  %7202 = vst [vmem:[#allocation19_spill] sm:$0xff] %v4776_v9 }
  0x2d   : > { %3866 = vmatmul.msk.f32.gmra.mxu0 %vm238_vm1, %v4512_v18 }
  0x32   : > { %3883 = vmatmul.msk.f32.gmra.mxu3 %vm238_vm1, %v4523_v19 }
  0x33   : > { %3900 = vmatmul.msk.f32.gmra.mxu1 %vm238_vm1, %v4526_v20 }
  0x34   : > { %3934 = vmatmul.msk.f32.gmra.mxu2 %vm238_vm1, %v4529_v21 }
  0x35   : > { %3867 = vmatmul.msk.f32.gmra.mxu0 %vm238_vm1, %v4532_v22 }
  0x3a   : > { %3884 = vmatmul.msk.f32.gmra.mxu3 %vm238_vm1, %v4543_v23 }
  0x3b   : > { %3901 = vmatmul.msk.f32.gmra.mxu1 %vm238_vm1, %v4546_v24 }
  0x3c   : > { %3935 = vmatmul.msk.f32.gmra.mxu2 %vm238_vm1, %v4549_v25 }
  0x3d   : > { %3868 = vmatmul.msk.f32.gmra.mxu0 %vm238_vm1, %v4552_v26 }
  0x42   : > { %3885 = vmatmul.msk.f32.gmra.mxu3 %vm238_vm1, %v4563_v27 }
  0x43   : > { %3902 = vmatmul.msk.f32.gmra.mxu1 %vm238_vm1, %v4566_v28 }
  0x44   : > { %3936 = vmatmul.msk.f32.gmra.mxu2 %vm238_vm1, %v4569_v29 }
  0x45   : > { %3869 = vmatmul.msk.f32.gmra.mxu0 %vm238_vm1, %v4572_v30 }
  0x4a   : > { %3886 = vmatmul.msk.f32.gmra.mxu3 %vm238_vm1, %v4583_v31 }
  0x4b   : > { %3903 = vmatmul.msk.f32.gmra.mxu1 %vm238_vm1, %v4586_v32 }
  0x4c   : > { %3937 = vmatmul.msk.f32.gmra.mxu2 %vm238_vm1, %v4589_v33 }
  0x4d   : > { %3870 = vmatmul.msk.f32.gmra.mxu0 %vm238_vm1, %v4592_v34 }
  0x52   : > { %3887 = vmatmul.msk.f32.gmra.mxu3 %vm238_vm1, %v4603_v35  ;;  %v4905_v35 = vld [vmem:[%s4458_s23 + $0x108] sm:$0xff] }
  0x53   : > { %3904 = vmatmul.msk.f32.gmra.mxu1 %vm238_vm1, %v4606_v36 }
  0x54   : > { %3938 = vmatmul.msk.f32.gmra.mxu2 %vm238_vm1, %v4609_v37  ;;  %v4908_v37 = vld [vmem:[%s4458_s23 + $0x10a] sm:$0xff] }
  0x55   : > { %3871 = vmatmul.msk.f32.gmra.mxu0 %vm238_vm1, %v4612_v38  ;;  %7216 = vst [vmem:[#allocation33_spill] sm:$0xff] %v4908_v37 }
  0x5a   : > { %3888 = vmatmul.msk.f32.gmra.mxu3 %vm238_vm1, %v4623_v39  ;;  %v4886_v39 = vld [vmem:[%s4458_s23 + $0xfa] sm:$0xff] }
  0x5b   : > { %3905 = vmatmul.msk.f32.gmra.mxu1 %vm238_vm1, %v4626_v40  ;;  %7212 = vst [vmem:[#allocation29_spill] sm:$0xff] %v4886_v39 }
  0x5c   : > { %3939 = vmatmul.msk.f32.gmra.mxu2 %vm238_vm1, %v4629_v41 }
  0x5d   : > { %3872 = vmatmul.msk.f32.gmra.mxu0 %vm238_vm1, %v4632_v42 }
  0x62   : > { %3889 = vmatmul.msk.f32.gmra.mxu3 %vm238_vm1, %v4643_v43 }
  0x63   : > { %3906 = vmatmul.msk.f32.gmra.mxu1 %vm238_vm1, %v4646_v44 }
  0x64   : > { %3940 = vmatmul.msk.f32.gmra.mxu2 %vm238_vm1, %v4649_v45  ;;  %v4883_v45 = vld [vmem:[%s4458_s23 + $0xf8] sm:$0xff] }
  0x65   : > { %3873 = vmatmul.msk.f32.gmra.mxu0 %vm238_vm1, %v4652_v46 }
  0x6a   : > { %3890 = vmatmul.msk.f32.gmra.mxu3 %vm238_vm1, %v4663_v47  ;;  %v4861_v47 = vld [vmem:[%s4458_s23 + $0xf0] sm:$0xff] }
  0x6b   : > { %3907 = vmatmul.msk.f32.gmra.mxu1 %vm238_vm1, %v4666_v48 }
  0x6c   : > { %3941 = vmatmul.msk.f32.gmra.mxu2 %vm238_vm1, %v4669_v49  ;;  %v4864_v49 = vld [vmem:[%s4458_s23 + $0xf2] sm:$0xff] }
  0x6d   : > { %3874 = vmatmul.msk.f32.gmra.mxu0 %vm238_vm1, %v4672_v50  ;;  %7210 = vst [vmem:[#allocation27_spill] sm:$0xff] %v4864_v49 }
  0x72   : > { %3891 = vmatmul.msk.f32.gmra.mxu3 %vm238_vm1, %v4683_v51  ;;  %v4842_v51 = vld [vmem:[%s4458_s23 + $0xe2] sm:$0xff] }
  0x73   : > { %3908 = vmatmul.msk.f32.gmra.mxu1 %vm238_vm1, %v4686_v52  ;;  %7208 = vst [vmem:[#allocation25_spill] sm:$0xff] %v4842_v51 }
  0x74   : > { %3942 = vmatmul.msk.f32.gmra.mxu2 %vm238_vm1, %v4692_v54 }
  0x75   : > { %3875 = vmatmul.msk.f32.gmra.mxu0 %vm238_vm1, %v4695_v55 }
  0x7a   : > { %3892 = vmatmul.msk.f32.gmra.mxu3 %vm238_vm1, %v4707_v56  ;;  %v4820_v56 = vld [vmem:[%s4458_s23 + $0xda] sm:$0xff] }
  0x7b   : > { %3909 = vmatmul.msk.f32.gmra.mxu1 %vm238_vm1, %v4710_v57  ;;  %7206 = vst [vmem:[#allocation23_spill] sm:$0xff] %v4820_v56 }
  0x7c   : > { %3943 = vmatmul.msk.f32.gmra.mxu2 %vm238_vm1, %v4716_v59 }
  0x7d   : > { %3876 = vmatmul.msk.f32.gmra.mxu0 %vm238_vm1, %v4719_v60 }
  0x82   : > { %3893 = vmatmul.msk.f32.gmra.mxu3 %vm238_vm1, %v4731_v61  ;;  %v4798_v61 = vld [vmem:[%s4458_s23 + $0xca] sm:$0xff] }
  0x83   : > { %3910 = vmatmul.msk.f32.gmra.mxu1 %vm238_vm1, %v4734_v62  ;;  %7204 = vst [vmem:[#allocation21_spill] sm:$0xff] %v4798_v61 }
  0x84   : > { %3944 = vmatmul.msk.f32.gmra.mxu2 %vm238_vm1, %v4737_v63 }
  0x85   : > { %3877 = vmatmul.msk.f32.gmra.mxu0 %vm238_vm1, %v4740_v0 }
  0x8a   : > { %3894 = vmatmul.msk.f32.gmra.mxu3 %vm238_vm1, %v4751_v1 }
  0x8b   : > { %3911 = vmatmul.msk.f32.gmra.mxu1 %vm238_vm1, %v4754_v2 }
  0x8c   : > { %3945 = vmatmul.msk.f32.gmra.mxu2 %vm238_vm1, %v4757_v4  ;;  %v4795_v4 = vld [vmem:[%s4458_s23 + $0xc8] sm:$0xff] }
  0x8d   : > { %3878 = vmatmul.msk.f32.gmra.mxu0 %vm238_vm1, %v4760_v5 }
  0x90   : > { %v4770_v6 = vpop.f32.mrf.mxu1 }
  0x92   : > { %v4778_v10 = vpop.f32.mrf.mxu0  ;;  %3996 = vmatmul.msk.f32.vlgmr.msrb.gmra.mxu3 %vm238_vm1, %v4486_v12 }
  0x93   : > { %3912 = vmatmul.msk.f32.gmra.mxu1 %vm238_vm1, %v4773_v8 }
  0x94   : > { %3946 = vmatmul.msk.f32.gmra.mxu2 %vm238_vm1, %v4776_v9  ;;  %v4817_v9 = vld [vmem:[%s4458_s23 + $0xd8] sm:$0xff] }
  0x95   : > { %4062 = vmatmul.msk.f32.vlgmr.msrb.gmra.mxu0 %vm238_vm1, %v4492_v14  ;;  %v4788_v53 = vpop.f32.mrf.mxu3 }
  0x96   : > { %7203 = vst [vmem:[#allocation20_spill] sm:$0xff] %v4788_v53 }
  0x97   : > { %v4790_v58 = vpop.f32.mrf.mxu2 }
  0x98   : > { %v4792_v1 = vpop.f32.mrf.mxu1 }
  0x9a   : > { %v4800_v63 = vpop.f32.mrf.mxu0  ;;  %3997 = vmatmul.msk.f32.gmra.mxu3 %vm238_vm1, %v4506_v16 }
  0x9b   : > { %3913 = vmatmul.msk.f32.gmra.mxu1 %vm238_vm1, %v4795_v4 }
  0x9c   : > { %3947 = vmatmul.msk.f32.gmra.mxu2 %vm238_vm1, %v4798_v61  ;;  %v4839_v61 = vld [vmem:[%s4458_s23 + $0xe0] sm:$0xff] }
  0x9d   : > { %4063 = vmatmul.msk.f32.gmra.mxu0 %vm238_vm1, %v4512_v18  ;;  %v4810_v12 = vpop.f32.mrf.mxu3 }
  0x9e   : > { %7205 = vst [vmem:[#allocation22_spill] sm:$0xff] %v4810_v12 }
  0x9f   : > { %v4812_v14 = vpop.f32.mrf.mxu2 }
  0xa0   : > { %v4814_v53 = vpop.f32.mrf.mxu1 }
  0xa2   : > { %v4822_v59 = vpop.f32.mrf.mxu0  ;;  %3998 = vmatmul.msk.f32.gmra.mxu3 %vm238_vm1, %v4526_v20 }
  0xa3   : > { %3914 = vmatmul.msk.f32.gmra.mxu1 %vm238_vm1, %v4817_v9 }
  0xa4   : > { %3948 = vmatmul.msk.f32.gmra.mxu2 %vm238_vm1, %v4820_v56 }
  0xa5   : > { %4064 = vmatmul.msk.f32.gmra.mxu0 %vm238_vm1, %v4532_v22  ;;  %v4832_v16 = vpop.f32.mrf.mxu3 }
  0xa6   : > { %7207 = vst [vmem:[#allocation24_spill] sm:$0xff] %v4832_v16 }
  0xa7   : > { %v4834_v18 = vpop.f32.mrf.mxu2 }
  0xa8   : > { %v4836_v12 = vpop.f32.mrf.mxu1 }
  0xaa   : > { %v4844_v54 = vpop.f32.mrf.mxu0  ;;  %3999 = vmatmul.msk.f32.gmra.mxu3 %vm238_vm1, %v4546_v24 }
  0xab   : > { %3915 = vmatmul.msk.f32.gmra.mxu1 %vm238_vm1, %v4839_v61 }
  0xac   : > { %3949 = vmatmul.msk.f32.gmra.mxu2 %vm238_vm1, %v4842_v51 }
  0xad   : > { %4065 = vmatmul.msk.f32.gmra.mxu0 %vm238_vm1, %v4552_v26  ;;  %v4854_v22 = vpop.f32.mrf.mxu3 }
  0xae   : > { %7209 = vst [vmem:[#allocation26_spill] sm:$0xff] %v4854_v22 }
  0xaf   : > { %v4856_v16 = vpop.f32.mrf.mxu2 }
  0xb0   : > { %v4858_v56 = vpop.f32.mrf.mxu1 }
  0xb2   : > { %v4866_v43 = vpop.f32.mrf.mxu0  ;;  %4000 = vmatmul.msk.f32.gmra.mxu3 %vm238_vm1, %v4566_v28 }
  0xb3   : > { %3916 = vmatmul.msk.f32.gmra.mxu1 %vm238_vm1, %v4861_v47 }
  0xb4   : > { %3950 = vmatmul.msk.f32.gmra.mxu2 %vm238_vm1, %v4864_v49 }
  0xb5   : > { %4066 = vmatmul.msk.f32.gmra.mxu0 %vm238_vm1, %v4572_v30  ;;  %v4876_v26 = vpop.f32.mrf.mxu3 }
  0xb6   : > { %7211 = vst [vmem:[#allocation28_spill] sm:$0xff] %v4876_v26 }
  0xb7   : > { %v4878_v22 = vpop.f32.mrf.mxu2 }
  0xb8   : > { %v4880_v51 = vpop.f32.mrf.mxu1 }
  0xba   : > { %v4888_v41 = vpop.f32.mrf.mxu0  ;;  %4001 = vmatmul.msk.f32.gmra.mxu3 %vm238_vm1, %v4586_v32 }
  0xbb   : > { %3917 = vmatmul.msk.f32.gmra.mxu1 %vm238_vm1, %v4883_v45 }
  0xbc   : > { %3951 = vmatmul.msk.f32.gmra.mxu2 %vm238_vm1, %v4886_v39 }
  0xbd   : > { %4067 = vmatmul.msk.f32.gmra.mxu0 %vm238_vm1, %v4592_v34  ;;  %v4898_v30 = vpop.f32.mrf.mxu3 }
  0xbe   : > { %7213 = vst [vmem:[#allocation30_spill] sm:$0xff] %v4898_v30 }
  0xbf   : > { %v4900_v26 = vpop.f32.mrf.mxu2 }
  0xc0   : > { %7214 = vst [vmem:[#allocation31_spill] sm:$0xff] %v4900_v26  ;;  %v4902_v49 = vpop.f32.mrf.mxu1 }
  0xc1   : > { %7215 = vst [vmem:[#allocation32_spill] sm:$0xff] %v4902_v49  ;;  %v4927_v49 = vld [vmem:[%s4458_s23 + $0x110] sm:$0xff] }
  0xc2   : > { %v4910_v31 = vpop.f32.mrf.mxu0  ;;  %4002 = vmatmul.msk.f32.gmra.mxu3 %vm238_vm1, %v4606_v36 }
  0xc3   : > { %7217 = vst [vmem:[#allocation34_spill] sm:$0xff] %v4910_v31  ;;  %3918 = vmatmul.msk.f32.gmra.mxu1 %vm238_vm1, %v4905_v35  ;;  %v4930_v31 = vld [vmem:[%s4458_s23 + $0x112] sm:$0xff] }
  0xc4   : > { %3952 = vmatmul.msk.f32.gmra.mxu2 %vm238_vm1, %v4908_v37  ;;  %7221 = vst [vmem:[#allocation38_spill] sm:$0xff] %v4930_v31 }
  0xc5   : > { %4068 = vmatmul.msk.f32.gmra.mxu0 %vm238_vm1, %v4612_v38  ;;  %v4920_v34 = vpop.f32.mrf.mxu3 }
  0xc6   : > { %7218 = vst [vmem:[#allocation35_spill] sm:$0xff] %v4920_v34 }
  0xc7   : > { %v4922_v30 = vpop.f32.mrf.mxu2 }
  0xc8   : > { %7219 = vst [vmem:[#allocation36_spill] sm:$0xff] %v4922_v30  ;;  %v4924_v39 = vpop.f32.mrf.mxu1 }
  0xc9   : > { %7220 = vst [vmem:[#allocation37_spill] sm:$0xff] %v4924_v39  ;;  %v4949_v39 = vld [vmem:[%s4458_s23 + $0x120] sm:$0xff] }
  0xca   : > { %v4932_v26 = vpop.f32.mrf.mxu0  ;;  %4003 = vmatmul.msk.f32.gmra.mxu3 %vm238_vm1, %v4626_v40 }
  0xcb   : > { %7222 = vst [vmem:[#allocation39_spill] sm:$0xff] %v4932_v26  ;;  %3919 = vmatmul.msk.f32.gmra.mxu1 %vm238_vm1, %v4927_v49  ;;  %v4952_v26 = vld [vmem:[%s4458_s23 + $0x122] sm:$0xff] }
  0xcc   : > { %3953 = vmatmul.msk.f32.gmra.mxu2 %vm238_vm1, %v4930_v31  ;;  %7226 = vst [vmem:[#allocation43_spill] sm:$0xff] %v4952_v26 }
  0xcd   : > { %4069 = vmatmul.msk.f32.gmra.mxu0 %vm238_vm1, %v4632_v42  ;;  %v4942_v38 = vpop.f32.mrf.mxu3 }
  0xce   : > { %7223 = vst [vmem:[#allocation40_spill] sm:$0xff] %v4942_v38 }
  0xcf   : > { %v4944_v34 = vpop.f32.mrf.mxu2 }
  0xd0   : > { %7224 = vst [vmem:[#allocation41_spill] sm:$0xff] %v4944_v34  ;;  %v4946_v37 = vpop.f32.mrf.mxu1 }
  0xd1   : > { %7225 = vst [vmem:[#allocation42_spill] sm:$0xff] %v4946_v37  ;;  %v4971_v37 = vld [vmem:[%s4458_s23 + $0x128] sm:$0xff] }
  0xd2   : > { %v4954_v30 = vpop.f32.mrf.mxu0  ;;  %4004 = vmatmul.msk.f32.gmra.mxu3 %vm238_vm1, %v4646_v44 }
  0xd3   : > { %7227 = vst [vmem:[#allocation44_spill] sm:$0xff] %v4954_v30  ;;  %3920 = vmatmul.msk.f32.gmra.mxu1 %vm238_vm1, %v4949_v39  ;;  %v4974_v30 = vld [vmem:[%s4458_s23 + $0x12a] sm:$0xff] }
  0xd4   : > { %3954 = vmatmul.msk.f32.gmra.mxu2 %vm238_vm1, %v4952_v26  ;;  %7231 = vst [vmem:[#allocation48_spill] sm:$0xff] %v4974_v30 }
  0xd5   : > { %4070 = vmatmul.msk.f32.gmra.mxu0 %vm238_vm1, %v4652_v46  ;;  %v4964_v42 = vpop.f32.mrf.mxu3 }
  0xd6   : > { %7228 = vst [vmem:[#allocation45_spill] sm:$0xff] %v4964_v42 }
  0xd7   : > { %v4966_v38 = vpop.f32.mrf.mxu2 }
  0xd8   : > { %7229 = vst [vmem:[#allocation46_spill] sm:$0xff] %v4966_v38  ;;  %v4968_v31 = vpop.f32.mrf.mxu1 }
  0xd9   : > { %7230 = vst [vmem:[#allocation47_spill] sm:$0xff] %v4968_v31  ;;  %v4993_v31 = vld [vmem:[%s4458_s23 + $0x138] sm:$0xff] }
  0xda   : > { %v4976_v34 = vpop.f32.mrf.mxu0  ;;  %4005 = vmatmul.msk.f32.gmra.mxu3 %vm238_vm1, %v4666_v48 }
  0xdb   : > { %7232 = vst [vmem:[#allocation49_spill] sm:$0xff] %v4976_v34  ;;  %3921 = vmatmul.msk.f32.gmra.mxu1 %vm238_vm1, %v4971_v37  ;;  %v4996_v34 = vld [vmem:[%s4458_s23 + $0x13a] sm:$0xff] }
  0xdc   : > { %3955 = vmatmul.msk.f32.gmra.mxu2 %vm238_vm1, %v4974_v30  ;;  %7236 = vst [vmem:[#allocation53_spill] sm:$0xff] %v4996_v34 }
  0xdd   : > { %4071 = vmatmul.msk.f32.gmra.mxu0 %vm238_vm1, %v4672_v50  ;;  %v4986_v46 = vpop.f32.mrf.mxu3 }
  0xde   : > { %7233 = vst [vmem:[#allocation50_spill] sm:$0xff] %v4986_v46 }
  0xdf   : > { %v4988_v42 = vpop.f32.mrf.mxu2 }
  0xe0   : > { %7234 = vst [vmem:[#allocation51_spill] sm:$0xff] %v4988_v42  ;;  %v4990_v26 = vpop.f32.mrf.mxu1 }
  0xe1   : > { %7235 = vst [vmem:[#allocation52_spill] sm:$0xff] %v4990_v26  ;;  %v5015_v26 = vld [vmem:[%s4458_s23 + $0x140] sm:$0xff] }
  0xe2   : > { %v4998_v38 = vpop.f32.mrf.mxu0  ;;  %4006 = vmatmul.msk.f32.gmra.mxu3 %vm238_vm1, %v4686_v52 }
  0xe3   : > { %7237 = vst [vmem:[#allocation54_spill] sm:$0xff] %v4998_v38  ;;  %3922 = vmatmul.msk.f32.gmra.mxu1 %vm238_vm1, %v4993_v31  ;;  %v5018_v38 = vld [vmem:[%s4458_s23 + $0x142] sm:$0xff] }
  0xe4   : > { %3956 = vmatmul.msk.f32.gmra.mxu2 %vm238_vm1, %v4996_v34  ;;  %7241 = vst [vmem:[#allocation58_spill] sm:$0xff] %v5018_v38 }
  0xe5   : > { %4072 = vmatmul.msk.f32.gmra.mxu0 %vm238_vm1, %v4695_v55  ;;  %v5008_v50 = vpop.f32.mrf.mxu3 }
  0xe6   : > { %7238 = vst [vmem:[#allocation55_spill] sm:$0xff] %v5008_v50 }
  0xe7   : > { %v5010_v46 = vpop.f32.mrf.mxu2 }
  0xe8   : > { %7239 = vst [vmem:[#allocation56_spill] sm:$0xff] %v5010_v46  ;;  %v5012_v30 = vpop.f32.mrf.mxu1 }
  0xe9   : > { %7240 = vst [vmem:[#allocation57_spill] sm:$0xff] %v5012_v30  ;;  %v5037_v30 = vld [vmem:[%s4458_s23 + $0x150] sm:$0xff] }
  0xea   : > { %v5020_v42 = vpop.f32.mrf.mxu0  ;;  %4007 = vmatmul.msk.f32.gmra.mxu3 %vm238_vm1, %v4710_v57 }
  0xeb   : > { %7242 = vst [vmem:[#allocation59_spill] sm:$0xff] %v5020_v42  ;;  %3923 = vmatmul.msk.f32.gmra.mxu1 %vm238_vm1, %v5015_v26  ;;  %v5040_v42 = vld [vmem:[%s4458_s23 + $0x152] sm:$0xff] }
  0xec   : > { %3957 = vmatmul.msk.f32.gmra.mxu2 %vm238_vm1, %v5018_v38  ;;  %7246 = vst [vmem:[#allocation63_spill] sm:$0xff] %v5040_v42  ;;  %v4126_v38 = vld [vmem:[%s7147_s1 + $0x14] sm:$0xf] }
  0xed   : > { %4073 = vmatmul.msk.f32.gmra.mxu0 %vm238_vm1, %v4719_v60  ;;  %v5030_v55 = vpop.f32.mrf.mxu3  ;;  %v4192_v60 = vld [vmem:[%s7147_s1 + $0x18] sm:$0xf]  ;;  %4127 = vmatpush.msk.msrb.mxu1 %vm335_vm0, %v4126_v38 }
  0xee   : > { %7243 = vst [vmem:[#allocation60_spill] sm:$0xff] %v5030_v55  ;;  %4193 = vmatpush.msk.msrb.mxu2 %vm335_vm0, %v4192_v60  ;;  %v5067_v60 = vld [vmem:[%s4458_s23 + $0x158] sm:$0xff] }
  0xef   : > { %v5032_v50 = vpop.f32.mrf.mxu2 }
  0xf0   : > { %7244 = vst [vmem:[#allocation61_spill] sm:$0xff] %v5032_v50  ;;  %v5034_v34 = vpop.f32.mrf.mxu1 }
  0xf1   : > { %7245 = vst [vmem:[#allocation62_spill] sm:$0xff] %v5034_v34 }
  0xf2   : > { %v5042_v46 = vpop.f32.mrf.mxu0  ;;  %4008 = vmatmul.msk.f32.gmra.mxu3 %vm238_vm1, %v4734_v62 }
  0xf3   : > { %7247 = vst [vmem:[#allocation64_spill] sm:$0xff] %v5042_v46  ;;  %3924 = vmatmul.msk.f32.gmra.mxu1 %vm238_vm1, %v5037_v30  ;;  %v5070_v46 = vld [vmem:[%s4458_s23 + $0x15a] sm:$0xff] }
  0xf4   : > { %3958 = vmatmul.msk.f32.gmra.mxu2 %vm238_vm1, %v5040_v42  ;;  %7251 = vst [vmem:[#allocation68_spill] sm:$0xff] %v5070_v46 }
  0xf5   : > { %4074 = vmatmul.msk.f32.gmra.mxu0 %vm238_vm1, %v4740_v0  ;;  %v5060_v55 = vpop.f32.mrf.mxu3 }
  0xf6   : > { %7248 = vst [vmem:[#allocation65_spill] sm:$0xff] %v5060_v55 }
  0xf7   : > { %v5062_v34 = vpop.f32.mrf.mxu2 }
  0xf8   : > { %7249 = vst [vmem:[#allocation66_spill] sm:$0xff] %v5062_v34  ;;  %v5064_v38 = vpop.f32.mrf.mxu1 }
  0xf9   : > { %7250 = vst [vmem:[#allocation67_spill] sm:$0xff] %v5064_v38  ;;  %v5089_v38 = vld [vmem:[%s4458_s23 + $0x168] sm:$0xff] }
  0xfa   : > { %v5072_v50 = vpop.f32.mrf.mxu0  ;;  %4009 = vmatmul.msk.f32.gmra.mxu3 %vm238_vm1, %v4754_v2 }
  0xfb   : > { %7252 = vst [vmem:[#allocation69_spill] sm:$0xff] %v5072_v50  ;;  %3925 = vmatmul.msk.f32.gmra.mxu1 %vm238_vm1, %v5067_v60  ;;  %v5092_v50 = vld [vmem:[%s4458_s23 + $0x16a] sm:$0xff] }
  0xfc   : > { %3959 = vmatmul.msk.f32.gmra.mxu2 %vm238_vm1, %v5070_v46  ;;  %7256 = vst [vmem:[#allocation73_spill] sm:$0xff] %v5092_v50 }
  0xfd   : > { %4075 = vmatmul.msk.f32.gmra.mxu0 %vm238_vm1, %v4760_v5  ;;  %v5082_v0 = vpop.f32.mrf.mxu3 }
  0xfe   : > { %7253 = vst [vmem:[#allocation70_spill] sm:$0xff] %v5082_v0 }
  0xff   : > { %v5084_v55 = vpop.f32.mrf.mxu2 }
 0x100   : > { %7254 = vst [vmem:[#allocation71_spill] sm:$0xff] %v5084_v55  ;;  %v5086_v42 = vpop.f32.mrf.mxu1 }
 0x101   : > { %7255 = vst [vmem:[#allocation72_spill] sm:$0xff] %v5086_v42  ;;  %v5111_v42 = vld [vmem:[%s4458_s23 + $0x170] sm:$0xff] }
 0x102   : > { %v5094_v34 = vpop.f32.mrf.mxu0  ;;  %4010 = vmatmul.msk.f32.gmra.mxu3 %vm238_vm1, %v4773_v8 }
 0x103   : > { %7257 = vst [vmem:[#allocation74_spill] sm:$0xff] %v5094_v34  ;;  %3926 = vmatmul.msk.f32.gmra.mxu1 %vm238_vm1, %v5089_v38  ;;  %v5114_v34 = vld [vmem:[%s4458_s23 + $0x172] sm:$0xff] }
 0x104   : > { %3960 = vmatmul.msk.f32.gmra.mxu2 %vm238_vm1, %v5092_v50  ;;  %7260 = vst [vmem:[#allocation77_spill] sm:$0xff] %v5114_v34 }
 0x105   : > { %4076 = vmatmul.msk.f32.gmra.mxu0 %vm238_vm1, %v4461_v3  ;;  %v5104_v5 = vpop.f32.mrf.mxu3 }
 0x106   : > { %7258 = vst [vmem:[#allocation75_spill] sm:$0xff] %v5104_v5 }
 0x107   : > { %v5106_v0 = vpop.f32.mrf.mxu2 }
 0x108   : > { %v5108_v46 = vpop.f32.mrf.mxu1 }
 0x109   : > { %7259 = vst [vmem:[#allocation76_spill] sm:$0xff] %v5108_v46  ;;  %v569_v46 = vadd.f32 %v4770_v6, %v4778_v10  ;;  %v572_v10 = vadd.f32 %v4792_v1, %v4800_v63 }
 0x10a   : > { %v5116_v55 = vpop.f32.mrf.mxu0  ;;  %4011 = vmatmul.msk.f32.gmra.mxu3 %vm238_vm1, %v4795_v4 }
 0x10b   : > { %7261 = vst [vmem:[#allocation78_spill] sm:$0xff] %v5116_v55  ;;  %3927 = vmatmul.msk.f32.gmra.mxu1 %vm238_vm1, %v5111_v42 }
 0x10c   : > { %3961 = vmatmul.msk.f32.gmra.mxu2 %vm238_vm1, %v5114_v34 }
 0x10d   : > { %4077 = vmatmul.msk.f32.gmra.mxu0 %vm238_vm1, %v4472_v7  ;;  %v5126_v3 = vpop.f32.mrf.mxu3  ;;  %v910_v7 = vadd.f32 %v4790_v58, %v569_v46  ;;  %v575_v46 = vadd.f32 %v4814_v53, %v4822_v59 }
 0x10e   : > { %7262 = vst [vmem:[#allocation79_spill] sm:$0xff] %v5126_v3 }
 0x10f   : > { %v5128_v5 = vpop.f32.mrf.mxu2 }
 0x110   : > { %7263 = vst [vmem:[#allocation80_spill] sm:$0xff] %v5128_v5  ;;  %v5130_v50 = vpop.f32.mrf.mxu1 }
 0x111   : > { %7264 = vst [vmem:[#allocation81_spill] sm:$0xff] %v5130_v50 }
 0x112   : > { %v1371_v55 = vpop.f32.mrf.mxu0  ;;  %4012 = vmatmul.msk.f32.gmra.mxu3 %vm238_vm1, %v4817_v9 }
 0x113   : > { %4128 = vmatmul.msk.f32.vlgmr.msrb.gmra.mxu1 %vm238_vm1, %v4489_v13 }
 0x114   : > { %4194 = vmatmul.msk.f32.vlgmr.msrb.gmra.mxu2 %vm238_vm1, %v4526_v20 }
 0x115   : > { %4078 = vmatmul.msk.f32.gmra.mxu0 %vm238_vm1, %v4483_v11  ;;  %v1093_v3 = vpop.f32.mrf.mxu3  ;;  %v911_v11 = vadd.f32 %v4812_v14, %v572_v10 }
 0x116   : > { %v1189_v50 = vadd.f32 %v1093_v3, %v910_v7  ;;  %v581_v7 = vadd.f32 %v4858_v56, %v4866_v43 }
 0x117   : > { %v5143_v34 = vpop.f32.mrf.mxu2 }
 0x118   : > { %v5145_v6 = vpop.f32.mrf.mxu1  ;;  %v5149_v5 = vadd.f32 %v1371_v55, %v1189_v50  ;;  %v578_v55 = vadd.f32 %v4836_v12, %v4844_v54 }
 0x11a   : > { %v1374_v13 = vpop.f32.mrf.mxu0  ;;  %4013 = vmatmul.msk.f32.gmra.mxu3 %vm238_vm1, %v4839_v61 }
 0x11b   : > { %4129 = vmatmul.msk.f32.gmra.mxu1 %vm238_vm1, %v4509_v17 }
 0x11c   : > { %4195 = vmatmul.msk.f32.gmra.mxu2 %vm238_vm1, %v4546_v24 }
 0x11d   : > { %4079 = vmatmul.msk.f32.gmra.mxu0 %vm238_vm1, %v4503_v15  ;;  %v1096_v20 = vpop.f32.mrf.mxu3  ;;  %v912_v15 = vadd.f32 %v4834_v18, %v575_v46  ;;  %v7267_v46 = vld [vmem:[#allocation34_spill] sm:$0xff] }
 0x11e   : > { %v1190_v63 = vadd.f32 %v1096_v20, %v911_v11 }
 0x11f   : > { %v5160_v58 = vpop.f32.mrf.mxu2 }
 0x120   : > { %v5162_v1 = vpop.f32.mrf.mxu1  ;;  %v5166_v50 = vadd.f32 %v1374_v13, %v1190_v63  ;;  %v584_v13 = vadd.f32 %v4880_v51, %v4888_v41 }
 0x122   : > { %v1377_v17 = vpop.f32.mrf.mxu0  ;;  %4014 = vmatmul.msk.f32.gmra.mxu3 %vm238_vm1, %v4861_v47 }
 0x123   : > { %4130 = vmatmul.msk.f32.gmra.mxu1 %vm238_vm1, %v4529_v21 }
 0x124   : > { %4196 = vmatmul.msk.f32.gmra.mxu2 %vm238_vm1, %v4566_v28 }
 0x125   : > { %4080 = vmatmul.msk.f32.gmra.mxu0 %vm238_vm1, %v4523_v19  ;;  %v1099_v24 = vpop.f32.mrf.mxu3  ;;  %v913_v19 = vadd.f32 %v4856_v16, %v578_v55  ;;  %v7271_v55 = vld [vmem:[#allocation36_spill] sm:$0xff] }
 0x126   : > { %v1191_v59 = vadd.f32 %v1099_v24, %v912_v15 }
 0x127   : > { %v5177_v14 = vpop.f32.mrf.mxu2 }
 0x128   : > { %v5179_v53 = vpop.f32.mrf.mxu1  ;;  %v5183_v3 = vadd.f32 %v1377_v17, %v1191_v59  ;;  %v7268_v17 = vld [vmem:[#allocation32_spill] sm:$0xff]  ;;  %v7270_v59 = vld [vmem:[#allocation3_spill] sm:$0xff] }
 0x129   : > { %v587_v15 = vadd.f32 %v7268_v17, %v7267_v46  ;;  %v7277_v17 = vld [vmem:[#allocation44_spill] sm:$0xff] }
 0x12a   : > { %v1380_v21 = vpop.f32.mrf.mxu0  ;;  %4015 = vmatmul.msk.f32.gmra.mxu3 %vm238_vm1, %v4883_v45 }
 0x12b   : > { %4131 = vmatmul.msk.f32.gmra.mxu1 %vm238_vm1, %v4549_v25 }
 0x12c   : > { %4197 = vmatmul.msk.f32.gmra.mxu2 %vm238_vm1, %v4586_v32 }
 0x12d   : > { %4081 = vmatmul.msk.f32.gmra.mxu0 %vm238_vm1, %v4543_v23  ;;  %v1102_v28 = vpop.f32.mrf.mxu3  ;;  %v914_v23 = vadd.f32 %v4878_v22, %v581_v7 }
 0x12e   : > { %v1192_v54 = vadd.f32 %v1102_v28, %v913_v19 }
 0x12f   : > { %v5194_v18 = vpop.f32.mrf.mxu2 }
 0x130   : > { %v5196_v12 = vpop.f32.mrf.mxu1  ;;  %v5200_v10 = vadd.f32 %v1380_v21, %v1192_v54  ;;  %v916_v21 = vadd.f32 %v7271_v55, %v587_v15  ;;  %v7278_v15 = vld [vmem:[#allocation42_spill] sm:$0xff]  ;;  %v7280_v55 = vld [vmem:[#allocation7_spill] sm:$0xff] }
 0x132   : > { %v1383_v25 = vpop.f32.mrf.mxu0  ;;  %4016 = vmatmul.msk.f32.gmra.mxu3 %vm238_vm1, %v4905_v35 }
 0x133   : > { %4132 = vmatmul.msk.f32.gmra.mxu1 %vm238_vm1, %v4569_v29 }
 0x134   : > { %4198 = vmatmul.msk.f32.gmra.mxu2 %vm238_vm1, %v4606_v36  ;;  %v7266_v36 = vld [vmem:[#allocation31_spill] sm:$0xff] }
 0x135   : > { %4082 = vmatmul.msk.f32.gmra.mxu0 %vm238_vm1, %v4563_v27  ;;  %v1105_v32 = vpop.f32.mrf.mxu3  ;;  %v7265_v27 = vld [vmem:[#allocation2_spill] sm:$0xff]  ;;  %v915_v22 = vadd.f32 %v7266_v36, %v584_v13 }
 0x136   : > { %v1193_v43 = vadd.f32 %v1105_v32, %v914_v23  ;;  %v7273_v23 = vld [vmem:[#allocation37_spill] sm:$0xff] }
 0x137   : > { %v5211_v16 = vpop.f32.mrf.mxu2 }
 0x138   : > { %v5213_v56 = vpop.f32.mrf.mxu1  ;;  %v5217_v11 = vadd.f32 %v1383_v25, %v1193_v43  ;;  %v7272_v25 = vld [vmem:[#allocation39_spill] sm:$0xff] }
 0x139   : > { %v590_v32 = vadd.f32 %v7273_v23, %v7272_v25 }
 0x13a   : > { %v1386_v29 = vpop.f32.mrf.mxu0  ;;  %4017 = vmatmul.msk.f32.gmra.mxu3 %vm238_vm1, %v4927_v49 }
 0x13b   : > { %4133 = vmatmul.msk.f32.gmra.mxu1 %vm238_vm1, %v4589_v33 }
 0x13c   : > { %4199 = vmatmul.msk.f32.gmra.mxu2 %vm238_vm1, %v4626_v40  ;;  %v7269_v40 = vld [vmem:[#allocation4_spill] sm:$0xff] }
 0x13d   : > { %4083 = vmatmul.msk.f32.gmra.mxu0 %vm238_vm1, %v7265_v27  ;;  %v1108_v20 = vpop.f32.mrf.mxu3  ;;  %v7276_v27 = vld [vmem:[#allocation41_spill] sm:$0xff] }
 0x13e   : > { %v1194_v41 = vadd.f32 %v1108_v20, %v915_v22  ;;  %v917_v36 = vadd.f32 %v7276_v27, %v590_v32 }
 0x13f   : > { %v5228_v63 = vpop.f32.mrf.mxu2 }
 0x140   : > { %v5230_v51 = vpop.f32.mrf.mxu1  ;;  %v5234_v24 = vadd.f32 %v1386_v29, %v1194_v41  ;;  %v7275_v29 = vld [vmem:[#allocation5_spill] sm:$0xff] }
 0x142   : > { %v1389_v33 = vpop.f32.mrf.mxu0  ;;  %4018 = vmatmul.msk.f32.gmra.mxu3 %vm238_vm1, %v4949_v39 }
 0x143   : > { %4134 = vmatmul.msk.f32.gmra.mxu1 %vm238_vm1, %v7269_v40 }
 0x144   : > { %4200 = vmatmul.msk.f32.gmra.mxu2 %vm238_vm1, %v4646_v44  ;;  %v7274_v44 = vld [vmem:[#allocation6_spill] sm:$0xff] }
 0x145   : > { %4084 = vmatmul.msk.f32.gmra.mxu0 %vm238_vm1, %v7270_v59  ;;  %v1111_v19 = vpop.f32.mrf.mxu3 }
 0x146   : > { %v1195_v54 = vadd.f32 %v1111_v19, %v916_v21  ;;  %v4258_v21 = vld [vmem:[%s7147_s1 + $0x1c] sm:$0xf]  ;;  %v7281_v19 = vld [vmem:[#allocation46_spill] sm:$0xff] }
 0x147   : > { %v5245_v28 = vpop.f32.mrf.mxu2  ;;  %4259 = vmatpush.msk.msra.mxu3 %vm335_vm0, %v4258_v21 }
 0x148   : > { %v5247_v7 = vpop.f32.mrf.mxu1  ;;  %v5251_v43 = vadd.f32 %v1389_v33, %v1195_v54  ;;  %v593_v33 = vadd.f32 %v7278_v15, %v7277_v17  ;;  %v4324_v17 = vld [vmem:[%s7147_s1 + $0x20] sm:$0xf]  ;;  %v7287_v15 = vld [vmem:[#allocation51_spill] sm:$0xff] }
 0x149   : > { %4325 = vmatpush.msk.msra.mxu0 %vm335_vm0, %v4324_v17 }
 0x14a   : > { %v1392_v13 = vpop.f32.mrf.mxu0  ;;  %4019 = vmatmul.msk.f32.gmra.mxu3 %vm238_vm1, %v4971_v37  ;;  %v918_v54 = vadd.f32 %v7281_v19, %v593_v33  ;;  %v7288_v19 = vld [vmem:[#allocation54_spill] sm:$0xff] }
 0x14b   : > { %4135 = vmatmul.msk.f32.gmra.mxu1 %vm238_vm1, %v7274_v44  ;;  %v7282_v44 = vld [vmem:[#allocation49_spill] sm:$0xff] }
 0x14c   : > { %4201 = vmatmul.msk.f32.gmra.mxu2 %vm238_vm1, %v4666_v48  ;;  %v7279_v48 = vld [vmem:[#allocation8_spill] sm:$0xff] }
 0x14d   : > { %4085 = vmatmul.msk.f32.gmra.mxu0 %vm238_vm1, %v7275_v29  ;;  %v1114_v22 = vpop.f32.mrf.mxu3  ;;  %v7283_v29 = vld [vmem:[#allocation47_spill] sm:$0xff] }
 0x14e   : > { %v1196_v41 = vadd.f32 %v1114_v22, %v917_v36  ;;  %v7285_v22 = vld [vmem:[#allocation10_spill] sm:$0xff] }
 0x14f   : > { %v5262_v20 = vpop.f32.mrf.mxu2 }
 0x150   : > { %v5264_v46 = vpop.f32.mrf.mxu1  ;;  %v5268_v40 = vadd.f32 %v1392_v13, %v1196_v41  ;;  %v7286_v41 = vld [vmem:[#allocation9_spill] sm:$0xff] }
 0x152   : > { %v1395_v59 = vpop.f32.mrf.mxu0  ;;  %4020 = vmatmul.msk.f32.gmra.mxu3 %vm238_vm1, %v4993_v31 }
 0x153   : > { %4136 = vmatmul.msk.f32.gmra.mxu1 %vm238_vm1, %v7279_v48 }
 0x154   : > { %4202 = vmatmul.msk.f32.gmra.mxu2 %vm238_vm1, %v4686_v52  ;;  %v596_v52 = vadd.f32 %v7283_v29, %v7282_v44  ;;  %v7291_v44 = vld [vmem:[#allocation12_spill] sm:$0xff]  ;;  %v7292_v29 = vld [vmem:[#allocation11_spill] sm:$0xff] }
 0x155   : > { %4086 = vmatmul.msk.f32.gmra.mxu0 %vm238_vm1, %v7280_v55  ;;  %v1117_v25 = vpop.f32.mrf.mxu3 }
 0x156   : > { %v1197_v32 = vadd.f32 %v1117_v25, %v918_v54  ;;  %v919_v33 = vadd.f32 %v7287_v15, %v596_v52  ;;  %v7289_v54 = vld [vmem:[#allocation52_spill] sm:$0xff] }
 0x157   : > { %v5283_v23 = vpop.f32.mrf.mxu2  ;;  %v7293_v52 = vld [vmem:[#allocation56_spill] sm:$0xff] }
 0x158   : > { %v5285_v13 = vpop.f32.mrf.mxu1  ;;  %v5289_v27 = vadd.f32 %v1395_v59, %v1197_v32 }
 0x15a   : > { %7284 = vst [vmem:[#allocation2_spill] sm:$0xff] %v5289_v27  ;;  %v1398_v36 = vpop.f32.mrf.mxu0  ;;  %4021 = vmatmul.msk.f32.gmra.mxu3 %vm238_vm1, %v5015_v26 }
 0x15b   : > { %4137 = vmatmul.msk.f32.gmra.mxu1 %vm238_vm1, %v7285_v22 }
 0x15c   : > { %4203 = vmatmul.msk.f32.gmra.mxu2 %vm238_vm1, %v4710_v57  ;;  %v599_v57 = vadd.f32 %v7289_v54, %v7288_v19 }
 0x15d   : > { %4087 = vmatmul.msk.f32.gmra.mxu0 %vm238_vm1, %v7286_v41  ;;  %v1120_v59 = vpop.f32.mrf.mxu3 }
 0x15e   : > { %v1198_v55 = vadd.f32 %v1120_v59, %v919_v33  ;;  %v920_v22 = vadd.f32 %v7293_v52, %v599_v57  ;;  %v7294_v33 = vld [vmem:[#allocation59_spill] sm:$0xff]  ;;  %v7295_v59 = vld [vmem:[#allocation57_spill] sm:$0xff] }
 0x15f   : > { %v5304_v48 = vpop.f32.mrf.mxu2  ;;  %v7298_v57 = vld [vmem:[#allocation13_spill] sm:$0xff] }
 0x160   : > { %v5306_v21 = vpop.f32.mrf.mxu1  ;;  %v5310_v25 = vadd.f32 %v1398_v36, %v1198_v55  ;;  %v602_v55 = vadd.f32 %v7295_v59, %v7294_v33  ;;  %v7301_v33 = vld [vmem:[#allocation62_spill] sm:$0xff] }
 0x162   : > { %7290 = vst [vmem:[#allocation31_spill] sm:$0xff] %v5310_v25  ;;  %v1401_v32 = vpop.f32.mrf.mxu0  ;;  %4022 = vmatmul.msk.f32.gmra.mxu3 %vm238_vm1, %v5037_v30 }
 0x163   : > { %4138 = vmatmul.msk.f32.gmra.mxu1 %vm238_vm1, %v7291_v44  ;;  %v7299_v44 = vld [vmem:[#allocation61_spill] sm:$0xff] }
 0x164   : > { %4204 = vmatmul.msk.f32.gmra.mxu2 %vm238_vm1, %v4734_v62  ;;  %v7297_v62 = vld [vmem:[#allocation14_spill] sm:$0xff] }
 0x165   : > { %4088 = vmatmul.msk.f32.gmra.mxu0 %vm238_vm1, %v7292_v29  ;;  %v1123_v41 = vpop.f32.mrf.mxu3  ;;  %v921_v29 = vadd.f32 %v7299_v44, %v602_v55  ;;  %v7304_v55 = vld [vmem:[#allocation15_spill] sm:$0xff] }
 0x166   : > { %v1199_v36 = vadd.f32 %v1123_v41, %v920_v22 }
 0x167   : > { %v5321_v17 = vpop.f32.mrf.mxu2 }
 0x168   : > { %v5323_v15 = vpop.f32.mrf.mxu1  ;;  %v5327_v19 = vadd.f32 %v1401_v32, %v1199_v36  ;;  %v7300_v36 = vld [vmem:[#allocation64_spill] sm:$0xff] }
 0x169   : > { %v605_v59 = vadd.f32 %v7301_v33, %v7300_v36  ;;  %v7307_v36 = vld [vmem:[#allocation69_spill] sm:$0xff]  ;;  %v7308_v33 = vld [vmem:[#allocation67_spill] sm:$0xff] }
 0x16a   : > { %7296 = vst [vmem:[#allocation34_spill] sm:$0xff] %v5327_v19  ;;  %v1404_v54 = vpop.f32.mrf.mxu0  ;;  %4023 = vmatmul.msk.f32.gmra.mxu3 %vm238_vm1, %v5067_v60  ;;  %v608_v25 = vadd.f32 %v7308_v33, %v7307_v36  ;;  %v5377_v36 = vld [vmem:[%s4458_s23 + $0x180] sm:$0xff] }
 0x16b   : > { %4139 = vmatmul.msk.f32.gmra.mxu1 %vm238_vm1, %v7297_v62  ;;  %v7315_v33 = vld [vmem:[#allocation74_spill] sm:$0xff] }
 0x16c   : > { %4205 = vmatmul.msk.f32.gmra.mxu2 %vm238_vm1, %v4754_v2  ;;  %v7303_v2 = vld [vmem:[#allocation16_spill] sm:$0xff] }
 0x16d   : > { %4089 = vmatmul.msk.f32.gmra.mxu0 %vm238_vm1, %v7298_v57  ;;  %v1126_v52 = vpop.f32.mrf.mxu3  ;;  %v7305_v57 = vld [vmem:[#allocation66_spill] sm:$0xff] }
 0x16e   : > { %v1200_v32 = vadd.f32 %v1126_v52, %v921_v29  ;;  %v922_v44 = vadd.f32 %v7305_v57, %v605_v59  ;;  %v7311_v59 = vld [vmem:[#allocation17_spill] sm:$0xff] }
 0x16f   : > { %v5338_v22 = vpop.f32.mrf.mxu2 }
 0x170   : > { %v5340_v41 = vpop.f32.mrf.mxu1  ;;  %v5344_v27 = vadd.f32 %v1404_v54, %v1200_v32 }
 0x172   : > { %7302 = vst [vmem:[#allocation32_spill] sm:$0xff] %v5344_v27  ;;  %v1407_v62 = vpop.f32.mrf.mxu0  ;;  %4024 = vmatmul.msk.f32.gmra.mxu3 %vm238_vm1, %v5089_v38  ;;  %v7316_v27 = vld [vmem:[#allocation72_spill] sm:$0xff] }
 0x173   : > { %4140 = vmatmul.msk.f32.gmra.mxu1 %vm238_vm1, %v7303_v2 }
 0x174   : > { %4206 = vmatmul.msk.f32.gmra.mxu2 %vm238_vm1, %v4773_v8  ;;  %v7310_v8 = vld [vmem:[#allocation18_spill] sm:$0xff] }
 0x175   : > { %4090 = vmatmul.msk.f32.gmra.mxu0 %vm238_vm1, %v7304_v55  ;;  %v1129_v29 = vpop.f32.mrf.mxu3  ;;  %v7312_v55 = vld [vmem:[#allocation71_spill] sm:$0xff] }
 0x176   : > { %v1201_v54 = vadd.f32 %v1129_v29, %v922_v44  ;;  %v923_v57 = vadd.f32 %v7312_v55, %v608_v25  ;;  %v7319_v25 = vld [vmem:[#allocation19_spill] sm:$0xff] }
 0x177   : > { %v5355_v52 = vpop.f32.mrf.mxu2 }
 0x178   : > { %v5357_v32 = vpop.f32.mrf.mxu1  ;;  %v5361_v2 = vadd.f32 %v1407_v62, %v1201_v54 }
 0x179   : > { %7306 = vst [vmem:[#allocation4_spill] sm:$0xff] %v5357_v32  ;;  %v5384_v32 = vld [vmem:[%s4458_s23 + $0x181] sm:$0xff] }
 0x17a   : > { %7309 = vst [vmem:[#allocation3_spill] sm:$0xff] %v5361_v2  ;;  %v1410_v19 = vpop.f32.mrf.mxu0  ;;  %4025 = vmatmul.msk.f32.gmra.mxu3 %vm238_vm1, %v5111_v42 }
 0x17b   : > { %4141 = vmatmul.msk.f32.gmra.mxu1 %vm238_vm1, %v7310_v8  ;;  %v611_v8 = vadd.f32 %v7316_v27, %v7315_v33  ;;  %7318 = vst [vmem:[#allocation6_spill] sm:$0xff] %v5384_v32  ;;  %v7323_v33 = vld [vmem:[#allocation76_spill] sm:$0xff] }
 0x17c   : > { %4207 = vmatmul.msk.f32.gmra.mxu2 %vm238_vm1, %v4795_v4 }
 0x17d   : > { %4091 = vmatmul.msk.f32.gmra.mxu0 %vm238_vm1, %v7311_v59  ;;  %v1132_v44 = vpop.f32.mrf.mxu3  ;;  %v924_v27 = vadd.f32 %v5106_v0, %v611_v8  ;;  %v7326_v0 = vld [vmem:[#allocation21_spill] sm:$0xff]  ;;  %v7327_v8 = vld [vmem:[#allocation80_spill] sm:$0xff] }
 0x17e   : > { %v1202_v62 = vadd.f32 %v1132_v44, %v923_v57  ;;  %v5400_v44 = vld [vmem:[%s4458_s23 + $0x188] sm:$0xff] }
 0x17f   : > { %v5372_v29 = vpop.f32.mrf.mxu2 }
 0x180   : > { %7313 = vst [vmem:[#allocation36_spill] sm:$0xff] %v5372_v29  ;;  %v5374_v54 = vpop.f32.mrf.mxu1  ;;  %v5381_v2 = vadd.f32 %v1410_v19, %v1202_v62  ;;  %v7322_v62 = vld [vmem:[#allocation78_spill] sm:$0xff]  ;;  %v7331_v29 = vld [vmem:[#allocation23_spill] sm:$0xff] }
 0x181   : > { %7314 = vst [vmem:[#allocation39_spill] sm:$0xff] %v5374_v54  ;;  %v5407_v54 = vld [vmem:[%s4458_s23 + $0x189] sm:$0xff] }
 0x182   : > { %7317 = vst [vmem:[#allocation37_spill] sm:$0xff] %v5381_v2  ;;  %v1413_v4 = vpop.f32.mrf.mxu0  ;;  %4026 = vmatmul.msk.f32.gmra.mxu3 %vm238_vm1, %v5377_v36 }
 0x183   : > { %4142 = vmatmul.msk.f32.gmra.mxu1 %vm238_vm1, %v7319_v25  ;;  %v614_v25 = vadd.f32 %v7323_v33, %v7322_v62  ;;  %7325 = vst [vmem:[#allocation42_spill] sm:$0xff] %v5407_v54  ;;  %v4226_v33 = vld [vmem:[%s4458_s23 + $0x31] sm:$0xff] }
 0x184   : > { %4208 = vmatmul.msk.f32.gmra.mxu2 %vm238_vm1, %v4817_v9 }
 0x185   : > { %4092 = vmatmul.msk.f32.gmra.mxu0 %vm238_vm1, %v5384_v32  ;;  %v1135_v19 = vpop.f32.mrf.mxu3 }
 0x186   : > { %v1203_v55 = vadd.f32 %v1135_v19, %v924_v27  ;;  %v925_v27 = vadd.f32 %v7327_v8, %v614_v25 }
 0x187   : > { %v5395_v59 = vpop.f32.mrf.mxu2 }
 0x188   : > { %7320 = vst [vmem:[#allocation5_spill] sm:$0xff] %v5395_v59  ;;  %v5397_v57 = vpop.f32.mrf.mxu1  ;;  %v5404_v2 = vadd.f32 %v1413_v4, %v1203_v55  ;;  %v7330_v59 = vld [vmem:[#allocation81_spill] sm:$0xff] }
 0x189   : > { %7321 = vst [vmem:[#allocation41_spill] sm:$0xff] %v5397_v57  ;;  %v4292_v57 = vld [vmem:[%s4458_s23 + $0x32] sm:$0xff] }
 0x18a   : > { %7324 = vst [vmem:[#allocation44_spill] sm:$0xff] %v5404_v2  ;;  %v1416_v9 = vpop.f32.mrf.mxu0  ;;  %4027 = vmatmul.msk.f32.gmra.mxu3 %vm238_vm1, %v5400_v44 }
 0x18b   : > { %4143 = vmatmul.msk.f32.gmra.mxu1 %vm238_vm1, %v7326_v0  ;;  %v7329_v0 = vld [vmem:[#allocation20_spill] sm:$0xff] }
 0x18c   : > { %4209 = vmatmul.msk.f32.gmra.mxu2 %vm238_vm1, %v4839_v61  ;;  %v617_v61 = vadd.f32 %v7330_v59, %v7329_v0  ;;  %v4227_v0 = vld [vmem:[%s4458_s23 + $0x39] sm:$0xff] }
 0x18d   : > { %4093 = vmatmul.msk.f32.gmra.mxu0 %vm238_vm1, %v5407_v54  ;;  %v1138_v19 = vpop.f32.mrf.mxu3  ;;  %v7333_v54 = vld [vmem:[#allocation22_spill] sm:$0xff] }
 0x18e   : > { %v1204_v55 = vadd.f32 %v1138_v19, %v925_v27  ;;  %v926_v25 = vadd.f32 %v5143_v34, %v617_v61 }
 0x18f   : > { %v5418_v4 = vpop.f32.mrf.mxu2 }
 0x190   : > { %v1649_v62 = vpop.f32.mrf.mxu1  ;;  %v5421_v2 = vadd.f32 %v1416_v9, %v1204_v55 }
 0x191   : > { %v1745_v9 = vadd.f32 %v1649_v62, %v5149_v5 }
 0x192   : > { %7328 = vst [vmem:[#allocation8_spill] sm:$0xff] %v5421_v2  ;;  %v1419_v32 = vpop.f32.mrf.mxu0  ;;  %4260 = vmatmul.msk.f32.vlgmr.msra.gmra.mxu3 %vm238_vm1, %v4226_v33  ;;  %v4293_v2 = vld [vmem:[%s4458_s23 + $0x3a] sm:$0xff] }
 0x193   : > { %4144 = vmatmul.msk.f32.gmra.mxu1 %vm238_vm1, %v7331_v29 }
 0x194   : > { %4210 = vmatmul.msk.f32.gmra.mxu2 %vm238_vm1, %v4861_v47  ;;  %v620_v47 = vadd.f32 %v5145_v6, %v7333_v54  ;;  %v4228_v54 = vld [vmem:[%s4458_s23 + $0x49] sm:$0xff] }
 0x195   : > { %4326 = vmatmul.msk.f32.vlgmr.msra.gmra.mxu0 %vm238_vm1, %v4292_v57  ;;  %v1141_v8 = vpop.f32.mrf.mxu3  ;;  %v7334_v57 = vld [vmem:[#allocation25_spill] sm:$0xff] }
 0x196   : > { %v1205_v27 = vadd.f32 %v1141_v8, %v926_v25  ;;  %v927_v34 = vadd.f32 %v5160_v58, %v620_v47 }
 0x197   : > { %v1928_v19 = vpop.f32.mrf.mxu2 }
 0x198   : > { %v5434_v55 = vadd.f32 %v1928_v19, %v1745_v9  ;;  %v1652_v59 = vpop.f32.mrf.mxu1  ;;  %v5437_v29 = vadd.f32 %v1419_v32, %v1205_v27  ;;  %v4294_v27 = vld [vmem:[%s4458_s23 + $0x4a] sm:$0xff] }
 0x199   : > { %v1746_v5 = vadd.f32 %v1652_v59, %v5166_v50  ;;  %v7336_v19 = vld [vmem:[#allocation24_spill] sm:$0xff] }
 0x19a   : > { %7332 = vst [vmem:[#allocation7_spill] sm:$0xff] %v5437_v29  ;;  %v1422_v33 = vpop.f32.mrf.mxu0  ;;  %4261 = vmatmul.msk.f32.gmra.mxu3 %vm238_vm1, %v4227_v0  ;;  %v7381_v29 = vld [vmem:[#allocation44_spill] sm:$0xff] }
 0x19b   : > { %4145 = vmatmul.msk.f32.gmra.mxu1 %vm238_vm1, %v7334_v57  ;;  %v4229_v57 = vld [vmem:[%s4458_s23 + $0x51] sm:$0xff] }
 0x19c   : > { %4211 = vmatmul.msk.f32.gmra.mxu2 %vm238_vm1, %v4883_v45  ;;  %v623_v45 = vadd.f32 %v5162_v1, %v7336_v19  ;;  %v4230_v19 = vld [vmem:[%s4458_s23 + $0x61] sm:$0xff] }
 0x19d   : > { %4327 = vmatmul.msk.f32.gmra.mxu0 %vm238_vm1, %v4293_v2  ;;  %v1144_v32 = vpop.f32.mrf.mxu3  ;;  %v7337_v2 = vld [vmem:[#allocation27_spill] sm:$0xff] }
 0x19e   : > { %v1206_v62 = vadd.f32 %v1144_v32, %v927_v34  ;;  %v928_v58 = vadd.f32 %v5177_v14, %v623_v45  ;;  %v4295_v32 = vld [vmem:[%s4458_s23 + $0x52] sm:$0xff] }
 0x19f   : > { %v1931_v61 = vpop.f32.mrf.mxu2 }
 0x1a0   : > { %v5450_v25 = vadd.f32 %v1931_v61, %v1746_v5  ;;  %v1655_v6 = vpop.f32.mrf.mxu1  ;;  %v5453_v9 = vadd.f32 %v1422_v33, %v1206_v62  ;;  %v7339_v62 = vld [vmem:[#allocation26_spill] sm:$0xff]  ;;  %v7340_v61 = vld [vmem:[#allocation29_spill] sm:$0xff] }
 0x1a1   : > { %v1747_v50 = vadd.f32 %v1655_v6, %v5183_v3 }
 0x1a2   : > { %7335 = vst [vmem:[#allocation46_spill] sm:$0xff] %v5453_v9  ;;  %v1425_v8 = vpop.f32.mrf.mxu0  ;;  %4262 = vmatmul.msk.f32.gmra.mxu3 %vm238_vm1, %v4228_v54  ;;  %v7383_v9 = vld [vmem:[#allocation37_spill] sm:$0xff] }
 0x1a3   : > { %4146 = vmatmul.msk.f32.gmra.mxu1 %vm238_vm1, %v7337_v2 }
 0x1a4   : > { %4212 = vmatmul.msk.f32.gmra.mxu2 %vm238_vm1, %v4905_v35  ;;  %v626_v35 = vadd.f32 %v5179_v53, %v7339_v62 }
 0x1a5   : > { %4328 = vmatmul.msk.f32.gmra.mxu0 %vm238_vm1, %v4294_v27  ;;  %v1147_v59 = vpop.f32.mrf.mxu3 }
 0x1a6   : > { %v1207_v0 = vadd.f32 %v1147_v59, %v928_v58  ;;  %v929_v14 = vadd.f32 %v5194_v18, %v626_v35  ;;  %v4296_v58 = vld [vmem:[%s4458_s23 + $0x62] sm:$0xff]  ;;  %v7343_v59 = vld [vmem:[#allocation33_spill] sm:$0xff]  ;;  %v4297_v35 = vld [vmem:[%s4458_s23 + $0x6a] sm:$0xff] }
 0x1a7   : > { %v1934_v33 = vpop.f32.mrf.mxu2 }
 0x1a8   : > { %v5466_v47 = vadd.f32 %v1934_v33, %v1747_v50  ;;  %v1658_v1 = vpop.f32.mrf.mxu1  ;;  %v5469_v34 = vadd.f32 %v1425_v8, %v1207_v0  ;;  %v7342_v50 = vld [vmem:[#allocation28_spill] sm:$0xff] }
 0x1a9   : > { %v1748_v3 = vadd.f32 %v1658_v1, %v5200_v10 }
 0x1aa   : > { %7338 = vst [vmem:[#allocation49_spill] sm:$0xff] %v5469_v34  ;;  %v1428_v5 = vpop.f32.mrf.mxu0  ;;  %4263 = vmatmul.msk.f32.gmra.mxu3 %vm238_vm1, %v4229_v57 }
 0x1ab   : > { %4147 = vmatmul.msk.f32.gmra.mxu1 %vm238_vm1, %v7340_v61  ;;  %v7345_v61 = vld [vmem:[#allocation30_spill] sm:$0xff] }
 0x1ac   : > { %4213 = vmatmul.msk.f32.gmra.mxu2 %vm238_vm1, %v4927_v49  ;;  %v629_v49 = vadd.f32 %v5196_v12, %v7342_v50 }
 0x1ad   : > { %4329 = vmatmul.msk.f32.gmra.mxu0 %vm238_vm1, %v4295_v32  ;;  %v1150_v6 = vpop.f32.mrf.mxu3 }
 0x1ae   : > { %v1208_v54 = vadd.f32 %v1150_v6, %v929_v14  ;;  %v930_v18 = vadd.f32 %v5211_v16, %v629_v49  ;;  %v7346_v14 = vld [vmem:[#allocation38_spill] sm:$0xff]  ;;  %v7349_v49 = vld [vmem:[#allocation43_spill] sm:$0xff] }
 0x1af   : > { %v1937_v8 = vpop.f32.mrf.mxu2 }
 0x1b0   : > { %v5482_v27 = vadd.f32 %v1937_v8, %v1748_v3  ;;  %v1661_v53 = vpop.f32.mrf.mxu1  ;;  %v5485_v45 = vadd.f32 %v1428_v5, %v1208_v54  ;;  %v4231_v5 = vld [vmem:[%s4458_s23 + $0x69] sm:$0xff] }
 0x1b1   : > { %v1749_v10 = vadd.f32 %v1661_v53, %v5217_v11 }
 0x1b2   : > { %7341 = vst [vmem:[#allocation47_spill] sm:$0xff] %v5485_v45  ;;  %v1431_v2 = vpop.f32.mrf.mxu0  ;;  %4264 = vmatmul.msk.f32.gmra.mxu3 %vm238_vm1, %v4230_v19 }
 0x1b3   : > { %4148 = vmatmul.msk.f32.gmra.mxu1 %vm238_vm1, %v7343_v59 }
 0x1b4   : > { %4214 = vmatmul.msk.f32.gmra.mxu2 %vm238_vm1, %v4949_v39  ;;  %v632_v39 = vadd.f32 %v5213_v56, %v7345_v61  ;;  %v4232_v56 = vld [vmem:[%s4458_s23 + $0x79] sm:$0xff] }
 0x1b5   : > { %4330 = vmatmul.msk.f32.gmra.mxu0 %vm238_vm1, %v4296_v58  ;;  %v1153_v0 = vpop.f32.mrf.mxu3  ;;  %v4298_v58 = vld [vmem:[%s4458_s23 + $0x7a] sm:$0xff] }
 0x1b6   : > { %v1209_v33 = vadd.f32 %v1153_v0, %v930_v18  ;;  %v931_v16 = vadd.f32 %v5228_v63, %v632_v39 }
 0x1b7   : > { %v1940_v1 = vpop.f32.mrf.mxu2 }
 0x1b8   : > { %v5498_v57 = vadd.f32 %v1940_v1, %v1749_v10  ;;  %v1664_v12 = vpop.f32.mrf.mxu1  ;;  %v5501_v32 = vadd.f32 %v1431_v2, %v1209_v33 }
 0x1b9   : > { %v1750_v11 = vadd.f32 %v1664_v12, %v5234_v24  ;;  %v4299_v12 = vld [vmem:[%s4458_s23 + $0x82] sm:$0xff] }
 0x1ba   : > { %7344 = vst [vmem:[#allocation10_spill] sm:$0xff] %v5501_v32  ;;  %v1434_v62 = vpop.f32.mrf.mxu0  ;;  %4265 = vmatmul.msk.f32.gmra.mxu3 %vm238_vm1, %v4231_v5  ;;  %v7351_v5 = vld [vmem:[#allocation40_spill] sm:$0xff] }
 0x1bb   : > { %4149 = vmatmul.msk.f32.gmra.mxu1 %vm238_vm1, %v7346_v14 }
 0x1bc   : > { %4215 = vmatmul.msk.f32.gmra.mxu2 %vm238_vm1, %v4971_v37  ;;  %v7348_v37 = vld [vmem:[#allocation35_spill] sm:$0xff] }
 0x1bd   : > { %4331 = vmatmul.msk.f32.gmra.mxu0 %vm238_vm1, %v4297_v35  ;;  %v1156_v3 = vpop.f32.mrf.mxu3  ;;  %v635_v50 = vadd.f32 %v5230_v51, %v7348_v37  ;;  %v4233_v51 = vld [vmem:[%s4458_s23 + $0x81] sm:$0xff]  ;;  %v7352_v35 = vld [vmem:[#allocation48_spill] sm:$0xff] }
 0x1be   : > { %v1210_v6 = vadd.f32 %v1156_v3, %v931_v16  ;;  %v4234_v16 = vld [vmem:[%s4458_s23 + $0x91] sm:$0xff]  ;;  %v4301_v37 = vld [vmem:[%s4458_s23 + $0x9a] sm:$0xff] }
 0x1bf   : > { %v1943_v54 = vpop.f32.mrf.mxu2  ;;  %v932_v63 = vadd.f32 %v5245_v28, %v635_v50  ;;  %v7356_v50 = vld [vmem:[#allocation50_spill] sm:$0xff] }
 0x1c0   : > { %v5514_v8 = vadd.f32 %v1943_v54, %v1750_v11  ;;  %v5517_v53 = vadd.f32 %v1434_v62, %v1210_v6  ;;  %v1667_v19 = vpop.f32.mrf.mxu1  ;;  %v4300_v6 = vld [vmem:[%s4458_s23 + $0x92] sm:$0xff] }
 0x1c1   : > { %v1751_v24 = vadd.f32 %v1667_v19, %v5251_v43  ;;  %v7354_v54 = vld [vmem:[#allocation45_spill] sm:$0xff] }
 0x1c2   : > { %7347 = vst [vmem:[#allocation9_spill] sm:$0xff] %v5517_v53  ;;  %v1437_v2 = vpop.f32.mrf.mxu0  ;;  %4266 = vmatmul.msk.f32.gmra.mxu3 %vm238_vm1, %v4232_v56  ;;  %v7355_v56 = vld [vmem:[#allocation53_spill] sm:$0xff] }
 0x1c3   : > { %4150 = vmatmul.msk.f32.gmra.mxu1 %vm238_vm1, %v7349_v49  ;;  %v644_v49 = vadd.f32 %v5285_v13, %v7356_v50  ;;  %v7366_v50 = vld [vmem:[#allocation77_spill] sm:$0xff] }
 0x1c4   : > { %4216 = vmatmul.msk.f32.gmra.mxu2 %vm238_vm1, %v4993_v31  ;;  %v638_v31 = vadd.f32 %v5247_v7, %v7351_v5 }
 0x1c5   : > { %4332 = vmatmul.msk.f32.gmra.mxu0 %vm238_vm1, %v4298_v58  ;;  %v1159_v59 = vpop.f32.mrf.mxu3 }
 0x1c6   : > { %v1211_v18 = vadd.f32 %v1159_v59, %v932_v63  ;;  %v933_v28 = vadd.f32 %v5262_v20, %v638_v31  ;;  %v7357_v63 = vld [vmem:[#allocation58_spill] sm:$0xff]  ;;  %v4236_v59 = vld [vmem:[%s4458_s23 + $0xa9] sm:$0xff]  ;;  %v4237_v31 = vld [vmem:[%s4458_s23 + $0xb1] sm:$0xff] }
 0x1c7   : > { %v1946_v10 = vpop.f32.mrf.mxu2 }
 0x1c8   : > { %v5530_v0 = vadd.f32 %v1946_v10, %v1751_v24  ;;  %v5533_v33 = vadd.f32 %v1437_v2, %v1211_v18  ;;  %v1670_v62 = vpop.f32.mrf.mxu1  ;;  %v4235_v2 = vld [vmem:[%s4458_s23 + $0x99] sm:$0xff]  ;;  %v4302_v10 = vld [vmem:[%s4458_s23 + $0xaa] sm:$0xff] }
 0x1c9   : > { %v1752_v43 = vadd.f32 %v1670_v62, %v5268_v40 }
 0x1ca   : > { %7350 = vst [vmem:[#allocation51_spill] sm:$0xff] %v5533_v33  ;;  %v1440_v1 = vpop.f32.mrf.mxu0  ;;  %4267 = vmatmul.msk.f32.gmra.mxu3 %vm238_vm1, %v4233_v51  ;;  %v7358_v51 = vld [vmem:[#allocation55_spill] sm:$0xff] }
 0x1cb   : > { %4151 = vmatmul.msk.f32.gmra.mxu1 %vm238_vm1, %v7352_v35  ;;  %v4303_v35 = vld [vmem:[%s4458_s23 + $0xb2] sm:$0xff] }
 0x1cc   : > { %4217 = vmatmul.msk.f32.gmra.mxu2 %vm238_vm1, %v5015_v26  ;;  %v641_v26 = vadd.f32 %v5264_v46, %v7354_v54 }
 0x1cd   : > { %4333 = vmatmul.msk.f32.gmra.mxu0 %vm238_vm1, %v4299_v12  ;;  %v1162_v61 = vpop.f32.mrf.mxu3  ;;  %v7359_v12 = vld [vmem:[#allocation63_spill] sm:$0xff] }
 0x1ce   : > { %v1212_v39 = vadd.f32 %v1162_v61, %v933_v28  ;;  %v934_v20 = vadd.f32 %v5283_v23, %v641_v26  ;;  %v7360_v28 = vld [vmem:[#allocation60_spill] sm:$0xff]  ;;  %v7363_v26 = vld [vmem:[#allocation73_spill] sm:$0xff] }
 0x1cf   : > { %v1949_v14 = vpop.f32.mrf.mxu2  ;;  %v7361_v61 = vld [vmem:[#allocation68_spill] sm:$0xff] }
 0x1d0   : > { %v5546_v7 = vadd.f32 %v1949_v14, %v1752_v43  ;;  %v5549_v11 = vadd.f32 %v1440_v1, %v1212_v39  ;;  %v647_v1 = vadd.f32 %v5306_v21, %v7358_v51  ;;  %v650_v43 = vadd.f32 %v5323_v15, %v7360_v28  ;;  %v4238_v14 = vld [vmem:[%s4458_s23 + $0xc1] sm:$0xff] }
 0x1d1   : > { %v7368_v51 = vld [vmem:[#allocation75_spill] sm:$0xff]  ;;  %v4191_v28 = vld [vmem:[%s4458_s23 + $0x1a0] sm:$0xff] }
 0x1d2   : > { %7353 = vst [vmem:[#allocation54_spill] sm:$0xff] %v5549_v11  ;;  %v1443_v3 = vpop.f32.mrf.mxu0  ;;  %4268 = vmatmul.msk.f32.gmra.mxu3 %vm238_vm1, %v4234_v16 }
 0x1d3   : > { %4152 = vmatmul.msk.f32.gmra.mxu1 %vm238_vm1, %v7355_v56 }
 0x1d4   : > { %4218 = vmatmul.msk.f32.gmra.mxu2 %vm238_vm1, %v5037_v30  ;;  %v935_v30 = vadd.f32 %v5304_v48, %v644_v49 }
 0x1d5   : > { %4334 = vmatmul.msk.f32.gmra.mxu0 %vm238_vm1, %v4300_v6  ;;  %v1165_v40 = vpop.f32.mrf.mxu3  ;;  %v7362_v6 = vld [vmem:[#allocation65_spill] sm:$0xff] }
 0x1d6   : > { %v1213_v19 = vadd.f32 %v1165_v40, %v934_v20  ;;  %v653_v54 = vadd.f32 %v5340_v41, %v7362_v6  ;;  %v4239_v20 = vld [vmem:[%s4458_s23 + $0xc9] sm:$0xff]  ;;  %v4242_v6 = vld [vmem:[%s4458_s23 + $0xf1] sm:$0xff] }
 0x1d8   : > { %v5562_v58 = vadd.f32 %v1443_v3, %v1213_v19  ;;  %v4304_v3 = vld [vmem:[%s4458_s23 + $0xc2] sm:$0xff]  ;;  %v4305_v19 = vld [vmem:[%s4458_s23 + $0xca] sm:$0xff] }
 0x1da   : > { %v1446_v46 = vpop.f32.mrf.mxu0  ;;  %4269 = vmatmul.msk.f32.gmra.mxu3 %vm238_vm1, %v4235_v2  ;;  %v7364_v2 = vld [vmem:[#allocation70_spill] sm:$0xff] }
 0x1db   : > { %4153 = vmatmul.msk.f32.gmra.mxu1 %vm238_vm1, %v7357_v63 }
 0x1dc   : > { %4219 = vmatmul.msk.f32.gmra.mxu2 %vm238_vm1, %v5067_v60  ;;  %v936_v60 = vadd.f32 %v5321_v17, %v647_v1 }
 0x1dd   : > { %4335 = vmatmul.msk.f32.gmra.mxu0 %vm238_vm1, %v4301_v37  ;;  %v1168_v23 = vpop.f32.mrf.mxu3 }
 0x1de   : > { %v1214_v24 = vadd.f32 %v1168_v23, %v935_v30  ;;  %v5627_v30 = vld [vmem:[%s4458_s23 + $0x182] sm:$0xff]  ;;  %v4240_v23 = vld [vmem:[%s4458_s23 + $0xd9] sm:$0xff] }
 0x1e0   : > { %v5575_v18 = vadd.f32 %v1446_v46, %v1214_v24  ;;  %v7365_v46 = vld [vmem:[#allocation4_spill] sm:$0xff] }
 0x1e1   : > { %v656_v37 = vadd.f32 %v7365_v46, %v7364_v2 }
 0x1e2   : > { %v1449_v13 = vpop.f32.mrf.mxu0  ;;  %4270 = vmatmul.msk.f32.gmra.mxu3 %vm238_vm1, %v4236_v59  ;;  %v4190_v59 = vld [vmem:[%s4458_s23 + $0x198] sm:$0xff] }
 0x1e3   : > { %4154 = vmatmul.msk.f32.gmra.mxu1 %vm238_vm1, %v7359_v12  ;;  %v7370_v12 = vld [vmem:[#allocation5_spill] sm:$0xff] }
 0x1e4   : > { %4220 = vmatmul.msk.f32.gmra.mxu2 %vm238_vm1, %v5089_v38  ;;  %v937_v38 = vadd.f32 %v5338_v22, %v650_v43 }
 0x1e5   : > { %4336 = vmatmul.msk.f32.gmra.mxu0 %vm238_vm1, %v4302_v10  ;;  %v1171_v48 = vpop.f32.mrf.mxu3  ;;  %v4306_v10 = vld [vmem:[%s4458_s23 + $0xda] sm:$0xff] }
 0x1e6   : > { %v1215_v5 = vadd.f32 %v1171_v48, %v936_v60 }
 0x1e8   : > { %v5588_v62 = vadd.f32 %v1449_v13, %v1215_v5 }
 0x1ea   : > { %v1452_v21 = vpop.f32.mrf.mxu0  ;;  %4271 = vmatmul.msk.f32.gmra.mxu3 %vm238_vm1, %v4237_v31  ;;  %v5643_v31 = vld [vmem:[%s4458_s23 + $0x18a] sm:$0xff] }
 0x1eb   : > { %4155 = vmatmul.msk.f32.gmra.mxu1 %vm238_vm1, %v7361_v61  ;;  %v4307_v61 = vld [vmem:[%s4458_s23 + $0xe2] sm:$0xff] }
 0x1ec   : > { %4221 = vmatmul.msk.f32.gmra.mxu2 %vm238_vm1, %v5111_v42  ;;  %v938_v42 = vadd.f32 %v5355_v52, %v653_v54  ;;  %v7367_v52 = vld [vmem:[#allocation36_spill] sm:$0xff] }
 0x1ed   : > { %4337 = vmatmul.msk.f32.gmra.mxu0 %vm238_vm1, %v4303_v35  ;;  %v1174_v17 = vpop.f32.mrf.mxu3 }
 0x1ee   : > { %v1216_v39 = vadd.f32 %v1174_v17, %v937_v38  ;;  %v7371_v38 = vld [vmem:[#allocation79_spill] sm:$0xff]  ;;  %v7372_v17 = vld [vmem:[#allocation41_spill] sm:$0xff] }
 0x1f0   : > { %v5601_v16 = vadd.f32 %v1452_v21, %v1216_v39  ;;  %v4241_v21 = vld [vmem:[%s4458_s23 + $0xe1] sm:$0xff]  ;;  %v662_v39 = vadd.f32 %v7372_v17, %v7371_v38  ;;  %v4247_v38 = vld [vmem:[%s4458_s23 + $0x129] sm:$0xff] }
 0x1f2   : > { %v1455_v15 = vpop.f32.mrf.mxu0  ;;  %4272 = vmatmul.msk.f32.gmra.mxu3 %vm238_vm1, %v4238_v14  ;;  %v941_v14 = vadd.f32 %v5418_v4, %v662_v39  ;;  %v4313_v39 = vld [vmem:[%s4458_s23 + $0x12a] sm:$0xff] }
 0x1f3   : > { %4156 = vmatmul.msk.f32.gmra.mxu1 %vm238_vm1, %v7363_v26 }
 0x1f4   : > { %4222 = vmatmul.msk.f32.gmra.mxu2 %vm238_vm1, %v5377_v36  ;;  %v939_v36 = vadd.f32 %v7367_v52, %v656_v37  ;;  %v4244_v37 = vld [vmem:[%s4458_s23 + $0x109] sm:$0xff] }
 0x1f5   : > { %4338 = vmatmul.msk.f32.gmra.mxu0 %vm238_vm1, %v4304_v3  ;;  %v1177_v22 = vpop.f32.mrf.mxu3 }
 0x1f6   : > { %v1217_v56 = vadd.f32 %v1177_v22, %v938_v42  ;;  %v4308_v42 = vld [vmem:[%s4458_s23 + $0xf2] sm:$0xff] }
 0x1f8   : > { %v5614_v40 = vadd.f32 %v1455_v15, %v1217_v56 }
 0x1fa   : > { %v1458_v41 = vpop.f32.mrf.mxu0  ;;  %4273 = vmatmul.msk.f32.gmra.mxu3 %vm238_vm1, %v4239_v20  ;;  %v4243_v20 = vld [vmem:[%s4458_s23 + $0xf9] sm:$0xff] }
 0x1fb   : > { %4157 = vmatmul.msk.f32.gmra.mxu1 %vm238_vm1, %v7366_v50 }
 0x1fc   : > { %4223 = vmatmul.msk.f32.gmra.mxu2 %vm238_vm1, %v5400_v44  ;;  %v7369_v44 = vld [vmem:[#allocation39_spill] sm:$0xff] }
 0x1fd   : > { %4339 = vmatmul.msk.f32.gmra.mxu0 %vm238_vm1, %v4305_v19  ;;  %v1180_v49 = vpop.f32.mrf.mxu3  ;;  %v659_v1 = vadd.f32 %v7369_v44, %v7368_v51  ;;  %v4309_v19 = vld [vmem:[%s4458_s23 + $0xfa] sm:$0xff] }
 0x1fe   : > { %v1218_v63 = vadd.f32 %v1180_v49, %v939_v36  ;;  %v4310_v36 = vld [vmem:[%s4458_s23 + $0x10a] sm:$0xff]  ;;  %v5679_v49 = vpop.f32.mrf.mxu2 }
 0x1ff   : > { %v940_v60 = vadd.f32 %v7370_v12, %v659_v1 }
 0x200   : > { %v5630_v24 = vadd.f32 %v1458_v41, %v1218_v63 }
 0x202   : > { %v1461_v13 = vpop.f32.mrf.mxu0  ;;  %4274 = vmatmul.msk.f32.gmra.mxu3 %vm238_vm1, %v4240_v23 }
 0x203   : > { %4158 = vmatmul.msk.f32.gmra.mxu1 %vm238_vm1, %v5627_v30 }
 0x204   : > { %4224 = vmatmul.msk.f32.gmra.mxu2 %vm238_vm1, %v4190_v59  ;;  %v4245_v59 = vld [vmem:[%s4458_s23 + $0x111] sm:$0xff] }
 0x205   : > { %4340 = vmatmul.msk.f32.gmra.mxu0 %vm238_vm1, %v4306_v10  ;;  %v1183_v48 = vpop.f32.mrf.mxu3  ;;  %v4311_v10 = vld [vmem:[%s4458_s23 + $0x112] sm:$0xff] }
 0x206   : > { %v1219_v5 = vadd.f32 %v1183_v48, %v940_v60  ;;  %v5691_v44 = vpop.f32.mrf.mxu2  ;;  %v4246_v60 = vld [vmem:[%s4458_s23 + $0x121] sm:$0xff] }
 0x208   : > { %v5646_v35 = vadd.f32 %v1461_v13, %v1219_v5  ;;  %v4312_v5 = vld [vmem:[%s4458_s23 + $0x122] sm:$0xff] }
 0x20a   : > { %v1464_v43 = vpop.f32.mrf.mxu0  ;;  %4275 = vmatmul.msk.f32.gmra.mxu3 %vm238_vm1, %v4241_v21 }
 0x20b   : > { %4159 = vmatmul.msk.f32.gmra.mxu1 %vm238_vm1, %v5643_v31 }
 0x20c   : > { %4225 = vmatmul.msk.f32.gmra.mxu2 %vm238_vm1, %v4191_v28 }
 0x20d   : > { %4341 = vmatmul.msk.f32.gmra.mxu0 %vm238_vm1, %v4307_v61  ;;  %v1186_v15 = vpop.f32.mrf.mxu3 }
 0x20e   : > { %v1220_v3 = vadd.f32 %v1186_v15, %v941_v14  ;;  %v5703_v61 = vpop.f32.mrf.mxu2 }
 0x210   : > { %v5659_v54 = vadd.f32 %v1464_v43, %v1220_v3 }
 0x212   : > { %v2484_v26 = vpop.f32.mrf.mxu0  ;;  %4276 = vmatmul.msk.f32.gmra.mxu3 %vm238_vm1, %v4242_v6  ;;  %v4248_v6 = vld [vmem:[%s4458_s23 + $0x139] sm:$0xff] }
 0x215   : > { %4342 = vmatmul.msk.f32.gmra.mxu0 %vm238_vm1, %v4308_v42  ;;  %v2206_v22 = vpop.f32.mrf.mxu3  ;;  %v4314_v42 = vld [vmem:[%s4458_s23 + $0x13a] sm:$0xff] }
 0x216   : > { %v2302_v56 = vadd.f32 %v2206_v22, %v5434_v55  ;;  %v5676_v55 = vpop.f32.mrf.mxu1  ;;  %v5718_v22 = vpop.f32.mrf.mxu2 }
 0x218   : > { %v5666_v41 = vadd.f32 %v2484_v26, %v2302_v56 }
 0x21a   : > { %v2487_v4 = vpop.f32.mrf.mxu0  ;;  %4277 = vmatmul.msk.f32.gmra.mxu3 %vm238_vm1, %v4243_v20 }
 0x21d   : > { %4343 = vmatmul.msk.f32.gmra.mxu0 %vm238_vm1, %v4309_v19  ;;  %v2209_v2 = vpop.f32.mrf.mxu3 }
 0x21e   : > { %v2303_v46 = vadd.f32 %v2209_v2, %v5450_v25  ;;  %v5688_v51 = vpop.f32.mrf.mxu1  ;;  %v4315_v2 = vld [vmem:[%s4458_s23 + $0x142] sm:$0xff] }
 0x220   : > { %v5673_v50 = vadd.f32 %v2487_v4, %v2303_v46  ;;  %v4249_v4 = vld [vmem:[%s4458_s23 + $0x141] sm:$0xff] }
 0x222   : > { %v2490_v52 = vpop.f32.mrf.mxu0  ;;  %4278 = vmatmul.msk.f32.gmra.mxu3 %vm238_vm1, %v4244_v37  ;;  %v5730_v37 = vpop.f32.mrf.mxu2 }
 0x225   : > { %4344 = vmatmul.msk.f32.gmra.mxu0 %vm238_vm1, %v4310_v36  ;;  %v2212_v63 = vpop.f32.mrf.mxu3 }
 0x226   : > { %v2304_v23 = vadd.f32 %v2212_v63, %v5466_v47  ;;  %v5700_v21 = vpop.f32.mrf.mxu1  ;;  %v4250_v63 = vld [vmem:[%s4458_s23 + $0x151] sm:$0xff] }
 0x228   : > { %v5684_v25 = vadd.f32 %v2490_v52, %v2304_v23 }
 0x22a   : > { %v2493_v13 = vpop.f32.mrf.mxu0  ;;  %4279 = vmatmul.msk.f32.gmra.mxu3 %vm238_vm1, %v4245_v59  ;;  %v4316_v59 = vld [vmem:[%s4458_s23 + $0x152] sm:$0xff] }
 0x22d   : > { %4345 = vmatmul.msk.f32.gmra.mxu0 %vm238_vm1, %v4311_v10  ;;  %v2215_v1 = vpop.f32.mrf.mxu3  ;;  %v1967_v10 = vpop.f32.mrf.mxu2 }
 0x22e   : > { %v2305_v12 = vadd.f32 %v2215_v1, %v5482_v27  ;;  %v5712_v3 = vpop.f32.mrf.mxu1 }
 0x230   : > { %v5695_v47 = vadd.f32 %v2493_v13, %v2305_v12  ;;  %v4251_v12 = vld [vmem:[%s4458_s23 + $0x159] sm:$0xff] }
 0x232   : > { %v2496_v48 = vpop.f32.mrf.mxu0  ;;  %4280 = vmatmul.msk.f32.gmra.mxu3 %vm238_vm1, %v4246_v60 }
 0x235   : > { %4346 = vmatmul.msk.f32.gmra.mxu0 %vm238_vm1, %v4312_v5  ;;  %v2218_v28 = vpop.f32.mrf.mxu3 }
 0x236   : > { %v2306_v43 = vadd.f32 %v2218_v28, %v5498_v57  ;;  %v5727_v46 = vpop.f32.mrf.mxu1  ;;  %v1970_v28 = vpop.f32.mrf.mxu2 }
 0x238   : > { %v5706_v27 = vadd.f32 %v2496_v48, %v2306_v43  ;;  %v4252_v43 = vld [vmem:[%s4458_s23 + $0x169] sm:$0xff] }
 0x23a   : > { %v2499_v17 = vpop.f32.mrf.mxu0  ;;  %4281 = vmatmul.msk.f32.gmra.mxu3 %vm238_vm1, %v4247_v38 }
 0x23d   : > { %4347 = vmatmul.msk.f32.gmra.mxu0 %vm238_vm1, %v4313_v39  ;;  %v2221_v14 = vpop.f32.mrf.mxu3 }
 0x23e   : > { %v2307_v15 = vadd.f32 %v2221_v14, %v5514_v8  ;;  %v1688_v13 = vpop.f32.mrf.mxu1 }
 0x240   : > { %v5715_v57 = vadd.f32 %v2499_v17, %v2307_v15  ;;  %v4318_v17 = vld [vmem:[%s4458_s23 + $0x16a] sm:$0xff] }
 0x241   : > { %v4253_v15 = vld [vmem:[%s4458_s23 + $0x171] sm:$0xff] }
 0x242   : > { %v2502_v26 = vpop.f32.mrf.mxu0  ;;  %4282 = vmatmul.msk.f32.gmra.mxu3 %vm238_vm1, %v4248_v6 }
 0x245   : > { %4348 = vmatmul.msk.f32.gmra.mxu0 %vm238_vm1, %v4314_v42  ;;  %v2224_v56 = vpop.f32.mrf.mxu3  ;;  %v1973_v42 = vpop.f32.mrf.mxu2 }
 0x246   : > { %v2308_v20 = vadd.f32 %v2224_v56, %v5530_v0  ;;  %v1691_v48 = vpop.f32.mrf.mxu1 }
 0x248   : > { %v5724_v8 = vadd.f32 %v2502_v26, %v2308_v20  ;;  %v4319_v26 = vld [vmem:[%s4458_s23 + $0x172] sm:$0xff] }
 0x24a   : > { %v2505_v19 = vpop.f32.mrf.mxu0  ;;  %4283 = vmatmul.msk.f32.gmra.mxu3 %vm238_vm1, %v4249_v4 }
 0x24d   : > { %4349 = vmatmul.msk.f32.gmra.mxu0 %vm238_vm1, %v4315_v2  ;;  %v2227_v52 = vpop.f32.mrf.mxu3  ;;  %v5770_v2 = vpop.f32.mrf.mxu2 }
 0x24e   : > { %v2309_v36 = vadd.f32 %v2227_v52, %v5546_v7  ;;  %v4317_v7 = vld [vmem:[%s4458_s23 + $0x15a] sm:$0xff]  ;;  %v1694_v14 = vpop.f32.mrf.mxu1  ;;  %7375 = vst [vmem:[#allocation12_spill] sm:$0xff] %v5770_v2 }
 0x250   : > { %v5735_v0 = vadd.f32 %v2505_v19, %v2309_v36  ;;  %v7374_v19 = vld [vmem:[#allocation6_spill] sm:$0xff] }
 0x252   : > { %v5737_v23 = vpop.f32.mrf.mxu0  ;;  %4284 = vmatmul.msk.f32.gmra.mxu3 %vm238_vm1, %v4250_v63  ;;  %v7376_v63 = vld [vmem:[#allocation42_spill] sm:$0xff] }
 0x255   : > { %4350 = vmatmul.msk.f32.gmra.mxu0 %vm238_vm1, %v4316_v59  ;;  %v5742_v1 = vpop.f32.mrf.mxu3 }
 0x256   : > { %v5766_v4 = vpop.f32.mrf.mxu1 }
 0x257   : > { %7373 = vst [vmem:[#allocation52_spill] sm:$0xff] %v5766_v4  ;;  %v4323_v4 = vld [vmem:[%s4458_s23 + $0x1a2] sm:$0xff] }
 0x25a   : > { %v5745_v60 = vpop.f32.mrf.mxu0  ;;  %4285 = vmatmul.msk.f32.gmra.mxu3 %vm238_vm1, %v4251_v12  ;;  %v5780_v12 = vpop.f32.mrf.mxu2 }
 0x25b   : > { %7378 = vst [vmem:[#allocation56_spill] sm:$0xff] %v5780_v12 }
 0x25d   : > { %4351 = vmatmul.msk.f32.gmra.mxu0 %vm238_vm1, %v4317_v7  ;;  %v5750_v5 = vpop.f32.mrf.mxu3 }
 0x25e   : > { %v5776_v59 = vpop.f32.mrf.mxu1 }
 0x25f   : > { %7377 = vst [vmem:[#allocation11_spill] sm:$0xff] %v5776_v59  ;;  %v7382_v59 = vld [vmem:[#allocation8_spill] sm:$0xff] }
 0x260   : > { %v1760_v12 = vadd.f32 %v1694_v14, %v7382_v59 }
 0x262   : > { %v5753_v38 = vpop.f32.mrf.mxu0  ;;  %4286 = vmatmul.msk.f32.gmra.mxu3 %vm238_vm1, %v4252_v43  ;;  %v4256_v43 = vld [vmem:[%s4458_s23 + $0x199] sm:$0xff] }
 0x265   : > { %4352 = vmatmul.msk.f32.gmra.mxu0 %vm238_vm1, %v4318_v17  ;;  %v5758_v39 = vpop.f32.mrf.mxu3 }
 0x26a   : > { %v5761_v6 = vpop.f32.mrf.mxu0  ;;  %4287 = vmatmul.msk.f32.gmra.mxu3 %vm238_vm1, %v4253_v15  ;;  %v4322_v15 = vld [vmem:[%s4458_s23 + $0x19a] sm:$0xff] }
 0x26d   : > { %4353 = vmatmul.msk.f32.gmra.mxu0 %vm238_vm1, %v4319_v26  ;;  %v2239_v56 = vpop.f32.mrf.mxu3 }
 0x272   : > { %v2520_v20 = vpop.f32.mrf.mxu0  ;;  %4288 = vmatmul.msk.f32.gmra.mxu3 %vm238_vm1, %v7374_v19  ;;  %v5788_v19 = vpop.f32.mrf.mxu2 }
 0x273   : > { %7380 = vst [vmem:[#allocation57_spill] sm:$0xff] %v5788_v19 }
 0x275   : > { %4354 = vmatmul.msk.f32.gmra.mxu0 %vm238_vm1, %v5627_v30  ;;  %v2242_v52 = vpop.f32.mrf.mxu3  ;;  %v5786_v30 = vpop.f32.mrf.mxu1 }
 0x276   : > { %7379 = vst [vmem:[#allocation59_spill] sm:$0xff] %v5786_v30  ;;  %v7384_v30 = vld [vmem:[#allocation3_spill] sm:$0xff] }
 0x277   : > { %v1757_v32 = vadd.f32 %v5727_v46, %v7384_v30 }
 0x279   : > { %v2036_v14 = vadd.f32 %v5730_v37, %v1757_v32 }
 0x27a   : > { %v2523_v36 = vpop.f32.mrf.mxu0  ;;  %4289 = vmatmul.msk.f32.gmra.mxu3 %vm238_vm1, %v7376_v63  ;;  %v4257_v63 = vld [vmem:[%s4458_s23 + $0x1a1] sm:$0xff] }
 0x27d   : > { %4355 = vmatmul.msk.f32.gmra.mxu0 %vm238_vm1, %v5643_v31  ;;  %v2245_v7 = vpop.f32.mrf.mxu3  ;;  %v1759_v31 = vadd.f32 %v1691_v48, %v7381_v29  ;;  %v5799_v11 = vpop.f32.mrf.mxu1  ;;  %v7385_v29 = vld [vmem:[#allocation32_spill] sm:$0xff] }
 0x27e   : > { %v1756_v48 = vadd.f32 %v5712_v3, %v7385_v29  ;;  %v2618_v29 = vld [vmem:[%s7148_s2 + $0x30] sm:$0xff] }
 0x27f   : > { %v2038_v34 = vadd.f32 %v1970_v28, %v1759_v31  ;;  %v5808_v28 = vpop.f32.mrf.mxu2 }
 0x280   : > { %7388 = vst [vmem:[#allocation13_spill] sm:$0xff] %v5808_v28  ;;  %v2035_v46 = vadd.f32 %v5718_v22, %v1756_v48  ;;  %v2636_v28 = vld [vmem:[%s7148_s2 + $0xc0] sm:$0xff] }
 0x282   : > { %v2526_v17 = vpop.f32.mrf.mxu0  ;;  %4290 = vmatmul.msk.f32.gmra.mxu3 %vm238_vm1, %v4256_v43  ;;  %v1758_v43 = vadd.f32 %v1688_v13, %v7383_v9  ;;  %v7387_v9 = vld [vmem:[#allocation34_spill] sm:$0xff]  ;;  %v2313_v37 = vadd.f32 %v2239_v56, %v2035_v46 }
 0x283   : > { %v1755_v13 = vadd.f32 %v5700_v21, %v7387_v9  ;;  %v2620_v9 = vld [vmem:[%s7148_s2 + $0x40] sm:$0xff] }
 0x284   : > { %v2037_v19 = vadd.f32 %v1967_v10, %v1758_v43  ;;  %v7389_v10 = vld [vmem:[#allocation31_spill] sm:$0xff]  ;;  %v2591_v56 = vadd.f32 %v5761_v6, %v2313_v37  ;;  %v2624_v37 = vld [vmem:[%s7148_s2 + $0x60] sm:$0xff] }
 0x285   : > { %4356 = vmatmul.msk.f32.gmra.mxu0 %vm238_vm1, %v4322_v15  ;;  %v2248_v26 = vpop.f32.mrf.mxu3  ;;  %v2039_v15 = vadd.f32 %v1973_v42, %v1760_v12  ;;  %v1754_v3 = vadd.f32 %v5688_v51, %v7389_v10  ;;  %v2034_v32 = vadd.f32 %v5703_v61, %v1755_v13  ;;  %v7390_v42 = vld [vmem:[#allocation2_spill] sm:$0xff] }
 0x286   : > { %v2316_v53 = vadd.f32 %v2248_v26, %v2038_v34  ;;  %v2315_v59 = vadd.f32 %v2245_v7, %v2037_v19  ;;  %v2314_v34 = vadd.f32 %v2242_v52, %v2036_v14  ;;  %v1753_v21 = vadd.f32 %v5676_v55, %v7390_v42  ;;  %v5825_v55 = vpop.f32.mrf.mxu1  ;;  %v2614_v7 = vld [vmem:[%s7148_s2 + $0x10] sm:$0xff] }
 0x287   : > { %v2033_v22 = vadd.f32 %v5691_v44, %v1754_v3 }
 0x288   : > { %v2592_v52 = vadd.f32 %v2520_v20, %v2314_v34  ;;  %v2032_v51 = vadd.f32 %v5679_v49, %v1753_v21 }
 0x289   : > { %v2311_v61 = vadd.f32 %v5750_v5, %v2033_v22 }
 0x28a   : > { %v2529_v2 = vpop.f32.mrf.mxu0  ;;  %4291 = vmatmul.msk.f32.gmra.mxu3 %vm238_vm1, %v4257_v63  ;;  %v2310_v12 = vadd.f32 %v5742_v1, %v2032_v51 }
 0x28b   : > { %v2589_v49 = vadd.f32 %v5745_v60, %v2311_v61 }
 0x28c   : > { %v2588_v6 = vadd.f32 %v5737_v23, %v2310_v12  ;;  %v2628_v12 = vld [vmem:[%s7148_s2 + $0x80] sm:$0xff] }
 0x28d   : > { %4357 = vmatmul.msk.f32.gmra.mxu0 %vm238_vm1, %v4323_v4  ;;  %v2251_v45 = vpop.f32.mrf.mxu3 }
 0x28e   : > { %v2317_v33 = vadd.f32 %v2251_v45, %v2039_v15  ;;  %v2594_v45 = vadd.f32 %v2526_v17, %v2316_v53  ;;  %v2312_v53 = vadd.f32 %v5758_v39, %v2034_v32  ;;  %v5829_v39 = vpop.f32.mrf.mxu2  ;;  %v5839_v1 = vpop.f32.mrf.mxu1 }
 0x290   : > { %v2595_v4 = vadd.f32 %v2529_v2, %v2317_v33  ;;  %v2593_v33 = vadd.f32 %v2523_v36, %v2315_v59  ;;  %v2590_v44 = vadd.f32 %v5753_v38, %v2312_v53  ;;  %v2626_v53 = vld [vmem:[%s7148_s2 + $0x70] sm:$0xff] }
 0x292   : > { %v5804_v63 = vpop.f32.mrf.mxu0  ;;  %2868 = vmatpush.msra.mxu1 %v2595_v4  ;;  %4362 = vmatpush.msrb.mxu3 %v2595_v4 }
 0x293   : > { %7386 = vst [vmem:[#allocation14_spill] sm:$0xff] %v5804_v63 }
 0x294   : > { %2869 = vmatpush.msra.mxu1 %v2594_v45  ;;  %4363 = vmatpush.msrb.mxu3 %v2594_v45  ;;  %v2622_v45 = vld [vmem:[%s7148_s2 + $0x50] sm:$0xff] }
 0x295   : > { %v5816_v2 = vpop.f32.mrf.mxu3 }
 0x296   : > { %7391 = vst [vmem:[#allocation61_spill] sm:$0xff] %v5816_v2  ;;  %2870 = vmatpush.msra.mxu1 %v2593_v33  ;;  %4364 = vmatpush.msrb.mxu3 %v2593_v33  ;;  %v5843_v60 = vpop.f32.mrf.mxu2 }
 0x298   : > { %2871 = vmatpush.msra.mxu1 %v2592_v52  ;;  %4365 = vmatpush.msrb.mxu3 %v2592_v52 }
 0x29a   : > { %v5823_v36 = vpop.f32.mrf.mxu0  ;;  %2872 = vmatpush.msra.mxu1 %v2591_v56  ;;  %4366 = vmatpush.msrb.mxu3 %v2591_v56 }
 0x29b   : > { %7392 = vst [vmem:[#allocation64_spill] sm:$0xff] %v5823_v36 }
 0x29c   : > { %2873 = vmatpush.msra.mxu1 %v2590_v44  ;;  %4367 = vmatpush.msrb.mxu3 %v2590_v44 }
 0x29d   : > { %v5832_v5 = vpop.f32.mrf.mxu3 }
 0x29e   : > { %7393 = vst [vmem:[#allocation62_spill] sm:$0xff] %v5832_v5  ;;  %2874 = vmatpush.msra.mxu1 %v2589_v49  ;;  %4368 = vmatpush.msrb.mxu3 %v2589_v49 }
 0x2a0   : > { %2875 = vmatpush.msra.mxu1 %v2588_v6  ;;  %4369 = vmatpush.msrb.mxu3 %v2588_v6 }
 0x2a2   : > { %v5835_v20 = vpop.f32.mrf.mxu0  ;;  %2876 = vmatpush.msra.mxu1 %v5735_v0  ;;  %4370 = vmatpush.msrb.mxu3 %v5735_v0 }
 0x2a3   : > { %7394 = vst [vmem:[#allocation16_spill] sm:$0xff] %v5835_v20 }
 0x2a4   : > { %2877 = vmatpush.msra.mxu1 %v5724_v8  ;;  %4371 = vmatpush.msrb.mxu3 %v5724_v8  ;;  %v5857_v8 = vpop.f32.mrf.mxu1 }
 0x2a5   : > { %v5845_v38 = vpop.f32.mrf.mxu3 }
 0x2a6   : > { %7395 = vst [vmem:[#allocation15_spill] sm:$0xff] %v5845_v38  ;;  %2878 = vmatpush.msra.mxu1 %v5715_v57  ;;  %4372 = vmatpush.msrb.mxu3 %v5715_v57  ;;  %v5866_v57 = vpop.f32.mrf.mxu2 }
 0x2a8   : > { %2879 = vmatpush.msra.mxu1 %v5706_v27  ;;  %4373 = vmatpush.msrb.mxu3 %v5706_v27  ;;  %v2612_v27 = vld [vmem:[%s7148_s2] sm:$0xff] }
 0x2aa   : > { %v5851_v23 = vpop.f32.mrf.mxu0  ;;  %2880 = vmatpush.msra.mxu1 %v5695_v47  ;;  %4374 = vmatpush.msrb.mxu3 %v5695_v47 }
 0x2ab   : > { %7396 = vst [vmem:[#allocation66_spill] sm:$0xff] %v5851_v23 }
 0x2ac   : > { %2881 = vmatpush.msra.mxu1 %v5684_v25  ;;  %4375 = vmatpush.msrb.mxu3 %v5684_v25 }
 0x2ad   : > { %v5859_v0 = vpop.f32.mrf.mxu3 }
 0x2ae   : > { %7397 = vst [vmem:[#allocation69_spill] sm:$0xff] %v5859_v0  ;;  %2882 = vmatpush.msra.mxu1 %v5673_v50  ;;  %4376 = vmatpush.msrb.mxu3 %v5673_v50  ;;  %v5877_v50 = vpop.f32.mrf.mxu1  ;;  %v5881_v30 = vpop.f32.mrf.mxu2 }
 0x2b0   : > { %2883 = vmatpush.msra.mxu1 %v5666_v41  ;;  %4377 = vmatpush.msrb.mxu3 %v5666_v41  ;;  %v2616_v41 = vld [vmem:[%s7148_s2 + $0x20] sm:$0xff] }
 0x2b1   : > { %2884 = vmatmul.f32.vlgmr.msra.gmra.mxu1 %v2612_v27 }
 0x2b2   : > { %v5870_v47 = vpop.f32.mrf.mxu0 }
 0x2b3   : > { %7398 = vst [vmem:[#allocation67_spill] sm:$0xff] %v5870_v47 }
 0x2b5   : > { %v5872_v25 = vpop.f32.mrf.mxu3 }
 0x2b6   : > { %7399 = vst [vmem:[#allocation18_spill] sm:$0xff] %v5872_v25  ;;  %v5890_v31 = vpop.f32.mrf.mxu1  ;;  %v5892_v43 = vpop.f32.mrf.mxu2 }
 0x2b9   : > { %2887 = vmatmul.f32.gmra.mxu1 %v2614_v7  ;;  %v2630_v7 = vld [vmem:[%s7148_s2 + $0x90] sm:$0xff] }
 0x2ba   : > { %v5879_v17 = vpop.f32.mrf.mxu0 }
 0x2bb   : > { %7400 = vst [vmem:[#allocation17_spill] sm:$0xff] %v5879_v17 }
 0x2bd   : > { %v5883_v26 = vpop.f32.mrf.mxu3 }
 0x2be   : > { %v5901_v14 = vpop.f32.mrf.mxu1  ;;  %v5903_v59 = vpop.f32.mrf.mxu2 }
 0x2c1   : > { %2890 = vmatmul.f32.gmra.mxu1 %v2616_v41 }
 0x2c2   : > { %v5888_v19 = vpop.f32.mrf.mxu0 }
 0x2c3   : > { %7401 = vst [vmem:[#allocation71_spill] sm:$0xff] %v5888_v19 }
 0x2c5   : > { %v5894_v15 = vpop.f32.mrf.mxu3 }
 0x2c6   : > { %v1727_v46 = vpop.f32.mrf.mxu1  ;;  %v2006_v10 = vpop.f32.mrf.mxu2 }
 0x2c9   : > { %2893 = vmatmul.f32.gmra.mxu1 %v2618_v29 }
 0x2ca   : > { %v5899_v48 = vpop.f32.mrf.mxu0 }
 0x2cd   : > { %v5905_v4 = vpop.f32.mrf.mxu3 }
 0x2ce   : > { %v1730_v33 = vpop.f32.mrf.mxu1  ;;  %v2009_v21 = vpop.f32.mrf.mxu2 }
 0x2d1   : > { %2896 = vmatmul.f32.gmra.mxu1 %v2620_v9 }
 0x2d2   : > { %v5910_v13 = vpop.f32.mrf.mxu0 }
 0x2d5   : > { %v5912_v34 = vpop.f32.mrf.mxu3 }
 0x2d6   : > { %v1733_v51 = vpop.f32.mrf.mxu1  ;;  %v2012_v61 = vpop.f32.mrf.mxu2 }
 0x2d9   : > { %2899 = vmatmul.f32.gmra.mxu1 %v2622_v45  ;;  %v2632_v45 = vld [vmem:[%s7148_s2 + $0xa0] sm:$0xff] }
 0x2da   : > { %v5917_v3 = vpop.f32.mrf.mxu0 }
 0x2dd   : > { %v5919_v32 = vpop.f32.mrf.mxu3 }
 0x2de   : > { %v1736_v49 = vpop.f32.mrf.mxu1  ;;  %v2015_v6 = vpop.f32.mrf.mxu2 }
 0x2df   : > { %v1774_v23 = vadd.f32 %v1736_v49, %v5630_v24  ;;  %v1771_v24 = vadd.f32 %v1727_v46, %v5588_v62 }
 0x2e1   : > { %2902 = vmatmul.f32.gmra.mxu1 %v2624_v37  ;;  %v2053_v0 = vadd.f32 %v2015_v6, %v1774_v23 }
 0x2e2   : > { %v5924_v42 = vpop.f32.mrf.mxu0 }
 0x2e5   : > { %v2284_v22 = vpop.f32.mrf.mxu3 }
 0x2e6   : > { %v1739_v29 = vpop.f32.mrf.mxu1  ;;  %v2018_v37 = vpop.f32.mrf.mxu2 }
 0x2e9   : > { %2905 = vmatmul.f32.gmra.mxu1 %v2626_v53 }
 0x2ea   : > { %v5929_v52 = vpop.f32.mrf.mxu0 }
 0x2ed   : > { %v2287_v56 = vpop.f32.mrf.mxu3 }
 0x2ee   : > { %v1742_v36 = vpop.f32.mrf.mxu1  ;;  %v2021_v20 = vpop.f32.mrf.mxu2 }
 0x2ef   : > { %v1776_v2 = vadd.f32 %v1742_v36, %v5659_v54 }
 0x2f1   : > { %2908 = vmatmul.f32.gmra.mxu1 %v2628_v12  ;;  %v2634_v12 = vld [vmem:[%s7148_s2 + $0xb0] sm:$0xff]  ;;  %v2055_v47 = vadd.f32 %v2021_v20, %v1776_v2 }
 0x2f2   : > { %v2568_v44 = vpop.f32.mrf.mxu0 }
 0x2f5   : > { %v2290_v27 = vpop.f32.mrf.mxu3 }
 0x2f9   : > { %2911 = vmatmul.f32.gmra.mxu1 %v2630_v7  ;;  %v1775_v7 = vadd.f32 %v1739_v29, %v5646_v35 }
 0x2fa   : > { %v2571_v41 = vpop.f32.mrf.mxu0 }
 0x2fb   : > { %v2054_v5 = vadd.f32 %v2018_v37, %v1775_v7  ;;  %v7418_v7 = vld [vmem:[#allocation52_spill] sm:$0xff] }
 0x2fd   : > { %v2293_v9 = vpop.f32.mrf.mxu3 }
 0x2fe   : > { %v2331_v29 = vadd.f32 %v2293_v9, %v2053_v0  ;;  %v2638_v0 = vld [vmem:[%s7148_s2 + $0xd0] sm:$0xff]  ;;  %v7416_v9 = vld [vmem:[#allocation17_spill] sm:$0xff] }
 0x301   : > { %2914 = vmatmul.f32.gmra.mxu1 %v2632_v45  ;;  %v1773_v45 = vadd.f32 %v1733_v51, %v5614_v40  ;;  %v1770_v40 = vadd.f32 %v5901_v14, %v5575_v18 }
 0x302   : > { %v2574_v53 = vpop.f32.mrf.mxu0 }
 0x303   : > { %v2052_v35 = vadd.f32 %v2012_v61, %v1773_v45  ;;  %v2049_v23 = vadd.f32 %v5903_v59, %v1770_v40  ;;  %v7410_v61 = vld [vmem:[#allocation18_spill] sm:$0xff] }
 0x305   : > { %v2296_v63 = vpop.f32.mrf.mxu3  ;;  %v2330_v36 = vadd.f32 %v2290_v27, %v2052_v35 }
 0x306   : > { %v2332_v19 = vadd.f32 %v2296_v63, %v2054_v5  ;;  %v2050_v63 = vadd.f32 %v2006_v10, %v1771_v24  ;;  %v7421_v24 = vld [vmem:[#allocation67_spill] sm:$0xff] }
 0x308   : > { %v2610_v20 = vadd.f32 %v2574_v53, %v2332_v19  ;;  %v2328_v62 = vadd.f32 %v2284_v22, %v2050_v63  ;;  %v7417_v53 = vld [vmem:[#allocation7_spill] sm:$0xff]  ;;  %v7423_v63 = vld [vmem:[#allocation62_spill] sm:$0xff] }
 0x309   : > { %2917 = vmatmul.f32.gmra.mxu1 %v2634_v12  ;;  %v1772_v12 = vadd.f32 %v1730_v33, %v5601_v16  ;;  %v1769_v16 = vadd.f32 %v5890_v31, %v5562_v58  ;;  %v7403_v58 = vld [vmem:[#allocation51_spill] sm:$0xff]  ;;  %v1761_v45 = vadd.f32 %v7418_v7, %v7417_v53  ;;  %v2664_v7 = vld [vmem:[%s7148_s2 + $0x1a0] sm:$0xff] }
 0x30a   : > { %v2577_v17 = vpop.f32.mrf.mxu0  ;;  %v1767_v31 = vadd.f32 %v5857_v8, %v7403_v58  ;;  %v2606_v46 = vadd.f32 %v5924_v42, %v2328_v62  ;;  %v7405_v8 = vld [vmem:[#allocation10_spill] sm:$0xff] }
 0x30b   : > { %v2051_v2 = vadd.f32 %v2009_v21, %v1772_v12  ;;  %v7419_v12 = vld [vmem:[#allocation56_spill] sm:$0xff]  ;;  %v2644_v58 = vld [vmem:[%s7148_s2 + $0x100] sm:$0xff] }
 0x30c   : > { %v2046_v10 = vadd.f32 %v5866_v57, %v1767_v31  ;;  %v7406_v57 = vld [vmem:[#allocation47_spill] sm:$0xff] }
 0x30d   : > { %v2299_v38 = vpop.f32.mrf.mxu3  ;;  %v2329_v5 = vadd.f32 %v2287_v56, %v2051_v2  ;;  %v2725_v31 = vld [vmem:[%s7148_s2 + $0x388] sm:$0xff] }
 0x30e   : > { %v2333_v25 = vadd.f32 %v2299_v38, %v2055_v47  ;;  %v2609_v38 = vadd.f32 %v2571_v41, %v2331_v29  ;;  %v7402_v47 = vld [vmem:[#allocation54_spill] sm:$0xff]  ;;  %v2324_v42 = vadd.f32 %v5894_v15, %v2046_v10  ;;  %v7408_v15 = vld [vmem:[#allocation59_spill] sm:$0xff] }
 0x30f   : > { %v1768_v18 = vadd.f32 %v5877_v50, %v7402_v47  ;;  %v2607_v19 = vadd.f32 %v5929_v52, %v2329_v5  ;;  %v7404_v50 = vld [vmem:[#allocation9_spill] sm:$0xff]  ;;  %v7420_v29 = vld [vmem:[#allocation15_spill] sm:$0xff]  ;;  %v7427_v47 = vld [vmem:[#allocation64_spill] sm:$0xff] }
 0x310   : > { %v2611_v54 = vadd.f32 %v2577_v17, %v2333_v25  ;;  %v2048_v25 = vadd.f32 %v5892_v43, %v1769_v16  ;;  %v2327_v17 = vadd.f32 %v5919_v32, %v2049_v23  ;;  %v1766_v43 = vadd.f32 %v5839_v1, %v7404_v50  ;;  %v2640_v1 = vld [vmem:[%s7148_s2 + $0xe0] sm:$0xff]  ;;  %v7409_v52 = vld [vmem:[#allocation13_spill] sm:$0xff] }
 0x311   : > { %2920 = vmatmul.f32.gmra.mxu1 %v2636_v28  ;;  %v2608_v28 = vadd.f32 %v2568_v44, %v2330_v36  ;;  %v2047_v14 = vadd.f32 %v5881_v30, %v1768_v18  ;;  %v1765_v30 = vadd.f32 %v5825_v55, %v7405_v8  ;;  %v7411_v44 = vld [vmem:[#allocation71_spill] sm:$0xff]  ;;  %v2642_v36 = vld [vmem:[%s7148_s2 + $0xf0] sm:$0xff]  ;;  %v7425_v23 = vld [vmem:[#allocation61_spill] sm:$0xff] }
 0x312   : > { %3269 = vmatpush.msrb.mxu0 %v2611_v54  ;;  %4378 = vmatpush.msra.mxu2 %v2611_v54  ;;  %v2326_v59 = vadd.f32 %v5912_v34, %v2048_v25  ;;  %v2605_v33 = vadd.f32 %v5917_v3, %v2327_v17  ;;  %v2045_v34 = vadd.f32 %v5843_v60, %v1766_v43  ;;  %v7407_v60 = vld [vmem:[#allocation49_spill] sm:$0xff]  ;;  %v7428_v25 = vld [vmem:[#allocation14_spill] sm:$0xff]  ;;  %v2617_v8 = vld [vmem:[%s7148_s2 + $0x28] sm:$0xff] }
 0x313   : > { %v2325_v32 = vadd.f32 %v5905_v4, %v2047_v14  ;;  %v1764_v4 = vadd.f32 %v5799_v11, %v7406_v57  ;;  %v2044_v3 = vadd.f32 %v5829_v39, %v1765_v30  ;;  %v2602_v49 = vadd.f32 %v7411_v44, %v2324_v42  ;;  %v7412_v11 = vld [vmem:[#allocation46_spill] sm:$0xff]  ;;  %v7413_v39 = vld [vmem:[#allocation11_spill] sm:$0xff]  ;;  %v2727_v50 = vld [vmem:[%s7148_s2 + $0x398] sm:$0xff] }
 0x314   : > { %3270 = vmatpush.msrb.mxu0 %v2610_v20  ;;  %4379 = vmatpush.msra.mxu2 %v2610_v20  ;;  %v2604_v21 = vadd.f32 %v5910_v13, %v2326_v59  ;;  %v2323_v22 = vadd.f32 %v5883_v26, %v2045_v34  ;;  %v1763_v13 = vadd.f32 %v7408_v15, %v7407_v60  ;;  %v7414_v26 = vld [vmem:[#allocation57_spill] sm:$0xff]  ;;  %v7422_v20 = vld [vmem:[#allocation12_spill] sm:$0xff]  ;;  %v2613_v14 = vld [vmem:[%s7148_s2 + $0x8] sm:$0xff] }
 0x315   : > { %v2603_v55 = vadd.f32 %v5899_v48, %v2325_v32  ;;  %v2043_v51 = vadd.f32 %v7409_v52, %v1764_v4  ;;  %v2322_v56 = vadd.f32 %v7410_v61, %v2044_v3  ;;  %v1762_v6 = vadd.f32 %v7413_v39, %v7412_v11  ;;  %v7415_v48 = vld [vmem:[#allocation69_spill] sm:$0xff]  ;;  %v2648_v32 = vld [vmem:[%s7148_s2 + $0x120] sm:$0xff]  ;;  %v2650_v34 = vld [vmem:[%s7148_s2 + $0x130] sm:$0xff] }
 0x316   : > { %3271 = vmatpush.msrb.mxu0 %v2609_v38  ;;  %4380 = vmatpush.msra.mxu2 %v2609_v38  ;;  %v2042_v27 = vadd.f32 %v7414_v26, %v1763_v13  ;;  %v2601_v37 = vadd.f32 %v7416_v9, %v2323_v22  ;;  %v2040_v40 = vadd.f32 %v7422_v20, %v1761_v45  ;;  %v7424_v38 = vld [vmem:[#allocation66_spill] sm:$0xff]  ;;  %v2615_v43 = vld [vmem:[%s7148_s2 + $0x18] sm:$0xff]  ;;  %v2733_v4 = vld [vmem:[%s7148_s2 + $0x3c8] sm:$0xff] }
 0x317   : > { %v2321_v41 = vadd.f32 %v7415_v48, %v2043_v51  ;;  %v2041_v35 = vadd.f32 %v7419_v12, %v1762_v6  ;;  %v2600_v2 = vadd.f32 %v7421_v24, %v2322_v56  ;;  %v2731_v42 = vld [vmem:[%s7148_s2 + $0x3b8] sm:$0xff]  ;;  %v2652_v57 = vld [vmem:[%s7148_s2 + $0x140] sm:$0xff]  ;;  %v2621_v3 = vld [vmem:[%s7148_s2 + $0x48] sm:$0xff] }
 0x318   : > { %3272 = vmatpush.msrb.mxu0 %v2608_v28  ;;  %4381 = vmatpush.msra.mxu2 %v2608_v28  ;;  %v2320_v54 = vadd.f32 %v7420_v29, %v2042_v27  ;;  %v2318_v62 = vadd.f32 %v7425_v23, %v2040_v40  ;;  %v7426_v28 = vld [vmem:[#allocation16_spill] sm:$0xff]  ;;  %v2735_v60 = vld [vmem:[%s7148_s2 + $0x3d8] sm:$0xff]  ;;  %v2656_v52 = vld [vmem:[%s7148_s2 + $0x160] sm:$0xff] }
 0x319   : > { %2923 = vmatmul.f32.gmra.mxu1 %v2638_v0  ;;  %v2319_v5 = vadd.f32 %v7423_v63, %v2041_v35  ;;  %v2599_v16 = vadd.f32 %v7424_v38, %v2321_v41  ;;  %v2623_v15 = vld [vmem:[%s7148_s2 + $0x58] sm:$0xff]  ;;  %v2737_v51 = vld [vmem:[%s7148_s2 + $0x3e8] sm:$0xff]  ;;  %v2658_v44 = vld [vmem:[%s7148_s2 + $0x170] sm:$0xff] }
 0x31a   : > { %3273 = vmatpush.msrb.mxu0 %v2607_v19  ;;  %4382 = vmatpush.msra.mxu2 %v2607_v19  ;;  %v2598_v0 = vadd.f32 %v7426_v28, %v2320_v54  ;;  %v2596_v17 = vadd.f32 %v7428_v25, %v2318_v62  ;;  %v2625_v61 = vld [vmem:[%s7148_s2 + $0x68] sm:$0xff]  ;;  %v2627_v11 = vld [vmem:[%s7148_s2 + $0x78] sm:$0xff]  ;;  %v2660_v6 = vld [vmem:[%s7148_s2 + $0x180] sm:$0xff] }
 0x31b   : > { %v2597_v18 = vadd.f32 %v7427_v47, %v2319_v5  ;;  %v2741_v26 = vld [vmem:[%s7148_s2 + $0x408] sm:$0xff]  ;;  %v2662_v41 = vld [vmem:[%s7148_s2 + $0x190] sm:$0xff]  ;;  %v2743_v9 = vld [vmem:[%s7148_s2 + $0x418] sm:$0xff] }
 0x31c   : > { %3274 = vmatpush.msrb.mxu0 %v2606_v46  ;;  %4383 = vmatpush.msra.mxu2 %v2606_v46  ;;  %v2646_v46 = vld [vmem:[%s7148_s2 + $0x110] sm:$0xff]  ;;  %v2629_v27 = vld [vmem:[%s7148_s2 + $0x88] sm:$0xff]  ;;  %v2747_v54 = vld [vmem:[%s7148_s2 + $0x438] sm:$0xff] }
 0x31d   : > { %v2745_v45 = vld [vmem:[%s7148_s2 + $0x428] sm:$0xff]  ;;  %v2666_v29 = vld [vmem:[%s7148_s2 + $0x1b0] sm:$0xff]  ;;  %v2635_v24 = vld [vmem:[%s7148_s2 + $0xb8] sm:$0xff] }
 0x31e   : > { %3275 = vmatpush.msrb.mxu0 %v2605_v33  ;;  %4384 = vmatpush.msra.mxu2 %v2605_v33  ;;  %v2729_v33 = vld [vmem:[%s7148_s2 + $0x3a8] sm:$0xff]  ;;  %v2756_v63 = vld [vmem:[%s7148_s2 + $0x480] sm:$0xff]  ;;  %v2670_v38 = vld [vmem:[%s7148_s2 + $0x1d0] sm:$0xff] }
 0x31f   : > { %v2633_v12 = vld [vmem:[%s7148_s2 + $0xa8] sm:$0xff]  ;;  %3100 = vmatmul.f32.vlgmr.msrb.gmra.mxu3 %v2756_v63  ;;  %v2639_v23 = vld [vmem:[%s7148_s2 + $0xd8] sm:$0xff]  ;;  %v2758_v62 = vld [vmem:[%s7148_s2 + $0x490] sm:$0xff] }
 0x320   : > { %3276 = vmatpush.msrb.mxu0 %v2604_v21  ;;  %4385 = vmatpush.msra.mxu2 %v2604_v21  ;;  %v2619_v21 = vld [vmem:[%s7148_s2 + $0x38] sm:$0xff]  ;;  %v2749_v20 = vld [vmem:[%s7148_s2 + $0x448] sm:$0xff]  ;;  %v2760_v25 = vld [vmem:[%s7148_s2 + $0x4a0] sm:$0xff] }
 0x321   : > { %2926 = vmatmul.f32.gmra.mxu1 %v2640_v1  ;;  %v2637_v40 = vld [vmem:[%s7148_s2 + $0xc8] sm:$0xff] }
 0x322   : > { %3277 = vmatpush.msrb.mxu0 %v2603_v55  ;;  %4386 = vmatpush.msra.mxu2 %v2603_v55  ;;  %v2654_v55 = vld [vmem:[%s7148_s2 + $0x150] sm:$0xff]  ;;  %v2753_v47 = vld [vmem:[%s7148_s2 + $0x468] sm:$0xff] }
 0x324   : > { %3278 = vmatpush.msrb.mxu0 %v2602_v49  ;;  %4387 = vmatpush.msra.mxu2 %v2602_v49  ;;  %v2739_v49 = vld [vmem:[%s7148_s2 + $0x3f8] sm:$0xff] }
 0x326   : > { %3279 = vmatpush.msrb.mxu0 %v2601_v37  ;;  %4388 = vmatpush.msra.mxu2 %v2601_v37  ;;  %v2631_v37 = vld [vmem:[%s7148_s2 + $0x98] sm:$0xff] }
 0x327   : > { %3103 = vmatmul.f32.gmra.mxu3 %v2758_v62  ;;  %v2655_v62 = vld [vmem:[%s7148_s2 + $0x158] sm:$0xff] }
 0x328   : > { %3280 = vmatpush.msrb.mxu0 %v2600_v2  ;;  %4389 = vmatpush.msra.mxu2 %v2600_v2 }
 0x329   : > { %2929 = vmatmul.f32.gmra.mxu1 %v2642_v36  ;;  %v2668_v36 = vld [vmem:[%s7148_s2 + $0x1c0] sm:$0xff] }
 0x32a   : > { %3281 = vmatpush.msrb.mxu0 %v2599_v16  ;;  %4390 = vmatpush.msra.mxu2 %v2599_v16  ;;  %v2751_v16 = vld [vmem:[%s7148_s2 + $0x458] sm:$0xff] }
 0x32c   : > { %3282 = vmatpush.msrb.mxu0 %v2598_v0  ;;  %4391 = vmatpush.msra.mxu2 %v2598_v0  ;;  %v2672_v0 = vld [vmem:[%s7148_s2 + $0x1e0] sm:$0xff] }
 0x32e   : > { %v6013_v19 = vpop.f32.mrf.mxu1  ;;  %3283 = vmatpush.msrb.mxu0 %v2597_v18  ;;  %4392 = vmatpush.msra.mxu2 %v2597_v18  ;;  %v2641_v18 = vld [vmem:[%s7148_s2 + $0xe8] sm:$0xff] }
 0x32f   : > { %3106 = vmatmul.f32.gmra.mxu3 %v2760_v25 }
 0x330   : > { %3284 = vmatpush.msrb.mxu0 %v2596_v17  ;;  %4393 = vmatpush.msra.mxu2 %v2596_v17 }
 0x331   : > { %2932 = vmatmul.f32.gmra.mxu1 %v2644_v58  ;;  %3453 = vmatmul.f32.vlgmr.msra.gmra.mxu2 %v2725_v31  ;;  %v2674_v58 = vld [vmem:[%s7148_s2 + $0x1f0] sm:$0xff]  ;;  %v2755_v31 = vld [vmem:[%s7148_s2 + $0x478] sm:$0xff] }
 0x332   : > { %3285 = vmatmul.f32.vlgmr.msrb.gmra.mxu0 %v2613_v14  ;;  %v2643_v14 = vld [vmem:[%s7148_s2 + $0xf8] sm:$0xff] }
 0x336   : > { %v6024_v59 = vpop.f32.mrf.mxu1 }
 0x339   : > { %2935 = vmatmul.f32.gmra.mxu1 %v2646_v46  ;;  %3456 = vmatmul.f32.gmra.mxu2 %v2727_v50  ;;  %v2762_v46 = vld [vmem:[%s7148_s2 + $0x4b0] sm:$0xff] }
 0x33a   : > { %3288 = vmatmul.f32.gmra.mxu0 %v2615_v43  ;;  %3109 = vmatmul.f32.gmra.mxu3 %v2762_v46  ;;  %v2676_v43 = vld [vmem:[%s7148_s2 + $0x200] sm:$0xff] }
 0x33e   : > { %v6035_v10 = vpop.f32.mrf.mxu1 }
 0x341   : > { %2938 = vmatmul.f32.gmra.mxu1 %v2648_v32  ;;  %3459 = vmatmul.f32.gmra.mxu2 %v2729_v33  ;;  %v2757_v32 = vld [vmem:[%s7148_s2 + $0x488] sm:$0xff] }
 0x342   : > { %3291 = vmatmul.f32.gmra.mxu0 %v2617_v8  ;;  %v2645_v8 = vld [vmem:[%s7148_s2 + $0x108] sm:$0xff] }
 0x346   : > { %v6046_v30 = vpop.f32.mrf.mxu1 }
 0x349   : > { %2941 = vmatmul.f32.gmra.mxu1 %v2650_v34  ;;  %3462 = vmatmul.f32.gmra.mxu2 %v2731_v42  ;;  %v2764_v42 = vld [vmem:[%s7148_s2 + $0x4c0] sm:$0xff] }
 0x34a   : > { %3294 = vmatmul.f32.gmra.mxu0 %v2619_v21  ;;  %3112 = vmatmul.f32.gmra.mxu3 %v2764_v42  ;;  %v2659_v42 = vld [vmem:[%s7148_s2 + $0x178] sm:$0xff] }
 0x34e   : > { %v6057_v1 = vpop.f32.mrf.mxu1 }
 0x351   : > { %2944 = vmatmul.f32.gmra.mxu1 %v2652_v57  ;;  %3465 = vmatmul.f32.gmra.mxu2 %v2733_v4  ;;  %v2678_v4 = vld [vmem:[%s7148_s2 + $0x210] sm:$0xff] }
 0x352   : > { %3297 = vmatmul.f32.gmra.mxu0 %v2621_v3 }
 0x356   : > { %v6068_v22 = vpop.f32.mrf.mxu1 }
 0x359   : > { %2947 = vmatmul.f32.gmra.mxu1 %v2654_v55  ;;  %3468 = vmatmul.f32.gmra.mxu2 %v2735_v60  ;;  %v2647_v55 = vld [vmem:[%s7148_s2 + $0x118] sm:$0xff] }
 0x35a   : > { %3300 = vmatmul.f32.gmra.mxu0 %v2623_v15  ;;  %v2766_v15 = vld [vmem:[%s7148_s2 + $0x4d0] sm:$0xff] }
 0x35b   : > { %3115 = vmatmul.f32.gmra.mxu3 %v2766_v15 }
 0x35e   : > { %v6079_v13 = vpop.f32.mrf.mxu1 }
 0x361   : > { %2950 = vmatmul.f32.gmra.mxu1 %v2656_v52  ;;  %3471 = vmatmul.f32.gmra.mxu2 %v2737_v51 }
 0x362   : > { %3303 = vmatmul.f32.gmra.mxu0 %v2625_v61  ;;  %v2680_v61 = vld [vmem:[%s7148_s2 + $0x220] sm:$0xff] }
 0x366   : > { %v6090_v56 = vpop.f32.mrf.mxu1 }
 0x369   : > { %2953 = vmatmul.f32.gmra.mxu1 %v2658_v44  ;;  %3474 = vmatmul.f32.gmra.mxu2 %v2739_v49  ;;  %v2649_v49 = vld [vmem:[%s7148_s2 + $0x128] sm:$0xff] }
 0x36a   : > { %3306 = vmatmul.f32.gmra.mxu0 %v2627_v11 }
 0x36e   : > { %v6101_v39 = vpop.f32.mrf.mxu1 }
 0x371   : > { %2956 = vmatmul.f32.gmra.mxu1 %v2660_v6  ;;  %3477 = vmatmul.f32.gmra.mxu2 %v2741_v26  ;;  %v2768_v6 = vld [vmem:[%s7148_s2 + $0x4e0] sm:$0xff] }
 0x372   : > { %3309 = vmatmul.f32.gmra.mxu0 %v2629_v27  ;;  %3118 = vmatmul.f32.gmra.mxu3 %v2768_v6  ;;  %v2694_v6 = vld [vmem:[%s7148_s2 + $0x290] sm:$0xff] }
 0x376   : > { %v6112_v48 = vpop.f32.mrf.mxu1 }
 0x379   : > { %2959 = vmatmul.f32.gmra.mxu1 %v2662_v41  ;;  %3480 = vmatmul.f32.gmra.mxu2 %v2743_v9  ;;  %v2682_v41 = vld [vmem:[%s7148_s2 + $0x230] sm:$0xff] }
 0x37a   : > { %3312 = vmatmul.f32.gmra.mxu0 %v2631_v37  ;;  %v2651_v37 = vld [vmem:[%s7148_s2 + $0x138] sm:$0xff] }
 0x37e   : > { %v6123_v53 = vpop.f32.mrf.mxu1 }
 0x381   : > { %2962 = vmatmul.f32.gmra.mxu1 %v2664_v7  ;;  %3483 = vmatmul.f32.gmra.mxu2 %v2745_v45  ;;  %v2770_v45 = vld [vmem:[%s7148_s2 + $0x4f0] sm:$0xff] }
 0x382   : > { %3315 = vmatmul.f32.gmra.mxu0 %v2633_v12  ;;  %3121 = vmatmul.f32.gmra.mxu3 %v2770_v45 }
 0x386   : > { %v6134_v35 = vpop.f32.mrf.mxu1 }
 0x389   : > { %2965 = vmatmul.f32.gmra.mxu1 %v2666_v29  ;;  %3486 = vmatmul.f32.gmra.mxu2 %v2747_v54  ;;  %v2684_v54 = vld [vmem:[%s7148_s2 + $0x240] sm:$0xff] }
 0x38a   : > { %3318 = vmatmul.f32.gmra.mxu0 %v2635_v24 }
 0x38e   : > { %v6145_v2 = vpop.f32.mrf.mxu1 }
 0x391   : > { %2968 = vmatmul.f32.gmra.mxu1 %v2668_v36  ;;  %3489 = vmatmul.f32.gmra.mxu2 %v2749_v20  ;;  %v2653_v36 = vld [vmem:[%s7148_s2 + $0x148] sm:$0xff] }
 0x392   : > { %3321 = vmatmul.f32.gmra.mxu0 %v2637_v40  ;;  %v2772_v40 = vld [vmem:[%s7148_s2 + $0x500] sm:$0xff] }
 0x393   : > { %3124 = vmatmul.f32.gmra.mxu3 %v2772_v40 }
 0x396   : > { %v6159_v5 = vpop.f32.mrf.mxu1 }
 0x399   : > { %2971 = vmatmul.f32.gmra.mxu1 %v2670_v38  ;;  %3492 = vmatmul.f32.gmra.mxu2 %v2751_v16  ;;  %v2686_v16 = vld [vmem:[%s7148_s2 + $0x250] sm:$0xff] }
 0x39a   : > { %3324 = vmatmul.f32.gmra.mxu0 %v2639_v23 }
 0x39e   : > { %v6173_v28 = vpop.f32.mrf.mxu1 }
 0x3a1   : > { %2974 = vmatmul.f32.gmra.mxu1 %v2672_v0  ;;  %3495 = vmatmul.f32.gmra.mxu2 %v2753_v47  ;;  %v2774_v47 = vld [vmem:[%s7148_s2 + $0x510] sm:$0xff] }
 0x3a2   : > { %3327 = vmatmul.f32.gmra.mxu0 %v2641_v18  ;;  %3127 = vmatmul.f32.gmra.mxu3 %v2774_v47  ;;  %v2786_v47 = vld [vmem:[%s7148_s2 + $0x570] sm:$0xff] }
 0x3a6   : > { %v6187_v17 = vpop.f32.mrf.mxu1 }
 0x3a9   : > { %2977 = vmatmul.f32.gmra.mxu1 %v2674_v58  ;;  %3498 = vmatmul.f32.gmra.mxu2 %v2755_v31  ;;  %v2688_v58 = vld [vmem:[%s7148_s2 + $0x260] sm:$0xff] }
 0x3aa   : > { %3330 = vmatmul.f32.gmra.mxu0 %v2643_v14  ;;  %v2657_v14 = vld [vmem:[%s7148_s2 + $0x168] sm:$0xff] }
 0x3ae   : > { %v6202_v50 = vpop.f32.mrf.mxu1 }
 0x3af   : > { %v3286_v33 = vpop.f32.mrf.mxu0 }
 0x3b0   : > { %v3287_v34 = vadd.f32 %v3286_v33, %v6013_v19  ;;  %v2759_v19 = vld [vmem:[%s7148_s2 + $0x498] sm:$0xff] }
 0x3b1   : > { %2980 = vmatmul.f32.gmra.mxu1 %v2676_v43  ;;  %3501 = vmatmul.f32.gmra.mxu2 %v2757_v32  ;;  %v2776_v43 = vld [vmem:[%s7148_s2 + $0x520] sm:$0xff] }
 0x3b2   : > { %3670 = vst [vmem:[%s6213_s29] sm:$0xff] %v3287_v34  ;;  %3333 = vmatmul.f32.gmra.mxu0 %v2645_v8  ;;  %3130 = vmatmul.f32.gmra.mxu3 %v2776_v43  ;;  %v2690_v8 = vld [vmem:[%s7148_s2 + $0x270] sm:$0xff] }
 0x3b4   : > { %v6223_v21 = vpop.f32.mrf.mxu2 }
 0x3b6   : > { %v6225_v57 = vpop.f32.mrf.mxu1 }
 0x3b7   : > { %v3289_v3 = vpop.f32.mrf.mxu0 }
 0x3b8   : > { %v3290_v60 = vadd.f32 %v3289_v3, %v6024_v59  ;;  %v2761_v59 = vld [vmem:[%s7148_s2 + $0x4a8] sm:$0xff] }
 0x3b9   : > { %2983 = vmatmul.f32.gmra.mxu1 %v2678_v4  ;;  %3504 = vmatmul.f32.gmra.mxu2 %v2759_v19  ;;  %v2778_v19 = vld [vmem:[%s7148_s2 + $0x530] sm:$0xff] }
 0x3ba   : > { %3671 = vst [vmem:[%s6213_s29 + $0x8] sm:$0xff] %v3290_v60  ;;  %3336 = vmatmul.f32.gmra.mxu0 %v2647_v55  ;;  %3133 = vmatmul.f32.gmra.mxu3 %v2778_v19  ;;  %v2692_v60 = vld [vmem:[%s7148_s2 + $0x280] sm:$0xff] }
 0x3bc   : > { %v6241_v52 = vpop.f32.mrf.mxu2 }
 0x3be   : > { %v6243_v51 = vpop.f32.mrf.mxu1 }
 0x3bf   : > { %v3292_v44 = vpop.f32.mrf.mxu0 }
 0x3c0   : > { %v3293_v11 = vadd.f32 %v3292_v44, %v6035_v10  ;;  %v2763_v10 = vld [vmem:[%s7148_s2 + $0x4b8] sm:$0xff]  ;;  %v2780_v44 = vld [vmem:[%s7148_s2 + $0x540] sm:$0xff] }
 0x3c1   : > { %2986 = vmatmul.f32.gmra.mxu1 %v2680_v61  ;;  %3507 = vmatmul.f32.gmra.mxu2 %v2761_v59  ;;  %v2661_v61 = vld [vmem:[%s7148_s2 + $0x188] sm:$0xff] }
 0x3c2   : > { %3672 = vst [vmem:[%s6213_s29 + $0x10] sm:$0xff] %v3293_v11  ;;  %3339 = vmatmul.f32.gmra.mxu0 %v2649_v49  ;;  %3136 = vmatmul.f32.gmra.mxu3 %v2780_v44 }
 0x3c4   : > { %v6259_v26 = vpop.f32.mrf.mxu2 }
 0x3c6   : > { %v6261_v27 = vpop.f32.mrf.mxu1 }
 0x3c7   : > { %v3295_v9 = vpop.f32.mrf.mxu0 }
 0x3c8   : > { %v3296_v7 = vadd.f32 %v3295_v9, %v6046_v30  ;;  %v2765_v30 = vld [vmem:[%s7148_s2 + $0x4c8] sm:$0xff] }
 0x3c9   : > { %2989 = vmatmul.f32.gmra.mxu1 %v2682_v41  ;;  %3510 = vmatmul.f32.gmra.mxu2 %v2763_v10  ;;  %v2663_v10 = vld [vmem:[%s7148_s2 + $0x198] sm:$0xff] }
 0x3ca   : > { %3673 = vst [vmem:[%s6213_s29 + $0x18] sm:$0xff] %v3296_v7  ;;  %3342 = vmatmul.f32.gmra.mxu0 %v2651_v37  ;;  %v2782_v37 = vld [vmem:[%s7148_s2 + $0x550] sm:$0xff] }
 0x3cb   : > { %3139 = vmatmul.f32.gmra.mxu3 %v2782_v37 }
 0x3cc   : > { %v6277_v12 = vpop.f32.mrf.mxu2 }
 0x3ce   : > { %v6279_v29 = vpop.f32.mrf.mxu1 }
 0x3cf   : > { %v3298_v24 = vpop.f32.mrf.mxu0 }
 0x3d0   : > { %v3299_v20 = vadd.f32 %v3298_v24, %v6057_v1  ;;  %v2767_v1 = vld [vmem:[%s7148_s2 + $0x4d8] sm:$0xff]  ;;  %v2665_v24 = vld [vmem:[%s7148_s2 + $0x1a8] sm:$0xff] }
 0x3d1   : > { %2992 = vmatmul.f32.gmra.mxu1 %v2684_v54  ;;  %3513 = vmatmul.f32.gmra.mxu2 %v2765_v30  ;;  %v2696_v54 = vld [vmem:[%s7148_s2 + $0x2a0] sm:$0xff] }
 0x3d2   : > { %3674 = vst [vmem:[%s6213_s29 + $0x20] sm:$0xff] %v3299_v20  ;;  %3345 = vmatmul.f32.gmra.mxu0 %v2653_v36  ;;  %v2784_v20 = vld [vmem:[%s7148_s2 + $0x560] sm:$0xff] }
 0x3d3   : > { %3142 = vmatmul.f32.gmra.mxu3 %v2784_v20 }
 0x3d4   : > { %v6295_v63 = vpop.f32.mrf.mxu2 }
 0x3d6   : > { %v6297_v38 = vpop.f32.mrf.mxu1 }
 0x3d7   : > { %v3301_v23 = vpop.f32.mrf.mxu0 }
 0x3d8   : > { %v3302_v0 = vadd.f32 %v3301_v23, %v6068_v22  ;;  %v2769_v22 = vld [vmem:[%s7148_s2 + $0x4e8] sm:$0xff] }
 0x3d9   : > { %2995 = vmatmul.f32.gmra.mxu1 %v2686_v16  ;;  %3516 = vmatmul.f32.gmra.mxu2 %v2767_v1  ;;  %v2698_v1 = vld [vmem:[%s7148_s2 + $0x2b0] sm:$0xff] }
 0x3da   : > { %3675 = vst [vmem:[%s6213_s29 + $0x28] sm:$0xff] %v3302_v0  ;;  %3348 = vmatmul.f32.gmra.mxu0 %v2655_v62  ;;  %v2667_v62 = vld [vmem:[%s7148_s2 + $0x1b8] sm:$0xff] }
 0x3db   : > { %3145 = vmatmul.f32.gmra.mxu3 %v2786_v47 }
 0x3dc   : > { %v6313_v18 = vpop.f32.mrf.mxu2 }
 0x3de   : > { %v6315_v25 = vpop.f32.mrf.mxu1 }
 0x3df   : > { %v3304_v31 = vpop.f32.mrf.mxu0 }
 0x3e0   : > { %v3305_v46 = vadd.f32 %v3304_v31, %v6079_v13  ;;  %v2771_v13 = vld [vmem:[%s7148_s2 + $0x4f8] sm:$0xff]  ;;  %v2700_v31 = vld [vmem:[%s7148_s2 + $0x2c0] sm:$0xff] }
 0x3e1   : > { %2998 = vmatmul.f32.gmra.mxu1 %v2688_v58  ;;  %3519 = vmatmul.f32.gmra.mxu2 %v2769_v22 }
 0x3e2   : > { %3676 = vst [vmem:[%s6213_s29 + $0x30] sm:$0xff] %v3305_v46  ;;  %3351 = vmatmul.f32.gmra.mxu0 %v2657_v14  ;;  %v2669_v46 = vld [vmem:[%s7148_s2 + $0x1c8] sm:$0xff] }
 0x3e4   : > { %v6331_v32 = vpop.f32.mrf.mxu2 }
 0x3e6   : > { %v6333_v33 = vpop.f32.mrf.mxu1 }
 0x3e7   : > { %v3307_v34 = vpop.f32.mrf.mxu0 }
 0x3e8   : > { %v3308_v4 = vadd.f32 %v3307_v34, %v6090_v56  ;;  %v2773_v56 = vld [vmem:[%s7148_s2 + $0x508] sm:$0xff]  ;;  %v3101_v34 = vpop.f32.mrf.mxu3 }
 0x3e9   : > { %3001 = vmatmul.f32.gmra.mxu1 %v2690_v8  ;;  %3522 = vmatmul.f32.gmra.mxu2 %v2771_v13  ;;  %v2788_v8 = vld [vmem:[%s7148_s2 + $0x580] sm:$0xff] }
 0x3ea   : > { %3677 = vst [vmem:[%s6213_s29 + $0x38] sm:$0xff] %v3308_v4  ;;  %3354 = vmatmul.f32.gmra.mxu0 %v2659_v42  ;;  %3148 = vmatmul.f32.gmra.mxu3 %v2788_v8  ;;  %v2702_v4 = vld [vmem:[%s7148_s2 + $0x2d0] sm:$0xff] }
 0x3ec   : > { %v6349_v3 = vpop.f32.mrf.mxu2 }
 0x3ee   : > { %v6351_v55 = vpop.f32.mrf.mxu1 }
 0x3ef   : > { %v3310_v15 = vpop.f32.mrf.mxu0 }
 0x3f0   : > { %v3311_v59 = vadd.f32 %v3310_v15, %v6101_v39  ;;  %v2775_v39 = vld [vmem:[%s7148_s2 + $0x518] sm:$0xff]  ;;  %v2790_v15 = vld [vmem:[%s7148_s2 + $0x590] sm:$0xff] }
 0x3f1   : > { %3004 = vmatmul.f32.gmra.mxu1 %v2692_v60  ;;  %3525 = vmatmul.f32.gmra.mxu2 %v2773_v56  ;;  %v2671_v60 = vld [vmem:[%s7148_s2 + $0x1d8] sm:$0xff] }
 0x3f2   : > { %3678 = vst [vmem:[%s6213_s29 + $0x40] sm:$0xff] %v3311_v59  ;;  %3357 = vmatmul.f32.gmra.mxu0 %v2661_v61  ;;  %3151 = vmatmul.f32.gmra.mxu3 %v2790_v15  ;;  %v3104_v59 = vpop.f32.mrf.mxu3 }
 0x3f4   : > { %v6367_v49 = vpop.f32.mrf.mxu2 }
 0x3f6   : > { %v6369_v11 = vpop.f32.mrf.mxu1 }
 0x3f7   : > { %v3313_v41 = vpop.f32.mrf.mxu0 }
 0x3f8   : > { %v3314_v9 = vadd.f32 %v3313_v41, %v6112_v48  ;;  %v2777_v48 = vld [vmem:[%s7148_s2 + $0x528] sm:$0xff] }
 0x3f9   : > { %3007 = vmatmul.f32.gmra.mxu1 %v2694_v6  ;;  %3528 = vmatmul.f32.gmra.mxu2 %v2775_v39  ;;  %v2704_v6 = vld [vmem:[%s7148_s2 + $0x2e0] sm:$0xff]  ;;  %v2673_v41 = vld [vmem:[%s7148_s2 + $0x1e8] sm:$0xff] }
 0x3fa   : > { %3679 = vst [vmem:[%s6213_s29 + $0x48] sm:$0xff] %v3314_v9  ;;  %3360 = vmatmul.f32.gmra.mxu0 %v2663_v10  ;;  %v2792_v9 = vld [vmem:[%s7148_s2 + $0x5a0] sm:$0xff] }
 0x3fb   : > { %3154 = vmatmul.f32.gmra.mxu3 %v2792_v9  ;;  %v2681_v9 = vld [vmem:[%s7148_s2 + $0x228] sm:$0xff] }
 0x3fc   : > { %v6385_v7 = vpop.f32.mrf.mxu2 }
 0x3fe   : > { %v6387_v45 = vpop.f32.mrf.mxu1 }
 0x3ff   : > { %v3316_v30 = vpop.f32.mrf.mxu0 }
 0x400   : > { %v3317_v36 = vadd.f32 %v3316_v30, %v6123_v53  ;;  %v2779_v53 = vld [vmem:[%s7148_s2 + $0x538] sm:$0xff]  ;;  %v2706_v30 = vld [vmem:[%s7148_s2 + $0x2f0] sm:$0xff] }
 0x401   : > { %3010 = vmatmul.f32.gmra.mxu1 %v2696_v54  ;;  %3531 = vmatmul.f32.gmra.mxu2 %v2777_v48  ;;  %v3107_v54 = vpop.f32.mrf.mxu3 }
 0x402   : > { %3680 = vst [vmem:[%s6213_s29 + $0x50] sm:$0xff] %v3317_v36  ;;  %3363 = vmatmul.f32.gmra.mxu0 %v2665_v24  ;;  %v2675_v36 = vld [vmem:[%s7148_s2 + $0x1f8] sm:$0xff] }
 0x404   : > { %v6403_v40 = vpop.f32.mrf.mxu2 }
 0x406   : > { %v6405_v16 = vpop.f32.mrf.mxu1 }
 0x407   : > { %v3319_v23 = vpop.f32.mrf.mxu0 }
 0x408   : > { %v3320_v0 = vadd.f32 %v3319_v23, %v6134_v35  ;;  %v2781_v35 = vld [vmem:[%s7148_s2 + $0x548] sm:$0xff] }
 0x409   : > { %3013 = vmatmul.f32.gmra.mxu1 %v2698_v1  ;;  %3534 = vmatmul.f32.gmra.mxu2 %v2779_v53  ;;  %v2794_v1 = vld [vmem:[%s7148_s2 + $0x5b0] sm:$0xff]  ;;  %v3110_v23 = vpop.f32.mrf.mxu3 }
 0x40a   : > { %3681 = vst [vmem:[%s6213_s29 + $0x58] sm:$0xff] %v3320_v0  ;;  %3366 = vmatmul.f32.gmra.mxu0 %v2667_v62  ;;  %3157 = vmatmul.f32.gmra.mxu3 %v2794_v1  ;;  %v2708_v0 = vld [vmem:[%s7148_s2 + $0x300] sm:$0xff]  ;;  %v2795_v1 = vld [vmem:[%s7148_s2 + $0x5b8] sm:$0xff] }
 0x40c   : > { %v6421_v58 = vpop.f32.mrf.mxu2 }
 0x40e   : > { %v6423_v22 = vpop.f32.mrf.mxu1 }
 0x40f   : > { %v3322_v14 = vpop.f32.mrf.mxu0 }
 0x410   : > { %v3323_v43 = vadd.f32 %v3322_v14, %v6145_v2  ;;  %v2783_v2 = vld [vmem:[%s7148_s2 + $0x558] sm:$0xff]  ;;  %v2796_v14 = vld [vmem:[%s7148_s2 + $0x5c0] sm:$0xff] }
 0x411   : > { %3016 = vmatmul.f32.gmra.mxu1 %v2700_v31  ;;  %3537 = vmatmul.f32.gmra.mxu2 %v2781_v35  ;;  %v2677_v31 = vld [vmem:[%s7148_s2 + $0x208] sm:$0xff]  ;;  %v6511_v8 = vpop.f32.mrf.mxu3 }
 0x412   : > { %3682 = vst [vmem:[%s6213_s29 + $0x60] sm:$0xff] %v3323_v43  ;;  %3369 = vmatmul.f32.gmra.mxu0 %v2669_v46  ;;  %3160 = vmatmul.f32.gmra.mxu3 %v2796_v14 }
 0x414   : > { %v6439_v13 = vpop.f32.mrf.mxu2 }
 0x416   : > { %v6441_v42 = vpop.f32.mrf.mxu1 }
 0x417   : > { %v3325_v19 = vpop.f32.mrf.mxu0 }
 0x418   : > { %v3326_v56 = vadd.f32 %v3325_v19, %v6159_v5  ;;  %v2785_v5 = vld [vmem:[%s7148_s2 + $0x568] sm:$0xff] }
 0x419   : > { %3019 = vmatmul.f32.gmra.mxu1 %v2702_v4  ;;  %3540 = vmatmul.f32.gmra.mxu2 %v2783_v2  ;;  %v2791_v2 = vld [vmem:[%s7148_s2 + $0x598] sm:$0xff] }
 0x41a   : > { %3683 = vst [vmem:[%s6213_s29 + $0x68] sm:$0xff] %v3326_v56  ;;  %3372 = vmatmul.f32.gmra.mxu0 %v2671_v60  ;;  %v2679_v60 = vld [vmem:[%s7148_s2 + $0x218] sm:$0xff]  ;;  %v2798_v56 = vld [vmem:[%s7148_s2 + $0x5d0] sm:$0xff] }
 0x41b   : > { %3163 = vmatmul.f32.gmra.mxu3 %v2798_v56 }
 0x41c   : > { %v6457_v61 = vpop.f32.mrf.mxu2 }
 0x41e   : > { %v6459_v44 = vpop.f32.mrf.mxu1 }
 0x41f   : > { %v3328_v39 = vpop.f32.mrf.mxu0 }
 0x420   : > { %v3329_v10 = vadd.f32 %v3328_v39, %v6173_v28  ;;  %v2787_v28 = vld [vmem:[%s7148_s2 + $0x578] sm:$0xff] }
 0x421   : > { %3022 = vmatmul.f32.gmra.mxu1 %v2704_v6  ;;  %3543 = vmatmul.f32.gmra.mxu2 %v2785_v5  ;;  %v6530_v5 = vpop.f32.mrf.mxu3 }
 0x422   : > { %3684 = vst [vmem:[%s6213_s29 + $0x70] sm:$0xff] %v3329_v10  ;;  %3375 = vmatmul.f32.gmra.mxu0 %v2673_v41  ;;  %v2793_v41 = vld [vmem:[%s7148_s2 + $0x5a8] sm:$0xff] }
 0x424   : > { %v6475_v37 = vpop.f32.mrf.mxu2 }
 0x426   : > { %v6477_v48 = vpop.f32.mrf.mxu1 }
 0x427   : > { %v3331_v24 = vpop.f32.mrf.mxu0 }
 0x428   : > { %v3332_v20 = vadd.f32 %v3331_v24, %v6187_v17  ;;  %v2789_v17 = vld [vmem:[%s7148_s2 + $0x588] sm:$0xff] }
 0x429   : > { %3025 = vmatmul.f32.gmra.mxu1 %v2706_v30  ;;  %3546 = vmatmul.f32.gmra.mxu2 %v2787_v28  ;;  %v2800_v30 = vld [vmem:[%s7148_s2 + $0x5e0] sm:$0xff] }
 0x42a   : > { %3685 = vst [vmem:[%s6213_s29 + $0x78] sm:$0xff] %v3332_v20  ;;  %3378 = vmatmul.f32.gmra.mxu0 %v2675_v36  ;;  %3166 = vmatmul.f32.gmra.mxu3 %v2800_v30  ;;  %v6549_v36 = vpop.f32.mrf.mxu3 }
 0x42c   : > { %v6493_v53 = vpop.f32.mrf.mxu2 }
 0x42e   : > { %v6495_v62 = vpop.f32.mrf.mxu1 }
 0x42f   : > { %v3334_v47 = vpop.f32.mrf.mxu0 }
 0x430   : > { %v3335_v35 = vadd.f32 %v3334_v47, %v6202_v50  ;;  %v2710_v50 = vld [vmem:[%s7148_s2 + $0x310] sm:$0xff] }
 0x431   : > { %3028 = vmatmul.f32.gmra.mxu1 %v2708_v0  ;;  %3549 = vmatmul.f32.gmra.mxu2 %v2789_v17  ;;  %v2683_v17 = vld [vmem:[%s7148_s2 + $0x238] sm:$0xff]  ;;  %v2802_v47 = vld [vmem:[%s7148_s2 + $0x5f0] sm:$0xff] }
 0x432   : > { %3686 = vst [vmem:[%s6213_s29 + $0x80] sm:$0xff] %v3335_v35  ;;  %3381 = vmatmul.f32.gmra.mxu0 %v2677_v31  ;;  %3169 = vmatmul.f32.gmra.mxu3 %v2802_v47  ;;  %v6568_v14 = vpop.f32.mrf.mxu3 }
 0x434   : > { %v3502_v46 = vpop.f32.mrf.mxu2 }
 0x435   : > { %v3503_v43 = vadd.f32 %v3502_v46, %v3101_v34 }
 0x436   : > { %v6513_v4 = vpop.f32.mrf.mxu1 }
 0x437   : > { %3742 = vst [vmem:[%s6213_s29 + $0x240] sm:$0xff] %v3503_v43  ;;  %v3337_v19 = vpop.f32.mrf.mxu0  ;;  %v2797_v43 = vld [vmem:[%s7148_s2 + $0x5c8] sm:$0xff] }
 0x438   : > { %v3338_v34 = vadd.f32 %v3337_v19, %v6225_v57  ;;  %v2712_v57 = vld [vmem:[%s7148_s2 + $0x320] sm:$0xff] }
 0x439   : > { %3031 = vmatmul.f32.gmra.mxu1 %v2710_v50  ;;  %3552 = vmatmul.f32.gmra.mxu2 %v2791_v2  ;;  %v2685_v2 = vld [vmem:[%s7148_s2 + $0x248] sm:$0xff]  ;;  %v2804_v19 = vld [vmem:[%s7148_s2 + $0x600] sm:$0xff] }
 0x43a   : > { %3687 = vst [vmem:[%s6213_s29 + $0x88] sm:$0xff] %v3338_v34  ;;  %3384 = vmatmul.f32.gmra.mxu0 %v2679_v60  ;;  %3172 = vmatmul.f32.gmra.mxu3 %v2804_v19  ;;  %v6588_v56 = vpop.f32.mrf.mxu3 }
 0x43c   : > { %v3505_v15 = vpop.f32.mrf.mxu2 }
 0x43d   : > { %v3506_v6 = vadd.f32 %v3505_v15, %v3104_v59 }
 0x43e   : > { %v6532_v39 = vpop.f32.mrf.mxu1 }
 0x43f   : > { %3743 = vst [vmem:[%s6213_s29 + $0x248] sm:$0xff] %v3506_v6  ;;  %v3340_v10 = vpop.f32.mrf.mxu0  ;;  %v2799_v6 = vld [vmem:[%s7148_s2 + $0x5d8] sm:$0xff] }
 0x440   : > { %v3341_v59 = vadd.f32 %v3340_v10, %v6243_v51  ;;  %v2714_v51 = vld [vmem:[%s7148_s2 + $0x330] sm:$0xff] }
 0x441   : > { %3034 = vmatmul.f32.gmra.mxu1 %v2712_v57  ;;  %3555 = vmatmul.f32.gmra.mxu2 %v2793_v41  ;;  %v2687_v41 = vld [vmem:[%s7148_s2 + $0x258] sm:$0xff]  ;;  %v2806_v10 = vld [vmem:[%s7148_s2 + $0x610] sm:$0xff] }
 0x442   : > { %3688 = vst [vmem:[%s6213_s29 + $0x90] sm:$0xff] %v3341_v59  ;;  %3387 = vmatmul.f32.gmra.mxu0 %v2681_v9  ;;  %3175 = vmatmul.f32.gmra.mxu3 %v2806_v10  ;;  %v6608_v30 = vpop.f32.mrf.mxu3 }
 0x444   : > { %v3508_v28 = vpop.f32.mrf.mxu2 }
 0x445   : > { %v3509_v24 = vadd.f32 %v3508_v28, %v3107_v54 }
 0x446   : > { %v6551_v20 = vpop.f32.mrf.mxu1 }
 0x447   : > { %3744 = vst [vmem:[%s6213_s29 + $0x250] sm:$0xff] %v3509_v24  ;;  %v3343_v0 = vpop.f32.mrf.mxu0  ;;  %v2801_v24 = vld [vmem:[%s7148_s2 + $0x5e8] sm:$0xff] }
 0x448   : > { %v3344_v54 = vadd.f32 %v3343_v0, %v6261_v27  ;;  %v2716_v27 = vld [vmem:[%s7148_s2 + $0x340] sm:$0xff] }
 0x449   : > { %3037 = vmatmul.f32.gmra.mxu1 %v2714_v51  ;;  %3558 = vmatmul.f32.gmra.mxu2 %v2795_v1  ;;  %v2689_v1 = vld [vmem:[%s7148_s2 + $0x268] sm:$0xff]  ;;  %v2808_v0 = vld [vmem:[%s7148_s2 + $0x620] sm:$0xff] }
 0x44a   : > { %3689 = vst [vmem:[%s6213_s29 + $0x98] sm:$0xff] %v3344_v54  ;;  %3390 = vmatmul.f32.gmra.mxu0 %v2683_v17  ;;  %3178 = vmatmul.f32.gmra.mxu3 %v2808_v0  ;;  %v6628_v47 = vpop.f32.mrf.mxu3 }
 0x44c   : > { %v3511_v31 = vpop.f32.mrf.mxu2 }
 0x44d   : > { %v3512_v35 = vadd.f32 %v3511_v31, %v3110_v23 }
 0x44e   : > { %v6570_v46 = vpop.f32.mrf.mxu1 }
 0x44f   : > { %3745 = vst [vmem:[%s6213_s29 + $0x258] sm:$0xff] %v3512_v35  ;;  %v3346_v50 = vpop.f32.mrf.mxu0  ;;  %v2803_v35 = vld [vmem:[%s7148_s2 + $0x5f8] sm:$0xff] }
 0x450   : > { %v3347_v23 = vadd.f32 %v3346_v50, %v6279_v29  ;;  %v2718_v29 = vld [vmem:[%s7148_s2 + $0x350] sm:$0xff] }
 0x451   : > { %3040 = vmatmul.f32.gmra.mxu1 %v2716_v27  ;;  %3561 = vmatmul.f32.gmra.mxu2 %v2797_v43  ;;  %v2691_v43 = vld [vmem:[%s7148_s2 + $0x278] sm:$0xff]  ;;  %v2810_v50 = vld [vmem:[%s7148_s2 + $0x630] sm:$0xff] }
 0x452   : > { %3690 = vst [vmem:[%s6213_s29 + $0xa0] sm:$0xff] %v3347_v23  ;;  %3393 = vmatmul.f32.gmra.mxu0 %v2685_v2  ;;  %3181 = vmatmul.f32.gmra.mxu3 %v2810_v50  ;;  %v6648_v19 = vpop.f32.mrf.mxu3 }
 0x454   : > { %v3514_v60 = vpop.f32.mrf.mxu2 }
 0x455   : > { %v3515_v34 = vadd.f32 %v3514_v60, %v6511_v8 }
 0x456   : > { %v6590_v15 = vpop.f32.mrf.mxu1 }
 0x457   : > { %3746 = vst [vmem:[%s6213_s29 + $0x260] sm:$0xff] %v3515_v34  ;;  %v3349_v57 = vpop.f32.mrf.mxu0  ;;  %v2805_v34 = vld [vmem:[%s7148_s2 + $0x608] sm:$0xff] }
 0x458   : > { %v3350_v8 = vadd.f32 %v3349_v57, %v6297_v38  ;;  %v2720_v38 = vld [vmem:[%s7148_s2 + $0x360] sm:$0xff] }
 0x459   : > { %3043 = vmatmul.f32.gmra.mxu1 %v2718_v29  ;;  %3564 = vmatmul.f32.gmra.mxu2 %v2799_v6  ;;  %v2693_v6 = vld [vmem:[%s7148_s2 + $0x288] sm:$0xff]  ;;  %v2812_v57 = vld [vmem:[%s7148_s2 + $0x640] sm:$0xff] }
 0x45a   : > { %3691 = vst [vmem:[%s6213_s29 + $0xa8] sm:$0xff] %v3350_v8  ;;  %3396 = vmatmul.f32.gmra.mxu0 %v2687_v41  ;;  %3184 = vmatmul.f32.gmra.mxu3 %v2812_v57  ;;  %v6668_v10 = vpop.f32.mrf.mxu3 }
 0x45c   : > { %v3517_v9 = vpop.f32.mrf.mxu2 }
 0x45d   : > { %v3518_v59 = vadd.f32 %v3517_v9, %v6530_v5 }
 0x45e   : > { %v6610_v28 = vpop.f32.mrf.mxu1 }
 0x45f   : > { %3747 = vst [vmem:[%s6213_s29 + $0x268] sm:$0xff] %v3518_v59  ;;  %v3352_v51 = vpop.f32.mrf.mxu0  ;;  %v2807_v59 = vld [vmem:[%s7148_s2 + $0x618] sm:$0xff] }
 0x460   : > { %v3353_v5 = vadd.f32 %v3352_v51, %v6315_v25  ;;  %v2722_v25 = vld [vmem:[%s7148_s2 + $0x370] sm:$0xff] }
 0x461   : > { %3046 = vmatmul.f32.gmra.mxu1 %v2720_v38  ;;  %3567 = vmatmul.f32.gmra.mxu2 %v2801_v24  ;;  %v2695_v24 = vld [vmem:[%s7148_s2 + $0x298] sm:$0xff]  ;;  %v2814_v51 = vld [vmem:[%s7148_s2 + $0x650] sm:$0xff] }
 0x462   : > { %3692 = vst [vmem:[%s6213_s29 + $0xb0] sm:$0xff] %v3353_v5  ;;  %3399 = vmatmul.f32.gmra.mxu0 %v2689_v1  ;;  %3187 = vmatmul.f32.gmra.mxu3 %v2814_v51  ;;  %v6688_v0 = vpop.f32.mrf.mxu3 }
 0x464   : > { %v3520_v17 = vpop.f32.mrf.mxu2 }
 0x465   : > { %v3521_v54 = vadd.f32 %v3520_v17, %v6549_v36 }
 0x466   : > { %v6630_v31 = vpop.f32.mrf.mxu1 }
 0x467   : > { %3748 = vst [vmem:[%s6213_s29 + $0x270] sm:$0xff] %v3521_v54  ;;  %v3355_v27 = vpop.f32.mrf.mxu0  ;;  %v2809_v54 = vld [vmem:[%s7148_s2 + $0x628] sm:$0xff] }
 0x468   : > { %v3356_v36 = vadd.f32 %v3355_v27, %v6333_v33  ;;  %v2724_v33 = vld [vmem:[%s7148_s2 + $0x380] sm:$0xff] }
 0x469   : > { %3049 = vmatmul.f32.gmra.mxu1 %v2722_v25  ;;  %3570 = vmatmul.f32.gmra.mxu2 %v2803_v35  ;;  %v2697_v35 = vld [vmem:[%s7148_s2 + $0x2a8] sm:$0xff]  ;;  %v2816_v27 = vld [vmem:[%s7148_s2 + $0x660] sm:$0xff] }
 0x46a   : > { %3693 = vst [vmem:[%s6213_s29 + $0xb8] sm:$0xff] %v3356_v36  ;;  %3402 = vmatmul.f32.gmra.mxu0 %v2691_v43  ;;  %3190 = vmatmul.f32.gmra.mxu3 %v2816_v27  ;;  %v6708_v50 = vpop.f32.mrf.mxu3 }
 0x46c   : > { %v3523_v2 = vpop.f32.mrf.mxu2 }
 0x46d   : > { %v3524_v23 = vadd.f32 %v3523_v2, %v6568_v14 }
 0x46e   : > { %v6650_v60 = vpop.f32.mrf.mxu1 }
 0x46f   : > { %3749 = vst [vmem:[%s6213_s29 + $0x278] sm:$0xff] %v3524_v23  ;;  %v3358_v29 = vpop.f32.mrf.mxu0  ;;  %v2811_v23 = vld [vmem:[%s7148_s2 + $0x638] sm:$0xff] }
 0x470   : > { %v3359_v14 = vadd.f32 %v3358_v29, %v6351_v55  ;;  %v2726_v55 = vld [vmem:[%s7148_s2 + $0x390] sm:$0xff] }
 0x471   : > { %3052 = vmatmul.f32.gmra.mxu1 %v2724_v33  ;;  %3573 = vmatmul.f32.gmra.mxu2 %v2805_v34  ;;  %v2699_v34 = vld [vmem:[%s7148_s2 + $0x2b8] sm:$0xff]  ;;  %v2818_v29 = vld [vmem:[%s7148_s2 + $0x670] sm:$0xff] }
 0x472   : > { %3694 = vst [vmem:[%s6213_s29 + $0xc0] sm:$0xff] %v3359_v14  ;;  %3405 = vmatmul.f32.gmra.mxu0 %v2693_v6  ;;  %3193 = vmatmul.f32.gmra.mxu3 %v2818_v29  ;;  %v6728_v57 = vpop.f32.mrf.mxu3 }
 0x474   : > { %v3526_v41 = vpop.f32.mrf.mxu2 }
 0x475   : > { %v3527_v8 = vadd.f32 %v3526_v41, %v6588_v56 }
 0x476   : > { %v6670_v9 = vpop.f32.mrf.mxu1 }
 0x477   : > { %3750 = vst [vmem:[%s6213_s29 + $0x280] sm:$0xff] %v3527_v8  ;;  %v3361_v38 = vpop.f32.mrf.mxu0  ;;  %v2813_v8 = vld [vmem:[%s7148_s2 + $0x648] sm:$0xff] }
 0x478   : > { %v3362_v56 = vadd.f32 %v3361_v38, %v6369_v11  ;;  %v2728_v11 = vld [vmem:[%s7148_s2 + $0x3a0] sm:$0xff] }
 0x479   : > { %3055 = vmatmul.f32.gmra.mxu1 %v2726_v55  ;;  %3576 = vmatmul.f32.gmra.mxu2 %v2807_v59  ;;  %v2701_v59 = vld [vmem:[%s7148_s2 + $0x2c8] sm:$0xff]  ;;  %v2820_v38 = vld [vmem:[%s7148_s2 + $0x680] sm:$0xff] }
 0x47a   : > { %3695 = vst [vmem:[%s6213_s29 + $0xc8] sm:$0xff] %v3362_v56  ;;  %3408 = vmatmul.f32.gmra.mxu0 %v2695_v24  ;;  %3196 = vmatmul.f32.gmra.mxu3 %v2820_v38  ;;  %v6748_v51 = vpop.f32.mrf.mxu3 }
 0x47c   : > { %v3529_v1 = vpop.f32.mrf.mxu2 }
 0x47d   : > { %v3530_v5 = vadd.f32 %v3529_v1, %v6608_v30 }
 0x47e   : > { %v6690_v17 = vpop.f32.mrf.mxu1 }
 0x47f   : > { %3751 = vst [vmem:[%s6213_s29 + $0x288] sm:$0xff] %v3530_v5  ;;  %v3364_v25 = vpop.f32.mrf.mxu0  ;;  %v2815_v5 = vld [vmem:[%s7148_s2 + $0x658] sm:$0xff] }
 0x480   : > { %v3365_v30 = vadd.f32 %v3364_v25, %v6387_v45  ;;  %v2730_v45 = vld [vmem:[%s7148_s2 + $0x3b0] sm:$0xff] }
 0x481   : > { %3058 = vmatmul.f32.gmra.mxu1 %v2728_v11  ;;  %3579 = vmatmul.f32.gmra.mxu2 %v2809_v54  ;;  %v2703_v54 = vld [vmem:[%s7148_s2 + $0x2d8] sm:$0xff]  ;;  %v2822_v25 = vld [vmem:[%s7148_s2 + $0x690] sm:$0xff] }
 0x482   : > { %3696 = vst [vmem:[%s6213_s29 + $0xd0] sm:$0xff] %v3365_v30  ;;  %3411 = vmatmul.f32.gmra.mxu0 %v2697_v35  ;;  %3199 = vmatmul.f32.gmra.mxu3 %v2822_v25  ;;  %v6768_v27 = vpop.f32.mrf.mxu3 }
 0x484   : > { %v3532_v43 = vpop.f32.mrf.mxu2 }
 0x485   : > { %v3533_v36 = vadd.f32 %v3532_v43, %v6628_v47 }
 0x486   : > { %v6710_v2 = vpop.f32.mrf.mxu1 }
 0x487   : > { %3752 = vst [vmem:[%s6213_s29 + $0x290] sm:$0xff] %v3533_v36  ;;  %v3367_v33 = vpop.f32.mrf.mxu0  ;;  %v2817_v36 = vld [vmem:[%s7148_s2 + $0x668] sm:$0xff] }
 0x488   : > { %v3368_v47 = vadd.f32 %v3367_v33, %v6405_v16  ;;  %v2732_v16 = vld [vmem:[%s7148_s2 + $0x3c0] sm:$0xff] }
 0x489   : > { %3061 = vmatmul.f32.gmra.mxu1 %v2730_v45  ;;  %3582 = vmatmul.f32.gmra.mxu2 %v2811_v23  ;;  %v2705_v23 = vld [vmem:[%s7148_s2 + $0x2e8] sm:$0xff]  ;;  %v2824_v33 = vld [vmem:[%s7148_s2 + $0x6a0] sm:$0xff] }
 0x48a   : > { %3697 = vst [vmem:[%s6213_s29 + $0xd8] sm:$0xff] %v3368_v47  ;;  %3414 = vmatmul.f32.gmra.mxu0 %v2699_v34  ;;  %3202 = vmatmul.f32.gmra.mxu3 %v2824_v33  ;;  %v6788_v29 = vpop.f32.mrf.mxu3 }
 0x48c   : > { %v3535_v6 = vpop.f32.mrf.mxu2 }
 0x48d   : > { %v3536_v14 = vadd.f32 %v3535_v6, %v6648_v19 }
 0x48e   : > { %v6730_v41 = vpop.f32.mrf.mxu1 }
 0x48f   : > { %3753 = vst [vmem:[%s6213_s29 + $0x298] sm:$0xff] %v3536_v14  ;;  %v3370_v55 = vpop.f32.mrf.mxu0  ;;  %v2819_v14 = vld [vmem:[%s7148_s2 + $0x678] sm:$0xff] }
 0x490   : > { %v3371_v19 = vadd.f32 %v3370_v55, %v6423_v22  ;;  %v2734_v22 = vld [vmem:[%s7148_s2 + $0x3d0] sm:$0xff] }
 0x491   : > { %3064 = vmatmul.f32.gmra.mxu1 %v2732_v16  ;;  %3585 = vmatmul.f32.gmra.mxu2 %v2813_v8  ;;  %v2707_v8 = vld [vmem:[%s7148_s2 + $0x2f8] sm:$0xff]  ;;  %v2826_v55 = vld [vmem:[%s7148_s2 + $0x6b0] sm:$0xff] }
 0x492   : > { %3698 = vst [vmem:[%s6213_s29 + $0xe0] sm:$0xff] %v3371_v19  ;;  %3417 = vmatmul.f32.gmra.mxu0 %v2701_v59  ;;  %3205 = vmatmul.f32.gmra.mxu3 %v2826_v55  ;;  %v6808_v38 = vpop.f32.mrf.mxu3 }
 0x494   : > { %v3538_v24 = vpop.f32.mrf.mxu2 }
 0x495   : > { %v3539_v56 = vadd.f32 %v3538_v24, %v6668_v10 }
 0x496   : > { %v6750_v1 = vpop.f32.mrf.mxu1 }
 0x497   : > { %3754 = vst [vmem:[%s6213_s29 + $0x2a0] sm:$0xff] %v3539_v56  ;;  %v3373_v11 = vpop.f32.mrf.mxu0  ;;  %v2821_v56 = vld [vmem:[%s7148_s2 + $0x688] sm:$0xff] }
 0x498   : > { %v3374_v10 = vadd.f32 %v3373_v11, %v6441_v42  ;;  %v2736_v42 = vld [vmem:[%s7148_s2 + $0x3e0] sm:$0xff] }
 0x499   : > { %3067 = vmatmul.f32.gmra.mxu1 %v2734_v22  ;;  %3588 = vmatmul.f32.gmra.mxu2 %v2815_v5  ;;  %v2709_v5 = vld [vmem:[%s7148_s2 + $0x308] sm:$0xff]  ;;  %v2828_v11 = vld [vmem:[%s7148_s2 + $0x6c0] sm:$0xff] }
 0x49a   : > { %3699 = vst [vmem:[%s6213_s29 + $0xe8] sm:$0xff] %v3374_v10  ;;  %3420 = vmatmul.f32.gmra.mxu0 %v2703_v54  ;;  %3208 = vmatmul.f32.gmra.mxu3 %v2828_v11  ;;  %v6828_v25 = vpop.f32.mrf.mxu3 }
 0x49c   : > { %v3541_v35 = vpop.f32.mrf.mxu2 }
 0x49d   : > { %v3542_v30 = vadd.f32 %v3541_v35, %v6688_v0 }
 0x49e   : > { %v6770_v43 = vpop.f32.mrf.mxu1 }
 0x49f   : > { %3755 = vst [vmem:[%s6213_s29 + $0x2a8] sm:$0xff] %v3542_v30  ;;  %v3376_v45 = vpop.f32.mrf.mxu0  ;;  %v2823_v30 = vld [vmem:[%s7148_s2 + $0x698] sm:$0xff] }
 0x4a0   : > { %v3377_v0 = vadd.f32 %v3376_v45, %v6459_v44  ;;  %v2738_v44 = vld [vmem:[%s7148_s2 + $0x3f0] sm:$0xff] }
 0x4a1   : > { %3070 = vmatmul.f32.gmra.mxu1 %v2736_v42  ;;  %3591 = vmatmul.f32.gmra.mxu2 %v2817_v36  ;;  %v2711_v36 = vld [vmem:[%s7148_s2 + $0x318] sm:$0xff]  ;;  %v2830_v45 = vld [vmem:[%s7148_s2 + $0x6d0] sm:$0xff] }
 0x4a2   : > { %3700 = vst [vmem:[%s6213_s29 + $0xf0] sm:$0xff] %v3377_v0  ;;  %3423 = vmatmul.f32.gmra.mxu0 %v2705_v23  ;;  %3211 = vmatmul.f32.gmra.mxu3 %v2830_v45  ;;  %v6848_v33 = vpop.f32.mrf.mxu3 }
 0x4a4   : > { %v3544_v34 = vpop.f32.mrf.mxu2 }
 0x4a5   : > { %v3545_v47 = vadd.f32 %v3544_v34, %v6708_v50 }
 0x4a6   : > { %v6790_v6 = vpop.f32.mrf.mxu1 }
 0x4a7   : > { %3756 = vst [vmem:[%s6213_s29 + $0x2b0] sm:$0xff] %v3545_v47  ;;  %v3379_v16 = vpop.f32.mrf.mxu0  ;;  %v2825_v47 = vld [vmem:[%s7148_s2 + $0x6a8] sm:$0xff] }
 0x4a8   : > { %v3380_v50 = vadd.f32 %v3379_v16, %v6477_v48  ;;  %v2740_v48 = vld [vmem:[%s7148_s2 + $0x400] sm:$0xff] }
 0x4a9   : > { %3073 = vmatmul.f32.gmra.mxu1 %v2738_v44  ;;  %3594 = vmatmul.f32.gmra.mxu2 %v2819_v14  ;;  %v2713_v14 = vld [vmem:[%s7148_s2 + $0x328] sm:$0xff]  ;;  %v2832_v16 = vld [vmem:[%s7148_s2 + $0x6e0] sm:$0xff] }
 0x4aa   : > { %3701 = vst [vmem:[%s6213_s29 + $0xf8] sm:$0xff] %v3380_v50  ;;  %3426 = vmatmul.f32.gmra.mxu0 %v2707_v8  ;;  %3214 = vmatmul.f32.gmra.mxu3 %v2832_v16 }
 0x4ac   : > { %v3547_v59 = vpop.f32.mrf.mxu2 }
 0x4ad   : > { %v3548_v19 = vadd.f32 %v3547_v59, %v6728_v57  ;;  %v6868_v55 = vpop.f32.mrf.mxu3 }
 0x4ae   : > { %v6810_v24 = vpop.f32.mrf.mxu1 }
 0x4af   : > { %3757 = vst [vmem:[%s6213_s29 + $0x2b8] sm:$0xff] %v3548_v19  ;;  %v3382_v22 = vpop.f32.mrf.mxu0  ;;  %v2827_v19 = vld [vmem:[%s7148_s2 + $0x6b8] sm:$0xff] }
 0x4b0   : > { %v3383_v57 = vadd.f32 %v3382_v22, %v6495_v62  ;;  %v2742_v62 = vld [vmem:[%s7148_s2 + $0x410] sm:$0xff] }
 0x4b1   : > { %3076 = vmatmul.f32.gmra.mxu1 %v2740_v48  ;;  %3597 = vmatmul.f32.gmra.mxu2 %v2821_v56  ;;  %v2715_v56 = vld [vmem:[%s7148_s2 + $0x338] sm:$0xff]  ;;  %v2834_v22 = vld [vmem:[%s7148_s2 + $0x6f0] sm:$0xff] }
 0x4b2   : > { %3702 = vst [vmem:[%s6213_s29 + $0x100] sm:$0xff] %v3383_v57  ;;  %3429 = vmatmul.f32.gmra.mxu0 %v2709_v5  ;;  %3217 = vmatmul.f32.gmra.mxu3 %v2834_v22 }
 0x4b4   : > { %v3550_v54 = vpop.f32.mrf.mxu2 }
 0x4b5   : > { %v3551_v10 = vadd.f32 %v3550_v54, %v6748_v51  ;;  %v6888_v11 = vpop.f32.mrf.mxu3 }
 0x4b6   : > { %v6830_v35 = vpop.f32.mrf.mxu1 }
 0x4b7   : > { %3758 = vst [vmem:[%s6213_s29 + $0x2c0] sm:$0xff] %v3551_v10  ;;  %v3385_v42 = vpop.f32.mrf.mxu0  ;;  %v2829_v10 = vld [vmem:[%s7148_s2 + $0x6c8] sm:$0xff] }
 0x4b8   : > { %v3386_v51 = vadd.f32 %v3385_v42, %v6513_v4  ;;  %v2744_v4 = vld [vmem:[%s7148_s2 + $0x420] sm:$0xff] }
 0x4b9   : > { %3079 = vmatmul.f32.gmra.mxu1 %v2742_v62  ;;  %3600 = vmatmul.f32.gmra.mxu2 %v2823_v30  ;;  %v2717_v30 = vld [vmem:[%s7148_s2 + $0x348] sm:$0xff]  ;;  %v2836_v42 = vld [vmem:[%s7148_s2 + $0x700] sm:$0xff] }
 0x4ba   : > { %3703 = vst [vmem:[%s6213_s29 + $0x108] sm:$0xff] %v3386_v51  ;;  %3432 = vmatmul.f32.gmra.mxu0 %v2711_v36  ;;  %3220 = vmatmul.f32.gmra.mxu3 %v2836_v42 }
 0x4bc   : > { %v3553_v23 = vpop.f32.mrf.mxu2 }
 0x4bd   : > { %v3554_v0 = vadd.f32 %v3553_v23, %v6768_v27  ;;  %v3173_v45 = vpop.f32.mrf.mxu3 }
 0x4be   : > { %v6850_v34 = vpop.f32.mrf.mxu1 }
 0x4bf   : > { %3759 = vst [vmem:[%s6213_s29 + $0x2c8] sm:$0xff] %v3554_v0  ;;  %v3388_v44 = vpop.f32.mrf.mxu0  ;;  %v2831_v0 = vld [vmem:[%s7148_s2 + $0x6d8] sm:$0xff] }
 0x4c0   : > { %v3389_v27 = vadd.f32 %v3388_v44, %v6532_v39  ;;  %v2746_v39 = vld [vmem:[%s7148_s2 + $0x430] sm:$0xff] }
 0x4c1   : > { %3082 = vmatmul.f32.gmra.mxu1 %v2744_v4  ;;  %3603 = vmatmul.f32.gmra.mxu2 %v2825_v47  ;;  %v2719_v47 = vld [vmem:[%s7148_s2 + $0x358] sm:$0xff]  ;;  %v2838_v44 = vld [vmem:[%s7148_s2 + $0x710] sm:$0xff] }
 0x4c2   : > { %3704 = vst [vmem:[%s6213_s29 + $0x110] sm:$0xff] %v3389_v27  ;;  %3435 = vmatmul.f32.gmra.mxu0 %v2713_v14  ;;  %3223 = vmatmul.f32.gmra.mxu3 %v2838_v44 }
 0x4c4   : > { %v3556_v8 = vpop.f32.mrf.mxu2 }
 0x4c5   : > { %v3557_v50 = vadd.f32 %v3556_v8, %v6788_v29  ;;  %v3176_v16 = vpop.f32.mrf.mxu3 }
 0x4c6   : > { %v6870_v59 = vpop.f32.mrf.mxu1 }
 0x4c7   : > { %3760 = vst [vmem:[%s6213_s29 + $0x2d0] sm:$0xff] %v3557_v50  ;;  %v3391_v48 = vpop.f32.mrf.mxu0  ;;  %v2833_v50 = vld [vmem:[%s7148_s2 + $0x6e8] sm:$0xff] }
 0x4c8   : > { %v3392_v29 = vadd.f32 %v3391_v48, %v6551_v20  ;;  %v2748_v20 = vld [vmem:[%s7148_s2 + $0x440] sm:$0xff] }
 0x4c9   : > { %3085 = vmatmul.f32.gmra.mxu1 %v2746_v39  ;;  %3606 = vmatmul.f32.gmra.mxu2 %v2827_v19  ;;  %v2721_v19 = vld [vmem:[%s7148_s2 + $0x368] sm:$0xff]  ;;  %v2840_v48 = vld [vmem:[%s7148_s2 + $0x720] sm:$0xff] }
 0x4ca   : > { %3705 = vst [vmem:[%s6213_s29 + $0x118] sm:$0xff] %v3392_v29  ;;  %3438 = vmatmul.f32.gmra.mxu0 %v2715_v56  ;;  %3226 = vmatmul.f32.gmra.mxu3 %v2840_v48 }
 0x4cc   : > { %v3559_v5 = vpop.f32.mrf.mxu2 }
 0x4cd   : > { %v3560_v57 = vadd.f32 %v3559_v5, %v6808_v38  ;;  %v3179_v22 = vpop.f32.mrf.mxu3 }
 0x4ce   : > { %v6890_v54 = vpop.f32.mrf.mxu1 }
 0x4cf   : > { %3761 = vst [vmem:[%s6213_s29 + $0x2d8] sm:$0xff] %v3560_v57  ;;  %v3394_v62 = vpop.f32.mrf.mxu0  ;;  %v2835_v57 = vld [vmem:[%s7148_s2 + $0x6f8] sm:$0xff] }
 0x4d0   : > { %v3395_v38 = vadd.f32 %v3394_v62, %v6570_v46  ;;  %v2750_v46 = vld [vmem:[%s7148_s2 + $0x450] sm:$0xff] }
 0x4d1   : > { %3088 = vmatmul.f32.gmra.mxu1 %v2748_v20  ;;  %3609 = vmatmul.f32.gmra.mxu2 %v2829_v10  ;;  %v2723_v10 = vld [vmem:[%s7148_s2 + $0x378] sm:$0xff]  ;;  %v2842_v62 = vld [vmem:[%s7148_s2 + $0x730] sm:$0xff] }
 0x4d2   : > { %3706 = vst [vmem:[%s6213_s29 + $0x120] sm:$0xff] %v3395_v38  ;;  %3441 = vmatmul.f32.gmra.mxu0 %v2717_v30  ;;  %3229 = vmatmul.f32.gmra.mxu3 %v2842_v62 }
 0x4d4   : > { %v3562_v36 = vpop.f32.mrf.mxu2 }
 0x4d5   : > { %v3563_v51 = vadd.f32 %v3562_v36, %v6828_v25  ;;  %v3182_v42 = vpop.f32.mrf.mxu3 }
 0x4d6   : > { %v6908_v23 = vpop.f32.mrf.mxu1 }
 0x4d7   : > { %3762 = vst [vmem:[%s6213_s29 + $0x2e0] sm:$0xff] %v3563_v51  ;;  %v3397_v4 = vpop.f32.mrf.mxu0 }
 0x4d8   : > { %v3398_v25 = vadd.f32 %v3397_v4, %v6590_v15  ;;  %v2752_v15 = vld [vmem:[%s7148_s2 + $0x460] sm:$0xff] }
 0x4d9   : > { %3091 = vmatmul.f32.gmra.mxu1 %v2750_v46  ;;  %3612 = vmatmul.f32.gmra.mxu2 %v2831_v0 }
 0x4da   : > { %3707 = vst [vmem:[%s6213_s29 + $0x128] sm:$0xff] %v3398_v25  ;;  %3444 = vmatmul.f32.gmra.mxu0 %v2719_v47 }
 0x4dc   : > { %v3565_v14 = vpop.f32.mrf.mxu2 }
 0x4dd   : > { %v3566_v27 = vadd.f32 %v3565_v14, %v6848_v33  ;;  %v3185_v25 = vpop.f32.mrf.mxu3 }
 0x4de   : > { %v6926_v8 = vpop.f32.mrf.mxu1 }
 0x4df   : > { %3763 = vst [vmem:[%s6213_s29 + $0x2e8] sm:$0xff] %v3566_v27  ;;  %v3400_v39 = vpop.f32.mrf.mxu0 }
 0x4e0   : > { %v3401_v33 = vadd.f32 %v3400_v39, %v6610_v28  ;;  %v2754_v28 = vld [vmem:[%s7148_s2 + $0x470] sm:$0xff] }
 0x4e1   : > { %3094 = vmatmul.f32.gmra.mxu1 %v2752_v15  ;;  %3615 = vmatmul.f32.gmra.mxu2 %v2833_v50 }
 0x4e2   : > { %3708 = vst [vmem:[%s6213_s29 + $0x130] sm:$0xff] %v3401_v33  ;;  %3447 = vmatmul.f32.gmra.mxu0 %v2721_v19 }
 0x4e4   : > { %v3568_v56 = vpop.f32.mrf.mxu2 }
 0x4e5   : > { %v3569_v29 = vadd.f32 %v3568_v56, %v6868_v55  ;;  %v3188_v39 = vpop.f32.mrf.mxu3 }
 0x4e6   : > { %v6944_v5 = vpop.f32.mrf.mxu1 }
 0x4e7   : > { %3764 = vst [vmem:[%s6213_s29 + $0x2f0] sm:$0xff] %v3569_v29  ;;  %v3403_v20 = vpop.f32.mrf.mxu0 }
 0x4e8   : > { %v3404_v55 = vadd.f32 %v3403_v20, %v6630_v31  ;;  %v2837_v31 = vld [vmem:[%s7148_s2 + $0x708] sm:$0xff] }
 0x4e9   : > { %3097 = vmatmul.f32.gmra.mxu1 %v2754_v28  ;;  %3618 = vmatmul.f32.gmra.mxu2 %v2835_v57 }
 0x4ea   : > { %3709 = vst [vmem:[%s6213_s29 + $0x138] sm:$0xff] %v3404_v55  ;;  %3450 = vmatmul.f32.gmra.mxu0 %v2723_v10 }
 0x4ec   : > { %v3571_v30 = vpop.f32.mrf.mxu2 }
 0x4ed   : > { %v3572_v38 = vadd.f32 %v3571_v30, %v6888_v11  ;;  %v2844_v11 = vld [vmem:[%s7148_s2 + $0x740] sm:$0xff]  ;;  %v3191_v28 = vpop.f32.mrf.mxu3 }
 0x4ee   : > { %v3053_v36 = vpop.f32.mrf.mxu1  ;;  %3232 = vmatmul.f32.gmra.mxu3 %v2844_v11 }
 0x4ef   : > { %v3455_v51 = vadd.f32 %v6223_v21, %v3053_v36  ;;  %3765 = vst [vmem:[%s6213_s29 + $0x2f8] sm:$0xff] %v3572_v38  ;;  %v3406_v46 = vpop.f32.mrf.mxu0  ;;  %v2839_v21 = vld [vmem:[%s7148_s2 + $0x718] sm:$0xff] }
 0x4f0   : > { %v3407_v0 = vadd.f32 %v3406_v46, %v6650_v60 }
 0x4f1   : > { %3726 = vst [vmem:[%s6213_s29 + $0x1c0] sm:$0xff] %v3455_v51  ;;  %3621 = vmatmul.f32.gmra.mxu2 %v2837_v31 }
 0x4f2   : > { %3710 = vst [vmem:[%s6213_s29 + $0x140] sm:$0xff] %v3407_v0 }
 0x4f4   : > { %v3574_v4 = vpop.f32.mrf.mxu2 }
 0x4f5   : > { %v3575_v47 = vadd.f32 %v3574_v4, %v3173_v45  ;;  %v2846_v45 = vld [vmem:[%s7148_s2 + $0x750] sm:$0xff]  ;;  %v3194_v30 = vpop.f32.mrf.mxu3 }
 0x4f6   : > { %v3056_v44 = vpop.f32.mrf.mxu1  ;;  %3235 = vmatmul.f32.gmra.mxu3 %v2846_v45 }
 0x4f7   : > { %v3458_v60 = vadd.f32 %v6241_v52, %v3056_v44  ;;  %3766 = vst [vmem:[%s6213_s29 + $0x300] sm:$0xff] %v3575_v47  ;;  %v3409_v14 = vpop.f32.mrf.mxu0  ;;  %v2841_v52 = vld [vmem:[%s7148_s2 + $0x728] sm:$0xff] }
 0x4f8   : > { %v3410_v27 = vadd.f32 %v3409_v14, %v6670_v9 }
 0x4f9   : > { %3727 = vst [vmem:[%s6213_s29 + $0x1c8] sm:$0xff] %v3458_v60  ;;  %3624 = vmatmul.f32.gmra.mxu2 %v2839_v21 }
 0x4fa   : > { %3711 = vst [vmem:[%s6213_s29 + $0x148] sm:$0xff] %v3410_v27 }
 0x4fc   : > { %v3577_v15 = vpop.f32.mrf.mxu2 }
 0x4fd   : > { %v3578_v50 = vadd.f32 %v3577_v15, %v3176_v16  ;;  %v2848_v16 = vld [vmem:[%s7148_s2 + $0x760] sm:$0xff]  ;;  %v3197_v0 = vpop.f32.mrf.mxu3 }
 0x4fe   : > { %v3059_v19 = vpop.f32.mrf.mxu1  ;;  %3238 = vmatmul.f32.gmra.mxu3 %v2848_v16  ;;  %v2856_v15 = vld [vmem:[%s7148_s2 + $0x7a0] sm:$0xff] }
 0x4ff   : > { %v3461_v9 = vadd.f32 %v6259_v26, %v3059_v19  ;;  %3767 = vst [vmem:[%s6213_s29 + $0x308] sm:$0xff] %v3578_v50  ;;  %v3412_v33 = vpop.f32.mrf.mxu0  ;;  %v2843_v26 = vld [vmem:[%s7148_s2 + $0x738] sm:$0xff] }
 0x500   : > { %v3413_v48 = vadd.f32 %v3412_v33, %v6690_v17 }
 0x501   : > { %3728 = vst [vmem:[%s6213_s29 + $0x1d0] sm:$0xff] %v3461_v9  ;;  %3627 = vmatmul.f32.gmra.mxu2 %v2841_v52 }
 0x502   : > { %3712 = vst [vmem:[%s6213_s29 + $0x150] sm:$0xff] %v3413_v48  ;;  %v2858_v48 = vld [vmem:[%s7148_s2 + $0x7b0] sm:$0xff] }
 0x504   : > { %v3580_v56 = vpop.f32.mrf.mxu2 }
 0x505   : > { %v3581_v29 = vadd.f32 %v3580_v56, %v3179_v22  ;;  %v2850_v22 = vld [vmem:[%s7148_s2 + $0x770] sm:$0xff]  ;;  %v3200_v60 = vpop.f32.mrf.mxu3 }
 0x506   : > { %v3062_v57 = vpop.f32.mrf.mxu1  ;;  %3241 = vmatmul.f32.gmra.mxu3 %v2850_v22 }
 0x507   : > { %v3464_v17 = vadd.f32 %v6277_v12, %v3062_v57  ;;  %3768 = vst [vmem:[%s6213_s29 + $0x310] sm:$0xff] %v3581_v29  ;;  %v3415_v20 = vpop.f32.mrf.mxu0  ;;  %v2845_v12 = vld [vmem:[%s7148_s2 + $0x748] sm:$0xff] }
 0x508   : > { %v3416_v10 = vadd.f32 %v3415_v20, %v6710_v2 }
 0x509   : > { %3729 = vst [vmem:[%s6213_s29 + $0x1d8] sm:$0xff] %v3464_v17  ;;  %3630 = vmatmul.f32.gmra.mxu2 %v2843_v26  ;;  %v2860_v17 = vld [vmem:[%s7148_s2 + $0x7c0] sm:$0xff] }
 0x50a   : > { %3713 = vst [vmem:[%s6213_s29 + $0x158] sm:$0xff] %v3416_v10 }
 0x50c   : > { %v3583_v55 = vpop.f32.mrf.mxu2 }
 0x50d   : > { %v3584_v62 = vadd.f32 %v3583_v55, %v3182_v42  ;;  %v2852_v42 = vld [vmem:[%s7148_s2 + $0x780] sm:$0xff]  ;;  %v3203_v19 = vpop.f32.mrf.mxu3 }
 0x50e   : > { %v3065_v38 = vpop.f32.mrf.mxu1  ;;  %3244 = vmatmul.f32.gmra.mxu3 %v2852_v42 }
 0x50f   : > { %v3467_v2 = vadd.f32 %v6295_v63, %v3065_v38  ;;  %3769 = vst [vmem:[%s6213_s29 + $0x318] sm:$0xff] %v3584_v62  ;;  %v3418_v36 = vpop.f32.mrf.mxu0  ;;  %v2847_v63 = vld [vmem:[%s7148_s2 + $0x758] sm:$0xff]  ;;  %v2862_v38 = vld [vmem:[%s7148_s2 + $0x7d0] sm:$0xff] }
 0x510   : > { %v3419_v31 = vadd.f32 %v3418_v36, %v6730_v41 }
 0x511   : > { %3730 = vst [vmem:[%s6213_s29 + $0x1e0] sm:$0xff] %v3467_v2  ;;  %3633 = vmatmul.f32.gmra.mxu2 %v2845_v12 }
 0x512   : > { %3714 = vst [vmem:[%s6213_s29 + $0x160] sm:$0xff] %v3419_v31 }
 0x514   : > { %v3586_v51 = vpop.f32.mrf.mxu2 }
 0x515   : > { %v3587_v46 = vadd.f32 %v3586_v51, %v3185_v25  ;;  %v2854_v25 = vld [vmem:[%s7148_s2 + $0x790] sm:$0xff]  ;;  %v3206_v29 = vpop.f32.mrf.mxu3 }
 0x516   : > { %v3068_v11 = vpop.f32.mrf.mxu1  ;;  %3247 = vmatmul.f32.gmra.mxu3 %v2854_v25  ;;  %v2866_v25 = vld [vmem:[%s7148_s2 + $0x7f0] sm:$0xff] }
 0x517   : > { %v3470_v41 = vadd.f32 %v6313_v18, %v3068_v11  ;;  %3770 = vst [vmem:[%s6213_s29 + $0x320] sm:$0xff] %v3587_v46  ;;  %v3421_v4 = vpop.f32.mrf.mxu0  ;;  %v2849_v18 = vld [vmem:[%s7148_s2 + $0x768] sm:$0xff]  ;;  %v2864_v46 = vld [vmem:[%s7148_s2 + $0x7e0] sm:$0xff] }
 0x518   : > { %v3422_v47 = vadd.f32 %v3421_v4, %v6750_v1 }
 0x519   : > { %3731 = vst [vmem:[%s6213_s29 + $0x1e8] sm:$0xff] %v3470_v41  ;;  %3636 = vmatmul.f32.gmra.mxu2 %v2847_v63 }
 0x51a   : > { %3715 = vst [vmem:[%s6213_s29 + $0x168] sm:$0xff] %v3422_v47 }
 0x51c   : > { %v3589_v44 = vpop.f32.mrf.mxu2 }
 0x51d   : > { %v3590_v21 = vadd.f32 %v3589_v44, %v3188_v39  ;;  %v3209_v22 = vpop.f32.mrf.mxu3 }
 0x51e   : > { %v3071_v14 = vpop.f32.mrf.mxu1  ;;  %3250 = vmatmul.f32.gmra.mxu3 %v2856_v15 }
 0x51f   : > { %v3473_v1 = vadd.f32 %v6331_v32, %v3071_v14  ;;  %3771 = vst [vmem:[%s6213_s29 + $0x328] sm:$0xff] %v3590_v21  ;;  %v3424_v27 = vpop.f32.mrf.mxu0  ;;  %v2851_v32 = vld [vmem:[%s7148_s2 + $0x778] sm:$0xff] }
 0x520   : > { %v3425_v45 = vadd.f32 %v3424_v27, %v6770_v43 }
 0x521   : > { %3732 = vst [vmem:[%s6213_s29 + $0x1f0] sm:$0xff] %v3473_v1  ;;  %3639 = vmatmul.f32.gmra.mxu2 %v2849_v18 }
 0x522   : > { %3716 = vst [vmem:[%s6213_s29 + $0x170] sm:$0xff] %v3425_v45 }
 0x524   : > { %v3592_v50 = vpop.f32.mrf.mxu2 }
 0x525   : > { %v3593_v39 = vadd.f32 %v3592_v50, %v3191_v28  ;;  %v3212_v36 = vpop.f32.mrf.mxu3 }
 0x526   : > { %v3074_v52 = vpop.f32.mrf.mxu1  ;;  %3253 = vmatmul.f32.gmra.mxu3 %v2858_v48 }
 0x527   : > { %v3476_v43 = vadd.f32 %v6349_v3, %v3074_v52  ;;  %3772 = vst [vmem:[%s6213_s29 + $0x330] sm:$0xff] %v3593_v39  ;;  %v3427_v9 = vpop.f32.mrf.mxu0  ;;  %v2853_v3 = vld [vmem:[%s7148_s2 + $0x788] sm:$0xff]  ;;  %v2863_v39 = vld [vmem:[%s7148_s2 + $0x7d8] sm:$0xff] }
 0x528   : > { %v3428_v33 = vadd.f32 %v3427_v9, %v6790_v6  ;;  %v2865_v9 = vld [vmem:[%s7148_s2 + $0x7e8] sm:$0xff] }
 0x529   : > { %3733 = vst [vmem:[%s6213_s29 + $0x1f8] sm:$0xff] %v3476_v43  ;;  %3642 = vmatmul.f32.gmra.mxu2 %v2851_v32 }
 0x52a   : > { %3717 = vst [vmem:[%s6213_s29 + $0x178] sm:$0xff] %v3428_v33 }
 0x52c   : > { %v3595_v16 = vpop.f32.mrf.mxu2 }
 0x52d   : > { %v3596_v56 = vadd.f32 %v3595_v16, %v3194_v30  ;;  %v3215_v63 = vpop.f32.mrf.mxu3 }
 0x52e   : > { %v3077_v28 = vpop.f32.mrf.mxu1  ;;  %3256 = vmatmul.f32.gmra.mxu3 %v2860_v17 }
 0x52f   : > { %v3479_v6 = vadd.f32 %v6367_v49, %v3077_v28  ;;  %3773 = vst [vmem:[%s6213_s29 + $0x338] sm:$0xff] %v3596_v56  ;;  %v3430_v57 = vpop.f32.mrf.mxu0  ;;  %v2855_v49 = vld [vmem:[%s7148_s2 + $0x798] sm:$0xff] }
 0x530   : > { %v3431_v26 = vadd.f32 %v3430_v57, %v6810_v24  ;;  %v2867_v28 = vld [vmem:[%s7148_s2 + $0x7f8] sm:$0xff] }
 0x531   : > { %3734 = vst [vmem:[%s6213_s29 + $0x200] sm:$0xff] %v3479_v6  ;;  %3645 = vmatmul.f32.gmra.mxu2 %v2853_v3 }
 0x532   : > { %3718 = vst [vmem:[%s6213_s29 + $0x180] sm:$0xff] %v3431_v26 }
 0x534   : > { %v3598_v20 = vpop.f32.mrf.mxu2 }
 0x535   : > { %v3599_v10 = vadd.f32 %v3598_v20, %v3197_v0 }
 0x536   : > { %v3080_v55 = vpop.f32.mrf.mxu1  ;;  %3259 = vmatmul.f32.gmra.mxu3 %v2862_v38 }
 0x537   : > { %v3482_v24 = vadd.f32 %v6385_v7, %v3080_v55  ;;  %3774 = vst [vmem:[%s6213_s29 + $0x340] sm:$0xff] %v3599_v10  ;;  %v3433_v62 = vpop.f32.mrf.mxu0  ;;  %v2857_v7 = vld [vmem:[%s7148_s2 + $0x7a8] sm:$0xff] }
 0x538   : > { %v3434_v30 = vadd.f32 %v3433_v62, %v6830_v35 }
 0x539   : > { %3735 = vst [vmem:[%s6213_s29 + $0x208] sm:$0xff] %v3482_v24  ;;  %3648 = vmatmul.f32.gmra.mxu2 %v2855_v49 }
 0x53a   : > { %3719 = vst [vmem:[%s6213_s29 + $0x188] sm:$0xff] %v3434_v30 }
 0x53c   : > { %v3601_v12 = vpop.f32.mrf.mxu2 }
 0x53d   : > { %v3602_v2 = vadd.f32 %v3601_v12, %v3200_v60  ;;  %v3218_v60 = vpop.f32.mrf.mxu3 }
 0x53e   : > { %v3083_v31 = vpop.f32.mrf.mxu1  ;;  %3262 = vmatmul.f32.gmra.mxu3 %v2864_v46 }
 0x53f   : > { %v3485_v35 = vadd.f32 %v6403_v40, %v3083_v31  ;;  %3775 = vst [vmem:[%s6213_s29 + $0x348] sm:$0xff] %v3602_v2  ;;  %v3436_v42 = vpop.f32.mrf.mxu0  ;;  %v2859_v40 = vld [vmem:[%s7148_s2 + $0x7b8] sm:$0xff] }
 0x540   : > { %v3437_v51 = vadd.f32 %v3436_v42, %v6850_v34 }
 0x541   : > { %3736 = vst [vmem:[%s6213_s29 + $0x210] sm:$0xff] %v3485_v35  ;;  %3651 = vmatmul.f32.gmra.mxu2 %v2857_v7 }
 0x542   : > { %3720 = vst [vmem:[%s6213_s29 + $0x190] sm:$0xff] %v3437_v51 }
 0x544   : > { %v3604_v0 = vpop.f32.mrf.mxu2 }
 0x545   : > { %v3605_v11 = vadd.f32 %v3604_v0, %v3203_v19  ;;  %v3221_v15 = vpop.f32.mrf.mxu3 }
 0x546   : > { %v3086_v41 = vpop.f32.mrf.mxu1  ;;  %3265 = vmatmul.f32.gmra.mxu3 %v2866_v25 }
 0x547   : > { %v3488_v34 = vadd.f32 %v6421_v58, %v3086_v41  ;;  %3776 = vst [vmem:[%s6213_s29 + $0x350] sm:$0xff] %v3605_v11  ;;  %v3439_v4 = vpop.f32.mrf.mxu0  ;;  %v2861_v58 = vld [vmem:[%s7148_s2 + $0x7c8] sm:$0xff] }
 0x548   : > { %v3440_v47 = vadd.f32 %v3439_v4, %v6870_v59 }
 0x549   : > { %3737 = vst [vmem:[%s6213_s29 + $0x218] sm:$0xff] %v3488_v34  ;;  %3654 = vmatmul.f32.gmra.mxu2 %v2859_v40 }
 0x54a   : > { %3721 = vst [vmem:[%s6213_s29 + $0x198] sm:$0xff] %v3440_v47 }
 0x54c   : > { %v3607_v44 = vpop.f32.mrf.mxu2 }
 0x54d   : > { %v3608_v21 = vadd.f32 %v3607_v44, %v3206_v29  ;;  %v3224_v33 = vpop.f32.mrf.mxu3 }
 0x54e   : > { %v3089_v14 = vpop.f32.mrf.mxu1 }
 0x54f   : > { %v3491_v59 = vadd.f32 %v6439_v13, %v3089_v14  ;;  %3777 = vst [vmem:[%s6213_s29 + $0x358] sm:$0xff] %v3608_v21  ;;  %v3442_v18 = vpop.f32.mrf.mxu0 }
 0x550   : > { %v3443_v1 = vadd.f32 %v3442_v18, %v6890_v54 }
 0x551   : > { %3738 = vst [vmem:[%s6213_s29 + $0x220] sm:$0xff] %v3491_v59  ;;  %3657 = vmatmul.f32.gmra.mxu2 %v2861_v58 }
 0x552   : > { %3722 = vst [vmem:[%s6213_s29 + $0x1a0] sm:$0xff] %v3443_v1 }
 0x554   : > { %v3610_v27 = vpop.f32.mrf.mxu2 }
 0x555   : > { %v3611_v45 = vadd.f32 %v3610_v27, %v3209_v22 }
 0x556   : > { %v3092_v50 = vpop.f32.mrf.mxu1 }
 0x557   : > { %v3494_v13 = vadd.f32 %v6457_v61, %v3092_v50  ;;  %3778 = vst [vmem:[%s6213_s29 + $0x360] sm:$0xff] %v3611_v45  ;;  %v3445_v19 = vpop.f32.mrf.mxu0 }
 0x558   : > { %v3446_v54 = vadd.f32 %v3445_v19, %v6908_v23 }
 0x559   : > { %3739 = vst [vmem:[%s6213_s29 + $0x228] sm:$0xff] %v3494_v13  ;;  %3660 = vmatmul.f32.gmra.mxu2 %v2863_v39 }
 0x55a   : > { %3723 = vst [vmem:[%s6213_s29 + $0x1a8] sm:$0xff] %v3446_v54 }
 0x55c   : > { %v3613_v52 = vpop.f32.mrf.mxu2 }
 0x55d   : > { %v3614_v32 = vadd.f32 %v3613_v52, %v3212_v36 }
 0x55e   : > { %v3095_v43 = vpop.f32.mrf.mxu1 }
 0x55f   : > { %v3497_v61 = vadd.f32 %v6475_v37, %v3095_v43  ;;  %3779 = vst [vmem:[%s6213_s29 + $0x368] sm:$0xff] %v3614_v32  ;;  %v3448_v48 = vpop.f32.mrf.mxu0 }
 0x560   : > { %v3449_v23 = vadd.f32 %v3448_v48, %v6926_v8  ;;  %v3227_v8 = vpop.f32.mrf.mxu3 }
 0x561   : > { %3740 = vst [vmem:[%s6213_s29 + $0x230] sm:$0xff] %v3497_v61  ;;  %3663 = vmatmul.f32.gmra.mxu2 %v2865_v9 }
 0x562   : > { %3724 = vst [vmem:[%s6213_s29 + $0x1b0] sm:$0xff] %v3449_v23 }
 0x564   : > { %v3616_v16 = vpop.f32.mrf.mxu2 }
 0x565   : > { %v3617_v56 = vadd.f32 %v3616_v16, %v3215_v63 }
 0x566   : > { %v3098_v29 = vpop.f32.mrf.mxu1 }
 0x567   : > { %v3500_v37 = vadd.f32 %v6493_v53, %v3098_v29  ;;  %3780 = vst [vmem:[%s6213_s29 + $0x370] sm:$0xff] %v3617_v56  ;;  %v3451_v3 = vpop.f32.mrf.mxu0 }
 0x568   : > { %v3452_v6 = vadd.f32 %v3451_v3, %v6944_v5  ;;  %v3230_v17 = vpop.f32.mrf.mxu3 }
 0x569   : > { %3741 = vst [vmem:[%s6213_s29 + $0x238] sm:$0xff] %v3500_v37  ;;  %3666 = vmatmul.f32.gmra.mxu2 %v2867_v28 }
 0x56a   : > { %3725 = vst [vmem:[%s6213_s29 + $0x1b8] sm:$0xff] %v3452_v6 }
 0x56c   : > { %v3619_v57 = vpop.f32.mrf.mxu2 }
 0x56d   : > { %v3620_v26 = vadd.f32 %v3619_v57, %v3218_v60 }
 0x56f   : > { %3781 = vst [vmem:[%s6213_s29 + $0x378] sm:$0xff] %v3620_v26 }
 0x571   : > { %v3233_v22 = vpop.f32.mrf.mxu3 }
 0x574   : > { %v3622_v20 = vpop.f32.mrf.mxu2 }
 0x575   : > { %v3623_v10 = vadd.f32 %v3622_v20, %v3221_v15 }
 0x577   : > { %3782 = vst [vmem:[%s6213_s29 + $0x380] sm:$0xff] %v3623_v10 }
 0x579   : > { %v3236_v24 = vpop.f32.mrf.mxu3 }
 0x57c   : > { %v3625_v53 = vpop.f32.mrf.mxu2 }
 0x57d   : > { %v3626_v55 = vadd.f32 %v3625_v53, %v3224_v33 }
 0x57f   : > { %3783 = vst [vmem:[%s6213_s29 + $0x388] sm:$0xff] %v3626_v55 }
 0x581   : > { %v3239_v38 = vpop.f32.mrf.mxu3 }
 0x584   : > { %v3628_v5 = vpop.f32.mrf.mxu2 }
 0x585   : > { %v3629_v49 = vadd.f32 %v3628_v5, %v3227_v8 }
 0x587   : > { %3784 = vst [vmem:[%s6213_s29 + $0x390] sm:$0xff] %v3629_v49 }
 0x589   : > { %v3242_v36 = vpop.f32.mrf.mxu3 }
 0x58c   : > { %v3631_v62 = vpop.f32.mrf.mxu2 }
 0x58d   : > { %v3632_v30 = vadd.f32 %v3631_v62, %v3230_v17 }
 0x58f   : > { %3785 = vst [vmem:[%s6213_s29 + $0x398] sm:$0xff] %v3632_v30 }
 0x591   : > { %v3245_v42 = vpop.f32.mrf.mxu3 }
 0x594   : > { %v3634_v12 = vpop.f32.mrf.mxu2 }
 0x595   : > { %v3635_v2 = vadd.f32 %v3634_v12, %v3233_v22 }
 0x597   : > { %3786 = vst [vmem:[%s6213_s29 + $0x3a0] sm:$0xff] %v3635_v2 }
 0x599   : > { %v3248_v11 = vpop.f32.mrf.mxu3 }
 0x59c   : > { %v3637_v31 = vpop.f32.mrf.mxu2 }
 0x59d   : > { %v3638_v7 = vadd.f32 %v3637_v31, %v3236_v24 }
 0x59f   : > { %3787 = vst [vmem:[%s6213_s29 + $0x3a8] sm:$0xff] %v3638_v7 }
 0x5a1   : > { %v3251_v40 = vpop.f32.mrf.mxu3 }
 0x5a4   : > { %v3640_v35 = vpop.f32.mrf.mxu2 }
 0x5a5   : > { %v3641_v51 = vadd.f32 %v3640_v35, %v3239_v38 }
 0x5a7   : > { %3788 = vst [vmem:[%s6213_s29 + $0x3b0] sm:$0xff] %v3641_v51 }
 0x5a9   : > { %v3254_v47 = vpop.f32.mrf.mxu3 }
 0x5ac   : > { %v3643_v46 = vpop.f32.mrf.mxu2 }
 0x5ad   : > { %v3644_v0 = vadd.f32 %v3643_v46, %v3242_v36 }
 0x5af   : > { %3789 = vst [vmem:[%s6213_s29 + $0x3b8] sm:$0xff] %v3644_v0 }
 0x5b1   : > { %v3257_v60 = vpop.f32.mrf.mxu3 }
 0x5b4   : > { %v3646_v63 = vpop.f32.mrf.mxu2 }
 0x5b5   : > { %v3647_v41 = vadd.f32 %v3646_v63, %v3245_v42 }
 0x5b7   : > { %3790 = vst [vmem:[%s6213_s29 + $0x3c0] sm:$0xff] %v3647_v41 }
 0x5b9   : > { %v3260_v18 = vpop.f32.mrf.mxu3 }
 0x5bc   : > { %v3649_v34 = vpop.f32.mrf.mxu2 }
 0x5bd   : > { %v3650_v4 = vadd.f32 %v3649_v34, %v3248_v11 }
 0x5bf   : > { %3791 = vst [vmem:[%s6213_s29 + $0x3c8] sm:$0xff] %v3650_v4 }
 0x5c1   : > { %v3263_v45 = vpop.f32.mrf.mxu3 }
 0x5c4   : > { %v3652_v25 = vpop.f32.mrf.mxu2 }
 0x5c5   : > { %v3653_v44 = vadd.f32 %v3652_v25, %v3251_v40 }
 0x5c7   : > { %3792 = vst [vmem:[%s6213_s29 + $0x3d0] sm:$0xff] %v3653_v44 }
 0x5c9   : > { %v3266_v39 = vpop.f32.mrf.mxu3 }
 0x5cc   : > { %v3655_v21 = vpop.f32.mrf.mxu2 }
 0x5cd   : > { %v3656_v14 = vadd.f32 %v3655_v21, %v3254_v47 }
 0x5cf   : > { %3793 = vst [vmem:[%s6213_s29 + $0x3d8] sm:$0xff] %v3656_v14 }
 0x5d4   : > { %v3658_v58 = vpop.f32.mrf.mxu2 }
 0x5d5   : > { %v3659_v59 = vadd.f32 %v3658_v58, %v3257_v60 }
 0x5d7   : > { %3794 = vst [vmem:[%s6213_s29 + $0x3e0] sm:$0xff] %v3659_v59 }
 0x5dc   : > { %v3661_v1 = vpop.f32.mrf.mxu2 }
 0x5dd   : > { %v3662_v27 = vadd.f32 %v3661_v1, %v3260_v18 }
 0x5df   : > { %3795 = vst [vmem:[%s6213_s29 + $0x3e8] sm:$0xff] %v3662_v27 }
 0x5e4   : > { %v3664_v15 = vpop.f32.mrf.mxu2 }
 0x5e5   : > { %v3665_v50 = vadd.f32 %v3664_v15, %v3263_v45 }
 0x5e7   : > { %3796 = vst [vmem:[%s6213_s29 + $0x3f0] sm:$0xff] %v3665_v50 }
 0x5ec   : > { %v3667_v13 = vpop.f32.mrf.mxu2 }
 0x5ed   : > { %v3668_v19 = vadd.f32 %v3667_v13, %v3266_v39 }
 0x5ef   : > { %3797 = vst [vmem:[%s6213_s29 + $0x3f8] sm:$0xff] %v3668_v19 }
 0x5f0 PF: > { %s13_s12 = sadd.s32 1, %s4409_s12  }
 0x5f1   : > { %p10_p4 = scmp.ge.s32.totalorder %s13_s12, 4  }
 0x5f3   :  { %12 = sbr.rel (!%p10_p4) target bundleno = 1 (0x1), region = 72 }

</bundles_post_ra>
